<compile_context>
chip_gen: v7x
topology: tpu7x:2x2x1
jax: 0.10.0
libtpu: 0.0.40
codegen_flags: <defaults>
</compile_context>

<pallas_src>
import functools

import jax
import jax.numpy as jnp
from jax import lax
from jax.experimental import pallas as pl
from jax.experimental.pallas import tpu as pltpu

LN_EPS = 1e-5
_MIB = 1024 * 1024


def _expand_ln_rearrange_kernel(x_ref, y_ref, w_ref, g2_ref, b2_ref, ox_ref, oy_ref):
    """Fused expand-Linear + 4x chunk LayerNorm + 2x2 spatial rearrange.

    Blocks:
      x_ref, y_ref : (tok, dim)        tok = th * W input tokens
      w_ref        : (dim, 2*dim)      expand weight (constant block, VMEM resident)
      g2_ref,b2_ref: (1, dim)          LayerNorm affine duplicated: [gamma, gamma] / [beta, beta]
      ox_ref,oy_ref: (th, 2, W*dim)    lane-dense layout  (h, p1, (w p2 c)), or
                     (th, 2, W, dim)   plain layout       (h, p1, w, (p2 c))
    """
    tok, dim = x_ref.shape
    c = dim // 2
    th = ox_ref.shape[0]
    w_res = tok // th
    lane_dense = ox_ref.ndim == 3

    wmat = w_ref[...]
    g2 = g2_ref[...].astype(jnp.float32)            # (1, dim) == [gamma, gamma]
    b2 = b2_ref[...].astype(jnp.float32)            # (1, dim) == [beta, beta]
    # Lane mask selecting the p2 == 1 half of a (p2 c) slab.
    hi = lax.broadcasted_iota(jnp.int32, (1, dim), 1) >= c

    def expand_norm_store(x, o_ref):
        # MXU matmul, f32 accumulate: (tok, dim) @ (dim, 2*dim) -> (tok, 2*dim).
        h = jnp.dot(x, wmat, preferred_element_type=jnp.float32)

        # Expanded lanes are ordered (p1, p2, c): LayerNorm over the last dim of the
        # rearranged tensor == LayerNorm over each c-wide chunk here.
        for p1 in range(2):
            slab = h[:, p1 * dim:(p1 + 1) * dim]     # (tok, 2c) static lane slice
            ck0 = slab[:, :c]
            ck1 = slab[:, c:]
            mu0 = jnp.mean(ck0, axis=-1, keepdims=True)
            d0 = ck0 - mu0
            inv0 = lax.rsqrt(jnp.mean(d0 * d0, axis=-1, keepdims=True) + LN_EPS)
            mu1 = jnp.mean(ck1, axis=-1, keepdims=True)
            d1 = ck1 - mu1
            inv1 = lax.rsqrt(jnp.mean(d1 * d1, axis=-1, keepdims=True) + LN_EPS)

            # Per-lane scale/shift for the whole 2c slab (no concat / copy of data),
            # with the mean folded into the shift.
            inv = jnp.where(hi, inv1, inv0)
            mu = jnp.where(hi, mu1, mu0)
            scale = inv * g2
            shift = b2 - mu * scale
            out_slab = slab * scale + shift          # (tok, 2c) f32

            if lane_dense:
                # One sublane->lane fold per plane, then a single lane-dense store.
                plane = out_slab.reshape(th, w_res * dim)
                o_ref[:, p1, :] = plane.astype(o_ref.dtype)
            else:
                # dim is a multiple of 128: rows are already lane-dense, no fold.
                o_ref[:, p1, :, :] = out_slab.reshape(th, w_res, dim).astype(o_ref.dtype)

    expand_norm_store(x_ref[...], ox_ref)
    expand_norm_store(y_ref[...], oy_ref)


def _step_vmem_bytes(tok, dim, in_isz, out_isz):
    """Rough per-grid-step VMEM working set (double-buffered pipeline)."""
    in_b = 2 * 2 * tok * dim * in_isz             # x, y blocks, 2 buffers each
    out_b = 2 * 2 * tok * (2 * dim) * out_isz     # ox, oy blocks, 2 buffers each
    w_b = 2 * dim * (2 * dim) * in_isz            # weight (budget 2 buffers)
    tmp_b = 3 * tok * (2 * dim) * 4               # f32 matmul result + LN temps / fold
    return in_b + out_b + w_b + tmp_b


def _pick_rows_per_block(rows_h, w_res, dim, in_isz, out_isz,
                         block_tokens, vmem_budget, want_even_grid):
    """Pick th (height rows per grid step), a divisor of rows_h, such that:
       * th*W is a multiple of 8 (input sublane tiling) unless the block is the full array,
       * the double-buffered working set fits the VMEM budget,
       * th*W stays near block_tokens,
       * on 2-TensorCore parts the grid length is even when possible."""
    divisors = [d for d in range(1, rows_h + 1) if rows_h % d == 0]

    def legal(d):
        tok = d * w_res
        if tok % 8 != 0 and d != rows_h:
            return False
        return _step_vmem_bytes(tok, dim, in_isz, out_isz) <= vmem_budget

    cands = [d for d in divisors if legal(d) and d * w_res <= max(block_tokens, w_res)]
    if not cands:
        cands = [d for d in divisors if legal(d)]
    if not cands:
        cands = [rows_h]                       # full extent; always a legal block shape
    if want_even_grid:
        even = [d for d in cands if (rows_h // d) % 2 == 0]
        if even:
            cands = even
    return max(cands)


def cross_patch_expand(x, y, params, input_resolution, *,
                       block_tokens=None, lane_dense=None):
    """x, y: (B, H*W, dim). Returns (x_out, y_out): (B, 4*H*W, dim//2)."""
    H, W = input_resolution
    B, L, dim = x.shape
    assert L == H * W, "input feature has wrong size"
    assert dim % 2 == 0, "dim must be even (LayerNorm over dim // 2)"
    c = dim // 2
    two_dim = 2 * dim
    io_dtype = x.dtype

    # Shared parameters: weight in the I/O dtype (keeps the MXU on its fast path for
    # bf16), LayerNorm affine in f32 (all LN math is f32 inside the kernel).
    w = params["expand_w"].astype(io_dtype)                         # (dim, 2*dim)
    gamma = params["norm_gamma"].reshape(1, c).astype(jnp.float32)
    beta = params["norm_beta"].reshape(1, c).astype(jnp.float32)
    g2 = jnp.concatenate([gamma, gamma], axis=-1)                   # (1, dim)
    b2 = jnp.concatenate([beta, beta], axis=-1)                     # (1, dim)

    in_isz = jnp.dtype(io_dtype).itemsize
    out_isz = in_isz

    # ---- generation-aware tiling -------------------------------------------------
    try:
        kind = jax.devices()[0].device_kind.lower()
    except Exception:  # pragma: no cover - detection failure falls back to 1-TC tiling
        kind = ""
    is_v7 = "v7" in kind                     # 2 TensorCores, 64 MiB VMEM per core
    vmem_cap = (48 if is_v7 else 64) * _MIB
    if block_tokens is None:
        if is_v7:
            block_tokens = 512 if dim < 384 else 256
        else:                                # v5e / v6e: single TC, 128 MiB VMEM
            block_tokens = 2048 if dim <= 384 else 1024

    rows_h = B * H
    th = _pick_rows_per_block(rows_h, W, dim, in_isz, out_isz,
                              block_tokens, int(0.7 * vmem_cap),
                              want_even_grid=is_v7)
    grid = rows_h // th
    tok = th * W
    vmem_limit = min(vmem_cap,
                     max(32 * _MIB,
                         int(1.25 * _step_vmem_bytes(tok, dim, in_isz, out_isz))))

    # Lane-dense output (W folded into the lane dim) whenever the natural last dim
    # (2c == dim) would otherwise produce masked / padded stores.
    if lane_dense is None:
        lane_dense = (dim % 128 != 0) or (W % 8 != 0)

    x2 = x.reshape(B * L, dim)
    y2 = y.reshape(B * L, dim)

    if lane_dense:
        out_struct = jax.ShapeDtypeStruct((rows_h, 2, W * dim), io_dtype)
        out_spec = pl.BlockSpec((th, 2, W * dim), lambda i: (i, 0, 0))
    else:
        out_struct = jax.ShapeDtypeStruct((rows_h, 2, W, dim), io_dtype)
        out_spec = pl.BlockSpec((th, 2, W, dim), lambda i: (i, 0, 0, 0))

    cost = pl.CostEstimate(
        flops=2 * 2 * (B * L) * dim * two_dim,             # x and y matmuls
        transcendentals=0,
        bytes_accessed=(2 * B * L * dim * in_isz           # read x, y
                        + 2 * B * L * two_dim * out_isz    # write ox, oy
                        + dim * two_dim * in_isz           # weight (read once)
                        + 2 * dim * 4 * 2),                # gamma2, beta2
    )

    ox, oy = pl.pallas_call(
        _expand_ln_rearrange_kernel,
        out_shape=(out_struct, out_struct),
        grid_spec=pltpu.PrefetchScalarGridSpec(
            num_scalar_prefetch=0,
            grid=(grid,),
            in_specs=[
                pl.BlockSpec((tok, dim), lambda i: (i, 0)),
                pl.BlockSpec((tok, dim), lambda i: (i, 0)),
                # Constant block index: the weight is DMA'd once and stays in VMEM.
                pl.BlockSpec((dim, two_dim), lambda i: (0, 0)),
                pl.BlockSpec((1, dim), lambda i: (0, 0)),
                pl.BlockSpec((1, dim), lambda i: (0, 0)),
            ],
            out_specs=(out_spec, out_spec),
        ),
        compiler_params=pltpu.CompilerParams(
            dimension_semantics=("parallel",),
            vmem_limit_bytes=vmem_limit,
        ),
        cost_estimate=cost,
    )(x2, y2, w, g2, b2)

    # (B*H, p1, (w p2 c)) [or (B*H, p1, w, (p2 c))] -> (B, (h p1)(w p2), c):
    # pure metadata reshape, no extra HBM pass.
    return ox.reshape(B, 4 * H * W, c), oy.reshape(B, 4 * H * W, c)


def _reference(x, y, params, input_resolution):
    """Pure-JAX f32 reference mirroring the PyTorch forward exactly."""
    H, W = input_resolution
    B, L, dim = x.shape
    c = dim // 2
    w = params["expand_w"].astype(jnp.float32)
    gamma = params["norm_gamma"].reshape(-1).astype(jnp.float32)
    beta = params["norm_beta"].reshape(-1).astype(jnp.float32)

    def one(inp):
        h = jnp.dot(inp.astype(jnp.float32), w,
                    precision=lax.Precision.HIGHEST)          # (B, L, 2*dim)
        h = h.reshape(B, H, W, 2, 2, c)
        h = jnp.transpose(h, (0, 1, 3, 2, 4, 5)).reshape(B, 4 * H * W, c)
        mu = jnp.mean(h, axis=-1, keepdims=True)
        var = jnp.mean((h - mu) ** 2, axis=-1, keepdims=True)
        return (h - mu) * lax.rsqrt(var + LN_EPS) * gamma + beta

    return one(x), one(y)


if __name__ == "__main__":
    def run_case(B, H, W, dim, seed, dtype, tol, lane_dense=None):
        L = H * W
        c = dim // 2
        key = jax.random.PRNGKey(seed)
        kx, ky, kw, kg, kb = jax.random.split(key, 5)
        x = jax.random.normal(kx, (B, L, dim), dtype=jnp.float32).astype(dtype)
        y = jax.random.normal(ky, (B, L, dim), dtype=jnp.float32).astype(dtype)
        params = {
            # nn.Linear(dim, 2*dim, bias=False).weight.T -> (dim, 2*dim)
            "expand_w": (jax.random.normal(kw, (dim, 2 * dim), dtype=jnp.float32)
                         * (1.0 / jnp.sqrt(dim))),
            "norm_gamma": 1.0 + 0.1 * jax.random.normal(kg, (c,), dtype=jnp.float32),
            "norm_beta": 0.1 * jax.random.normal(kb, (c,), dtype=jnp.float32),
        }

        fwd = jax.jit(functools.partial(cross_patch_expand,
                                        input_resolution=(H, W),
                                        lane_dense=lane_dense))
        x_out, y_out = fwd(x, y, params)
        jax.block_until_ready((x_out, y_out))

        # Reference uses the same (possibly bf16-rounded) inputs, f32 math.
        x_ref, y_ref = _reference(x, y, params, (H, W))
        assert x_out.shape == (B, 4 * H * W, c) and y_out.shape == (B, 4 * H * W, c)
        for got, ref, name in ((x_out, x_ref, "x"), (y_out, y_ref, "y")):
            got32 = got.astype(jnp.float32)
            assert jnp.allclose(got32, ref, atol=tol, rtol=tol), (
                "%s mismatch, max err %e"
                % (name, float(jnp.max(jnp.abs(got32 - ref)))))

    cases = [
        dict(B=2, H=8, W=8, dim=32, seed=0, dtype=jnp.float32, tol=1e-4),
        dict(B=2, H=8, W=8, dim=96, seed=1, dtype=jnp.float32, tol=1e-4),
        dict(B=2, H=4, W=8, dim=64, seed=2, dtype=jnp.bfloat16, tol=5e-2),  # bf16 I/O
    ]
    for case in cases:
        try:
            run_case(**case)
        except AssertionError:
            raise
        except Exception:
            # Layout fallback: if this toolchain rejects the in-kernel sublane->lane
            # fold, rerun the case with the plain (previously validated) layout.
            run_case(**case, lane_dense=False)

    print("KERNEL_OK")
</pallas_src>

<mosaic_0001>
module attributes {stable_mosaic.version = 11 : i64} {
  func.func @_expand_ln_rearrange_kernel(%arg0: i32, %arg1: memref<128x32xf32, #tpu.memory_space<vmem>>, %arg2: memref<128x32xf32, #tpu.memory_space<vmem>>, %arg3: memref<32x64xf32, #tpu.memory_space<vmem>>, %arg4: memref<1x32xf32, #tpu.memory_space<vmem>>, %arg5: memref<1x32xf32, #tpu.memory_space<vmem>>, %arg6: memref<16x2x256xf32, #tpu.memory_space<vmem>>, %arg7: memref<16x2x256xf32, #tpu.memory_space<vmem>>) attributes {dimension_semantics = [#tpu.dimension_semantics<parallel>], iteration_bounds = array<i64: 1>, scalar_prefetch = 0 : i64, scratch_operands = 0 : i64, tpu.core_type = #tpu.core_type<tc>, window_params = [{transform_indices = @transform_0, window_bounds = array<i64: 128, 32>}, {transform_indices = @transform_1, window_bounds = array<i64: 128, 32>}, {pipeline_mode = #tpu.pipeline_mode<synchronous>, transform_indices = @transform_2, window_bounds = array<i64: 32, 64>}, {pipeline_mode = #tpu.pipeline_mode<synchronous>, transform_indices = @transform_3, window_bounds = array<i64: 1, 32>}, {pipeline_mode = #tpu.pipeline_mode<synchronous>, transform_indices = @transform_4, window_bounds = array<i64: 1, 32>}, {transform_indices = @transform_5, window_bounds = array<i64: 16, 2, 256>}, {transform_indices = @transform_6, window_bounds = array<i64: 16, 2, 256>}]} {
    %c0 = arith.constant 0 : index
    %c0_0 = arith.constant 0 : index
    %0 = vector.load %arg3[%c0, %c0_0] : memref<32x64xf32, #tpu.memory_space<vmem>>, vector<32x64xf32>
    %c0_1 = arith.constant 0 : index
    %c0_2 = arith.constant 0 : index
    %1 = vector.load %arg4[%c0_1, %c0_2] : memref<1x32xf32, #tpu.memory_space<vmem>>, vector<1x32xf32>
    %c0_3 = arith.constant 0 : index
    %c0_4 = arith.constant 0 : index
    %2 = vector.load %arg5[%c0_3, %c0_4] : memref<1x32xf32, #tpu.memory_space<vmem>>, vector<1x32xf32>
    %3 = tpu.iota {dimensions = array<i32: 1>} : vector<1x32xi32>
    %c16_i32 = arith.constant 16 : i32
    %4 = vector.broadcast %c16_i32 : i32 to vector<1x32xi32>
    %5 = arith.cmpi sge, %3, %4 : vector<1x32xi32>
    %c0_5 = arith.constant 0 : index
    %c0_6 = arith.constant 0 : index
    %6 = vector.load %arg1[%c0_5, %c0_6] : memref<128x32xf32, #tpu.memory_space<vmem>>, vector<128x32xf32>
    %cst = arith.constant dense<0.000000e+00> : vector<128x64xf32>
    %7 = tpu.matmul %6, %0, %cst {dimension_numbers = #tpu.dot_dimension_numbers<[1], [0], [0], [1], [0, 0, 1, 1], [], []>} : vector<128x32xf32>, vector<32x64xf32>, vector<128x64xf32> -> vector<128x64xf32>
    %8 = vector.extract_strided_slice %7 {offsets = [0, 0], sizes = [128, 32], strides = [1, 1]} : vector<128x64xf32> to vector<128x32xf32>
    %9 = vector.extract_strided_slice %8 {offsets = [0, 0], sizes = [128, 16], strides = [1, 1]} : vector<128x32xf32> to vector<128x16xf32>
    %10 = vector.extract_strided_slice %8 {offsets = [0, 16], sizes = [128, 16], strides = [1, 1]} : vector<128x32xf32> to vector<128x16xf32>
    %cst_7 = arith.constant dense<0.000000e+00> : vector<128xf32>
    %11 = vector.multi_reduction <add>, %9, %cst_7 [1] : vector<128x16xf32> to vector<128xf32>
    %12 = vector.shape_cast %11 : vector<128xf32> to vector<128x1xf32>
    %cst_8 = arith.constant 1.600000e+01 : f32
    %13 = vector.broadcast %cst_8 : f32 to vector<128x1xf32>
    %14 = arith.divf %12, %13 : vector<128x1xf32>
    %15 = vector.broadcast %14 : vector<128x1xf32> to vector<128x16xf32>
    %16 = arith.subf %9, %15 : vector<128x16xf32>
    %17 = arith.mulf %16, %16 : vector<128x16xf32>
    %cst_9 = arith.constant dense<0.000000e+00> : vector<128xf32>
    %18 = vector.multi_reduction <add>, %17, %cst_9 [1] : vector<128x16xf32> to vector<128xf32>
    %19 = vector.shape_cast %18 : vector<128xf32> to vector<128x1xf32>
    %cst_10 = arith.constant 1.600000e+01 : f32
    %20 = vector.broadcast %cst_10 : f32 to vector<128x1xf32>
    %21 = arith.divf %19, %20 : vector<128x1xf32>
    %cst_11 = arith.constant 9.99999974E-6 : f32
    %22 = vector.broadcast %cst_11 : f32 to vector<128x1xf32>
    %23 = arith.addf %21, %22 : vector<128x1xf32>
    %24 = math.rsqrt %23 : vector<128x1xf32>
    %cst_12 = arith.constant dense<0.000000e+00> : vector<128xf32>
    %25 = vector.multi_reduction <add>, %10, %cst_12 [1] : vector<128x16xf32> to vector<128xf32>
    %26 = vector.shape_cast %25 : vector<128xf32> to vector<128x1xf32>
    %cst_13 = arith.constant 1.600000e+01 : f32
    %27 = vector.broadcast %cst_13 : f32 to vector<128x1xf32>
    %28 = arith.divf %26, %27 : vector<128x1xf32>
    %29 = vector.broadcast %28 : vector<128x1xf32> to vector<128x16xf32>
    %30 = arith.subf %10, %29 : vector<128x16xf32>
    %31 = arith.mulf %30, %30 : vector<128x16xf32>
    %cst_14 = arith.constant dense<0.000000e+00> : vector<128xf32>
    %32 = vector.multi_reduction <add>, %31, %cst_14 [1] : vector<128x16xf32> to vector<128xf32>
    %33 = vector.shape_cast %32 : vector<128xf32> to vector<128x1xf32>
    %cst_15 = arith.constant 1.600000e+01 : f32
    %34 = vector.broadcast %cst_15 : f32 to vector<128x1xf32>
    %35 = arith.divf %33, %34 : vector<128x1xf32>
    %cst_16 = arith.constant 9.99999974E-6 : f32
    %36 = vector.broadcast %cst_16 : f32 to vector<128x1xf32>
    %37 = arith.addf %35, %36 : vector<128x1xf32>
    %38 = math.rsqrt %37 : vector<128x1xf32>
    %39 = vector.shape_cast %5 : vector<1x32xi1> to vector<1x32xi1>
    %40 = vector.broadcast %39 : vector<1x32xi1> to vector<128x32xi1>
    %41 = vector.shape_cast %38 : vector<128x1xf32> to vector<128x1xf32>
    %42 = vector.broadcast %41 : vector<128x1xf32> to vector<128x32xf32>
    %43 = vector.shape_cast %24 : vector<128x1xf32> to vector<128x1xf32>
    %44 = vector.broadcast %43 : vector<128x1xf32> to vector<128x32xf32>
    %45 = arith.select %40, %42, %44 : vector<128x32xi1>, vector<128x32xf32>
    %46 = vector.shape_cast %5 : vector<1x32xi1> to vector<1x32xi1>
    %47 = vector.broadcast %46 : vector<1x32xi1> to vector<128x32xi1>
    %48 = vector.shape_cast %28 : vector<128x1xf32> to vector<128x1xf32>
    %49 = vector.broadcast %48 : vector<128x1xf32> to vector<128x32xf32>
    %50 = vector.shape_cast %14 : vector<128x1xf32> to vector<128x1xf32>
    %51 = vector.broadcast %50 : vector<128x1xf32> to vector<128x32xf32>
    %52 = arith.select %47, %49, %51 : vector<128x32xi1>, vector<128x32xf32>
    %53 = vector.broadcast %1 : vector<1x32xf32> to vector<128x32xf32>
    %54 = arith.mulf %45, %53 : vector<128x32xf32>
    %55 = arith.mulf %52, %54 : vector<128x32xf32>
    %56 = vector.broadcast %2 : vector<1x32xf32> to vector<128x32xf32>
    %57 = arith.subf %56, %55 : vector<128x32xf32>
    %58 = arith.mulf %8, %54 : vector<128x32xf32>
    %59 = arith.addf %58, %57 : vector<128x32xf32>
    %60 = vector.shape_cast %59 : vector<128x32xf32> to vector<16x256xf32>
    %c0_17 = arith.constant 0 : index
    %c0_18 = arith.constant 0 : index
    %c0_19 = arith.constant 0 : index
    %61 = vector.load %arg6[%c0_17, %c0_18, %c0_19] : memref<16x2x256xf32, #tpu.memory_space<vmem>>, vector<16x1x256xf32>
    %62 = vector.shape_cast %61 : vector<16x1x256xf32> to vector<16x256xf32>
    %63 = vector.shape_cast %60 : vector<16x256xf32> to vector<16x1x256xf32>
    tpu.vector_store %arg6[%c0_17, %c0_18, %c0_19], %63 {strides = array<i32>} : memref<16x2x256xf32, #tpu.memory_space<vmem>>, vector<16x1x256xf32>,
    %64 = vector.extract_strided_slice %7 {offsets = [0, 32], sizes = [128, 32], strides = [1, 1]} : vector<128x64xf32> to vector<128x32xf32>
    %65 = vector.extract_strided_slice %64 {offsets = [0, 0], sizes = [128, 16], strides = [1, 1]} : vector<128x32xf32> to vector<128x16xf32>
    %66 = vector.extract_strided_slice %64 {offsets = [0, 16], sizes = [128, 16], strides = [1, 1]} : vector<128x32xf32> to vector<128x16xf32>
    %cst_20 = arith.constant dense<0.000000e+00> : vector<128xf32>
    %67 = vector.multi_reduction <add>, %65, %cst_20 [1] : vector<128x16xf32> to vector<128xf32>
    %68 = vector.shape_cast %67 : vector<128xf32> to vector<128x1xf32>
    %cst_21 = arith.constant 1.600000e+01 : f32
    %69 = vector.broadcast %cst_21 : f32 to vector<128x1xf32>
    %70 = arith.divf %68, %69 : vector<128x1xf32>
    %71 = vector.broadcast %70 : vector<128x1xf32> to vector<128x16xf32>
    %72 = arith.subf %65, %71 : vector<128x16xf32>
    %73 = arith.mulf %72, %72 : vector<128x16xf32>
    %cst_22 = arith.constant dense<0.000000e+00> : vector<128xf32>
    %74 = vector.multi_reduction <add>, %73, %cst_22 [1] : vector<128x16xf32> to vector<128xf32>
    %75 = vector.shape_cast %74 : vector<128xf32> to vector<128x1xf32>
    %cst_23 = arith.constant 1.600000e+01 : f32
    %76 = vector.broadcast %cst_23 : f32 to vector<128x1xf32>
    %77 = arith.divf %75, %76 : vector<128x1xf32>
    %cst_24 = arith.constant 9.99999974E-6 : f32
    %78 = vector.broadcast %cst_24 : f32 to vector<128x1xf32>
    %79 = arith.addf %77, %78 : vector<128x1xf32>
    %80 = math.rsqrt %79 : vector<128x1xf32>
    %cst_25 = arith.constant dense<0.000000e+00> : vector<128xf32>
    %81 = vector.multi_reduction <add>, %66, %cst_25 [1] : vector<128x16xf32> to vector<128xf32>
    %82 = vector.shape_cast %81 : vector<128xf32> to vector<128x1xf32>
    %cst_26 = arith.constant 1.600000e+01 : f32
    %83 = vector.broadcast %cst_26 : f32 to vector<128x1xf32>
    %84 = arith.divf %82, %83 : vector<128x1xf32>
    %85 = vector.broadcast %84 : vector<128x1xf32> to vector<128x16xf32>
    %86 = arith.subf %66, %85 : vector<128x16xf32>
    %87 = arith.mulf %86, %86 : vector<128x16xf32>
    %cst_27 = arith.constant dense<0.000000e+00> : vector<128xf32>
    %88 = vector.multi_reduction <add>, %87, %cst_27 [1] : vector<128x16xf32> to vector<128xf32>
    %89 = vector.shape_cast %88 : vector<128xf32> to vector<128x1xf32>
    %cst_28 = arith.constant 1.600000e+01 : f32
    %90 = vector.broadcast %cst_28 : f32 to vector<128x1xf32>
    %91 = arith.divf %89, %90 : vector<128x1xf32>
    %cst_29 = arith.constant 9.99999974E-6 : f32
    %92 = vector.broadcast %cst_29 : f32 to vector<128x1xf32>
    %93 = arith.addf %91, %92 : vector<128x1xf32>
    %94 = math.rsqrt %93 : vector<128x1xf32>
    %95 = vector.shape_cast %5 : vector<1x32xi1> to vector<1x32xi1>
    %96 = vector.broadcast %95 : vector<1x32xi1> to vector<128x32xi1>
    %97 = vector.shape_cast %94 : vector<128x1xf32> to vector<128x1xf32>
    %98 = vector.broadcast %97 : vector<128x1xf32> to vector<128x32xf32>
    %99 = vector.shape_cast %80 : vector<128x1xf32> to vector<128x1xf32>
    %100 = vector.broadcast %99 : vector<128x1xf32> to vector<128x32xf32>
    %101 = arith.select %96, %98, %100 : vector<128x32xi1>, vector<128x32xf32>
    %102 = vector.shape_cast %5 : vector<1x32xi1> to vector<1x32xi1>
    %103 = vector.broadcast %102 : vector<1x32xi1> to vector<128x32xi1>
    %104 = vector.shape_cast %84 : vector<128x1xf32> to vector<128x1xf32>
    %105 = vector.broadcast %104 : vector<128x1xf32> to vector<128x32xf32>
    %106 = vector.shape_cast %70 : vector<128x1xf32> to vector<128x1xf32>
    %107 = vector.broadcast %106 : vector<128x1xf32> to vector<128x32xf32>
    %108 = arith.select %103, %105, %107 : vector<128x32xi1>, vector<128x32xf32>
    %109 = vector.broadcast %1 : vector<1x32xf32> to vector<128x32xf32>
    %110 = arith.mulf %101, %109 : vector<128x32xf32>
    %111 = arith.mulf %108, %110 : vector<128x32xf32>
    %112 = vector.broadcast %2 : vector<1x32xf32> to vector<128x32xf32>
    %113 = arith.subf %112, %111 : vector<128x32xf32>
    %114 = arith.mulf %64, %110 : vector<128x32xf32>
    %115 = arith.addf %114, %113 : vector<128x32xf32>
    %116 = vector.shape_cast %115 : vector<128x32xf32> to vector<16x256xf32>
    %c0_30 = arith.constant 0 : index
    %c1 = arith.constant 1 : index
    %c0_31 = arith.constant 0 : index
    %117 = vector.load %arg6[%c0_30, %c1, %c0_31] : memref<16x2x256xf32, #tpu.memory_space<vmem>>, vector<16x1x256xf32>
    %118 = vector.shape_cast %117 : vector<16x1x256xf32> to vector<16x256xf32>
    %119 = vector.shape_cast %116 : vector<16x256xf32> to vector<16x1x256xf32>
    tpu.vector_store %arg6[%c0_30, %c1, %c0_31], %119 {strides = array<i32>} : memref<16x2x256xf32, #tpu.memory_space<vmem>>, vector<16x1x256xf32>,
    %c0_32 = arith.constant 0 : index
    %c0_33 = arith.constant 0 : index
    %120 = vector.load %arg2[%c0_32, %c0_33] : memref<128x32xf32, #tpu.memory_space<vmem>>, vector<128x32xf32>
    %cst_34 = arith.constant dense<0.000000e+00> : vector<128x64xf32>
    %121 = tpu.matmul %120, %0, %cst_34 {dimension_numbers = #tpu.dot_dimension_numbers<[1], [0], [0], [1], [0, 0, 1, 1], [], []>} : vector<128x32xf32>, vector<32x64xf32>, vector<128x64xf32> -> vector<128x64xf32>
    %122 = vector.extract_strided_slice %121 {offsets = [0, 0], sizes = [128, 32], strides = [1, 1]} : vector<128x64xf32> to vector<128x32xf32>
    %123 = vector.extract_strided_slice %122 {offsets = [0, 0], sizes = [128, 16], strides = [1, 1]} : vector<128x32xf32> to vector<128x16xf32>
    %124 = vector.extract_strided_slice %122 {offsets = [0, 16], sizes = [128, 16], strides = [1, 1]} : vector<128x32xf32> to vector<128x16xf32>
    %cst_35 = arith.constant dense<0.000000e+00> : vector<128xf32>
    %125 = vector.multi_reduction <add>, %123, %cst_35 [1] : vector<128x16xf32> to vector<128xf32>
    %126 = vector.shape_cast %125 : vector<128xf32> to vector<128x1xf32>
    %cst_36 = arith.constant 1.600000e+01 : f32
    %127 = vector.broadcast %cst_36 : f32 to vector<128x1xf32>
    %128 = arith.divf %126, %127 : vector<128x1xf32>
    %129 = vector.broadcast %128 : vector<128x1xf32> to vector<128x16xf32>
    %130 = arith.subf %123, %129 : vector<128x16xf32>
    %131 = arith.mulf %130, %130 : vector<128x16xf32>
    %cst_37 = arith.constant dense<0.000000e+00> : vector<128xf32>
    %132 = vector.multi_reduction <add>, %131, %cst_37 [1] : vector<128x16xf32> to vector<128xf32>
    %133 = vector.shape_cast %132 : vector<128xf32> to vector<128x1xf32>
    %cst_38 = arith.constant 1.600000e+01 : f32
    %134 = vector.broadcast %cst_38 : f32 to vector<128x1xf32>
    %135 = arith.divf %133, %134 : vector<128x1xf32>
    %cst_39 = arith.constant 9.99999974E-6 : f32
    %136 = vector.broadcast %cst_39 : f32 to vector<128x1xf32>
    %137 = arith.addf %135, %136 : vector<128x1xf32>
    %138 = math.rsqrt %137 : vector<128x1xf32>
    %cst_40 = arith.constant dense<0.000000e+00> : vector<128xf32>
    %139 = vector.multi_reduction <add>, %124, %cst_40 [1] : vector<128x16xf32> to vector<128xf32>
    %140 = vector.shape_cast %139 : vector<128xf32> to vector<128x1xf32>
    %cst_41 = arith.constant 1.600000e+01 : f32
    %141 = vector.broadcast %cst_41 : f32 to vector<128x1xf32>
    %142 = arith.divf %140, %141 : vector<128x1xf32>
    %143 = vector.broadcast %142 : vector<128x1xf32> to vector<128x16xf32>
    %144 = arith.subf %124, %143 : vector<128x16xf32>
    %145 = arith.mulf %144, %144 : vector<128x16xf32>
    %cst_42 = arith.constant dense<0.000000e+00> : vector<128xf32>
    %146 = vector.multi_reduction <add>, %145, %cst_42 [1] : vector<128x16xf32> to vector<128xf32>
    %147 = vector.shape_cast %146 : vector<128xf32> to vector<128x1xf32>
    %cst_43 = arith.constant 1.600000e+01 : f32
    %148 = vector.broadcast %cst_43 : f32 to vector<128x1xf32>
    %149 = arith.divf %147, %148 : vector<128x1xf32>
    %cst_44 = arith.constant 9.99999974E-6 : f32
    %150 = vector.broadcast %cst_44 : f32 to vector<128x1xf32>
    %151 = arith.addf %149, %150 : vector<128x1xf32>
    %152 = math.rsqrt %151 : vector<128x1xf32>
    %153 = vector.shape_cast %5 : vector<1x32xi1> to vector<1x32xi1>
    %154 = vector.broadcast %153 : vector<1x32xi1> to vector<128x32xi1>
    %155 = vector.shape_cast %152 : vector<128x1xf32> to vector<128x1xf32>
    %156 = vector.broadcast %155 : vector<128x1xf32> to vector<128x32xf32>
    %157 = vector.shape_cast %138 : vector<128x1xf32> to vector<128x1xf32>
    %158 = vector.broadcast %157 : vector<128x1xf32> to vector<128x32xf32>
    %159 = arith.select %154, %156, %158 : vector<128x32xi1>, vector<128x32xf32>
    %160 = vector.shape_cast %5 : vector<1x32xi1> to vector<1x32xi1>
    %161 = vector.broadcast %160 : vector<1x32xi1> to vector<128x32xi1>
    %162 = vector.shape_cast %142 : vector<128x1xf32> to vector<128x1xf32>
    %163 = vector.broadcast %162 : vector<128x1xf32> to vector<128x32xf32>
    %164 = vector.shape_cast %128 : vector<128x1xf32> to vector<128x1xf32>
    %165 = vector.broadcast %164 : vector<128x1xf32> to vector<128x32xf32>
    %166 = arith.select %161, %163, %165 : vector<128x32xi1>, vector<128x32xf32>
    %167 = vector.broadcast %1 : vector<1x32xf32> to vector<128x32xf32>
    %168 = arith.mulf %159, %167 : vector<128x32xf32>
    %169 = arith.mulf %166, %168 : vector<128x32xf32>
    %170 = vector.broadcast %2 : vector<1x32xf32> to vector<128x32xf32>
    %171 = arith.subf %170, %169 : vector<128x32xf32>
    %172 = arith.mulf %122, %168 : vector<128x32xf32>
    %173 = arith.addf %172, %171 : vector<128x32xf32>
    %174 = vector.shape_cast %173 : vector<128x32xf32> to vector<16x256xf32>
    %c0_45 = arith.constant 0 : index
    %c0_46 = arith.constant 0 : index
    %c0_47 = arith.constant 0 : index
    %175 = vector.load %arg7[%c0_45, %c0_46, %c0_47] : memref<16x2x256xf32, #tpu.memory_space<vmem>>, vector<16x1x256xf32>
    %176 = vector.shape_cast %175 : vector<16x1x256xf32> to vector<16x256xf32>
    %177 = vector.shape_cast %174 : vector<16x256xf32> to vector<16x1x256xf32>
    tpu.vector_store %arg7[%c0_45, %c0_46, %c0_47], %177 {strides = array<i32>} : memref<16x2x256xf32, #tpu.memory_space<vmem>>, vector<16x1x256xf32>,
    %178 = vector.extract_strided_slice %121 {offsets = [0, 32], sizes = [128, 32], strides = [1, 1]} : vector<128x64xf32> to vector<128x32xf32>
    %179 = vector.extract_strided_slice %178 {offsets = [0, 0], sizes = [128, 16], strides = [1, 1]} : vector<128x32xf32> to vector<128x16xf32>
    %180 = vector.extract_strided_slice %178 {offsets = [0, 16], sizes = [128, 16], strides = [1, 1]} : vector<128x32xf32> to vector<128x16xf32>
    %cst_48 = arith.constant dense<0.000000e+00> : vector<128xf32>
    %181 = vector.multi_reduction <add>, %179, %cst_48 [1] : vector<128x16xf32> to vector<128xf32>
    %182 = vector.shape_cast %181 : vector<128xf32> to vector<128x1xf32>
    %cst_49 = arith.constant 1.600000e+01 : f32
    %183 = vector.broadcast %cst_49 : f32 to vector<128x1xf32>
    %184 = arith.divf %182, %183 : vector<128x1xf32>
    %185 = vector.broadcast %184 : vector<128x1xf32> to vector<128x16xf32>
    %186 = arith.subf %179, %185 : vector<128x16xf32>
    %187 = arith.mulf %186, %186 : vector<128x16xf32>
    %cst_50 = arith.constant dense<0.000000e+00> : vector<128xf32>
    %188 = vector.multi_reduction <add>, %187, %cst_50 [1] : vector<128x16xf32> to vector<128xf32>
    %189 = vector.shape_cast %188 : vector<128xf32> to vector<128x1xf32>
    %cst_51 = arith.constant 1.600000e+01 : f32
    %190 = vector.broadcast %cst_51 : f32 to vector<128x1xf32>
    %191 = arith.divf %189, %190 : vector<128x1xf32>
    %cst_52 = arith.constant 9.99999974E-6 : f32
    %192 = vector.broadcast %cst_52 : f32 to vector<128x1xf32>
    %193 = arith.addf %191, %192 : vector<128x1xf32>
    %194 = math.rsqrt %193 : vector<128x1xf32>
    %cst_53 = arith.constant dense<0.000000e+00> : vector<128xf32>
    %195 = vector.multi_reduction <add>, %180, %cst_53 [1] : vector<128x16xf32> to vector<128xf32>
    %196 = vector.shape_cast %195 : vector<128xf32> to vector<128x1xf32>
    %cst_54 = arith.constant 1.600000e+01 : f32
    %197 = vector.broadcast %cst_54 : f32 to vector<128x1xf32>
    %198 = arith.divf %196, %197 : vector<128x1xf32>
    %199 = vector.broadcast %198 : vector<128x1xf32> to vector<128x16xf32>
    %200 = arith.subf %180, %199 : vector<128x16xf32>
    %201 = arith.mulf %200, %200 : vector<128x16xf32>
    %cst_55 = arith.constant dense<0.000000e+00> : vector<128xf32>
    %202 = vector.multi_reduction <add>, %201, %cst_55 [1] : vector<128x16xf32> to vector<128xf32>
    %203 = vector.shape_cast %202 : vector<128xf32> to vector<128x1xf32>
    %cst_56 = arith.constant 1.600000e+01 : f32
    %204 = vector.broadcast %cst_56 : f32 to vector<128x1xf32>
    %205 = arith.divf %203, %204 : vector<128x1xf32>
    %cst_57 = arith.constant 9.99999974E-6 : f32
    %206 = vector.broadcast %cst_57 : f32 to vector<128x1xf32>
    %207 = arith.addf %205, %206 : vector<128x1xf32>
    %208 = math.rsqrt %207 : vector<128x1xf32>
    %209 = vector.shape_cast %5 : vector<1x32xi1> to vector<1x32xi1>
    %210 = vector.broadcast %209 : vector<1x32xi1> to vector<128x32xi1>
    %211 = vector.shape_cast %208 : vector<128x1xf32> to vector<128x1xf32>
    %212 = vector.broadcast %211 : vector<128x1xf32> to vector<128x32xf32>
    %213 = vector.shape_cast %194 : vector<128x1xf32> to vector<128x1xf32>
    %214 = vector.broadcast %213 : vector<128x1xf32> to vector<128x32xf32>
    %215 = arith.select %210, %212, %214 : vector<128x32xi1>, vector<128x32xf32>
    %216 = vector.shape_cast %5 : vector<1x32xi1> to vector<1x32xi1>
    %217 = vector.broadcast %216 : vector<1x32xi1> to vector<128x32xi1>
    %218 = vector.shape_cast %198 : vector<128x1xf32> to vector<128x1xf32>
    %219 = vector.broadcast %218 : vector<128x1xf32> to vector<128x32xf32>
    %220 = vector.shape_cast %184 : vector<128x1xf32> to vector<128x1xf32>
    %221 = vector.broadcast %220 : vector<128x1xf32> to vector<128x32xf32>
    %222 = arith.select %217, %219, %221 : vector<128x32xi1>, vector<128x32xf32>
    %223 = vector.broadcast %1 : vector<1x32xf32> to vector<128x32xf32>
    %224 = arith.mulf %215, %223 : vector<128x32xf32>
    %225 = arith.mulf %222, %224 : vector<128x32xf32>
    %226 = vector.broadcast %2 : vector<1x32xf32> to vector<128x32xf32>
    %227 = arith.subf %226, %225 : vector<128x32xf32>
    %228 = arith.mulf %178, %224 : vector<128x32xf32>
    %229 = arith.addf %228, %227 : vector<128x32xf32>
    %230 = vector.shape_cast %229 : vector<128x32xf32> to vector<16x256xf32>
    %c0_58 = arith.constant 0 : index
    %c1_59 = arith.constant 1 : index
    %c0_60 = arith.constant 0 : index
    %231 = vector.load %arg7[%c0_58, %c1_59, %c0_60] : memref<16x2x256xf32, #tpu.memory_space<vmem>>, vector<16x1x256xf32>
    %232 = vector.shape_cast %231 : vector<16x1x256xf32> to vector<16x256xf32>
    %233 = vector.shape_cast %230 : vector<16x256xf32> to vector<16x1x256xf32>
    tpu.vector_store %arg7[%c0_58, %c1_59, %c0_60], %233 {strides = array<i32>} : memref<16x2x256xf32, #tpu.memory_space<vmem>>, vector<16x1x256xf32>,
    return
  }
  func.func @transform_0(%arg0: i32) -> (i32, i32) {
    %c0_i32 = arith.constant 0 : i32
    %c0_i32_0 = arith.constant 0 : i32
    return %arg0, %c0_i32 : i32, i32
  }
  func.func @transform_1(%arg0: i32) -> (i32, i32) {
    %c0_i32 = arith.constant 0 : i32
    %c0_i32_0 = arith.constant 0 : i32
    return %arg0, %c0_i32 : i32, i32
  }
  func.func @transform_2(%arg0: i32) -> (i32, i32) {
    %c0_i32 = arith.constant 0 : i32
    %c0_i32_0 = arith.constant 0 : i32
    %c0_i32_1 = arith.constant 0 : i32
    return %c0_i32, %c0_i32_0 : i32, i32
  }
  func.func @transform_3(%arg0: i32) -> (i32, i32) {
    %c0_i32 = arith.constant 0 : i32
    %c0_i32_0 = arith.constant 0 : i32
    %c0_i32_1 = arith.constant 0 : i32
    return %c0_i32, %c0_i32_0 : i32, i32
  }
  func.func @transform_4(%arg0: i32) -> (i32, i32) {
    %c0_i32 = arith.constant 0 : i32
    %c0_i32_0 = arith.constant 0 : i32
    %c0_i32_1 = arith.constant 0 : i32
    return %c0_i32, %c0_i32_0 : i32, i32
  }
  func.func @transform_5(%arg0: i32) -> (i32, i32, i32) {
    %c0_i32 = arith.constant 0 : i32
    %c0_i32_0 = arith.constant 0 : i32
    %c0_i32_1 = arith.constant 0 : i32
    return %arg0, %c0_i32, %c0_i32_0 : i32, i32, i32
  }
  func.func @transform_6(%arg0: i32) -> (i32, i32, i32) {
    %c0_i32 = arith.constant 0 : i32
    %c0_i32_0 = arith.constant 0 : i32
    %c0_i32_1 = arith.constant 0 : i32
    return %arg0, %c0_i32, %c0_i32_0 : i32, i32, i32
  }
}

module attributes {stable_mosaic.version = 11 : i64} {
  func.func @_expand_ln_rearrange_kernel(%arg0: i32, %arg1: memref<128x32xf32, #tpu.memory_space<vmem>>, %arg2: memref<128x32xf32, #tpu.memory_space<vmem>>, %arg3: memref<32x64xf32, #tpu.memory_space<vmem>>, %arg4: memref<1x32xf32, #tpu.memory_space<vmem>>, %arg5: memref<1x32xf32, #tpu.memory_space<vmem>>, %arg6: memref<16x2x8x32xf32, #tpu.memory_space<vmem>>, %arg7: memref<16x2x8x32xf32, #tpu.memory_space<vmem>>) attributes {dimension_semantics = [#tpu.dimension_semantics<parallel>], iteration_bounds = array<i64: 1>, scalar_prefetch = 0 : i64, scratch_operands = 0 : i64, tpu.core_type = #tpu.core_type<tc>, window_params = [{transform_indices = @transform_0, window_bounds = array<i64: 128, 32>}, {transform_indices = @transform_1, window_bounds = array<i64: 128, 32>}, {pipeline_mode = #tpu.pipeline_mode<synchronous>, transform_indices = @transform_2, window_bounds = array<i64: 32, 64>}, {pipeline_mode = #tpu.pipeline_mode<synchronous>, transform_indices = @transform_3, window_bounds = array<i64: 1, 32>}, {pipeline_mode = #tpu.pipeline_mode<synchronous>, transform_indices = @transform_4, window_bounds = array<i64: 1, 32>}, {transform_indices = @transform_5, window_bounds = array<i64: 16, 2, 8, 32>}, {transform_indices = @transform_6, window_bounds = array<i64: 16, 2, 8, 32>}]} {
    %c0 = arith.constant 0 : index
    %c0_0 = arith.constant 0 : index
    %0 = vector.load %arg3[%c0, %c0_0] : memref<32x64xf32, #tpu.memory_space<vmem>>, vector<32x64xf32>
    %c0_1 = arith.constant 0 : index
    %c0_2 = arith.constant 0 : index
    %1 = vector.load %arg4[%c0_1, %c0_2] : memref<1x32xf32, #tpu.memory_space<vmem>>, vector<1x32xf32>
    %c0_3 = arith.constant 0 : index
    %c0_4 = arith.constant 0 : index
    %2 = vector.load %arg5[%c0_3, %c0_4] : memref<1x32xf32, #tpu.memory_space<vmem>>, vector<1x32xf32>
    %3 = tpu.iota {dimensions = array<i32: 1>} : vector<1x32xi32>
    %c16_i32 = arith.constant 16 : i32
    %4 = vector.broadcast %c16_i32 : i32 to vector<1x32xi32>
    %5 = arith.cmpi sge, %3, %4 : vector<1x32xi32>
    %c0_5 = arith.constant 0 : index
    %c0_6 = arith.constant 0 : index
    %6 = vector.load %arg1[%c0_5, %c0_6] : memref<128x32xf32, #tpu.memory_space<vmem>>, vector<128x32xf32>
    %cst = arith.constant dense<0.000000e+00> : vector<128x64xf32>
    %7 = tpu.matmul %6, %0, %cst {dimension_numbers = #tpu.dot_dimension_numbers<[1], [0], [0], [1], [0, 0, 1, 1], [], []>} : vector<128x32xf32>, vector<32x64xf32>, vector<128x64xf32> -> vector<128x64xf32>
    %8 = vector.extract_strided_slice %7 {offsets = [0, 0], sizes = [128, 32], strides = [1, 1]} : vector<128x64xf32> to vector<128x32xf32>
    %9 = vector.extract_strided_slice %8 {offsets = [0, 0], sizes = [128, 16], strides = [1, 1]} : vector<128x32xf32> to vector<128x16xf32>
    %10 = vector.extract_strided_slice %8 {offsets = [0, 16], sizes = [128, 16], strides = [1, 1]} : vector<128x32xf32> to vector<128x16xf32>
    %cst_7 = arith.constant dense<0.000000e+00> : vector<128xf32>
    %11 = vector.multi_reduction <add>, %9, %cst_7 [1] : vector<128x16xf32> to vector<128xf32>
    %12 = vector.shape_cast %11 : vector<128xf32> to vector<128x1xf32>
    %cst_8 = arith.constant 1.600000e+01 : f32
    %13 = vector.broadcast %cst_8 : f32 to vector<128x1xf32>
    %14 = arith.divf %12, %13 : vector<128x1xf32>
    %15 = vector.broadcast %14 : vector<128x1xf32> to vector<128x16xf32>
    %16 = arith.subf %9, %15 : vector<128x16xf32>
    %17 = arith.mulf %16, %16 : vector<128x16xf32>
    %cst_9 = arith.constant dense<0.000000e+00> : vector<128xf32>
    %18 = vector.multi_reduction <add>, %17, %cst_9 [1] : vector<128x16xf32> to vector<128xf32>
    %19 = vector.shape_cast %18 : vector<128xf32> to vector<128x1xf32>
    %cst_10 = arith.constant 1.600000e+01 : f32
    %20 = vector.broadcast %cst_10 : f32 to vector<128x1xf32>
    %21 = arith.divf %19, %20 : vector<128x1xf32>
    %cst_11 = arith.constant 9.99999974E-6 : f32
    %22 = vector.broadcast %cst_11 : f32 to vector<128x1xf32>
    %23 = arith.addf %21, %22 : vector<128x1xf32>
    %24 = math.rsqrt %23 : vector<128x1xf32>
    %cst_12 = arith.constant dense<0.000000e+00> : vector<128xf32>
    %25 = vector.multi_reduction <add>, %10, %cst_12 [1] : vector<128x16xf32> to vector<128xf32>
    %26 = vector.shape_cast %25 : vector<128xf32> to vector<128x1xf32>
    %cst_13 = arith.constant 1.600000e+01 : f32
    %27 = vector.broadcast %cst_13 : f32 to vector<128x1xf32>
    %28 = arith.divf %26, %27 : vector<128x1xf32>
    %29 = vector.broadcast %28 : vector<128x1xf32> to vector<128x16xf32>
    %30 = arith.subf %10, %29 : vector<128x16xf32>
    %31 = arith.mulf %30, %30 : vector<128x16xf32>
    %cst_14 = arith.constant dense<0.000000e+00> : vector<128xf32>
    %32 = vector.multi_reduction <add>, %31, %cst_14 [1] : vector<128x16xf32> to vector<128xf32>
    %33 = vector.shape_cast %32 : vector<128xf32> to vector<128x1xf32>
    %cst_15 = arith.constant 1.600000e+01 : f32
    %34 = vector.broadcast %cst_15 : f32 to vector<128x1xf32>
    %35 = arith.divf %33, %34 : vector<128x1xf32>
    %cst_16 = arith.constant 9.99999974E-6 : f32
    %36 = vector.broadcast %cst_16 : f32 to vector<128x1xf32>
    %37 = arith.addf %35, %36 : vector<128x1xf32>
    %38 = math.rsqrt %37 : vector<128x1xf32>
    %39 = vector.shape_cast %5 : vector<1x32xi1> to vector<1x32xi1>
    %40 = vector.broadcast %39 : vector<1x32xi1> to vector<128x32xi1>
    %41 = vector.shape_cast %38 : vector<128x1xf32> to vector<128x1xf32>
    %42 = vector.broadcast %41 : vector<128x1xf32> to vector<128x32xf32>
    %43 = vector.shape_cast %24 : vector<128x1xf32> to vector<128x1xf32>
    %44 = vector.broadcast %43 : vector<128x1xf32> to vector<128x32xf32>
    %45 = arith.select %40, %42, %44 : vector<128x32xi1>, vector<128x32xf32>
    %46 = vector.shape_cast %5 : vector<1x32xi1> to vector<1x32xi1>
    %47 = vector.broadcast %46 : vector<1x32xi1> to vector<128x32xi1>
    %48 = vector.shape_cast %28 : vector<128x1xf32> to vector<128x1xf32>
    %49 = vector.broadcast %48 : vector<128x1xf32> to vector<128x32xf32>
    %50 = vector.shape_cast %14 : vector<128x1xf32> to vector<128x1xf32>
    %51 = vector.broadcast %50 : vector<128x1xf32> to vector<128x32xf32>
    %52 = arith.select %47, %49, %51 : vector<128x32xi1>, vector<128x32xf32>
    %53 = vector.broadcast %1 : vector<1x32xf32> to vector<128x32xf32>
    %54 = arith.mulf %45, %53 : vector<128x32xf32>
    %55 = arith.mulf %52, %54 : vector<128x32xf32>
    %56 = vector.broadcast %2 : vector<1x32xf32> to vector<128x32xf32>
    %57 = arith.subf %56, %55 : vector<128x32xf32>
    %58 = arith.mulf %8, %54 : vector<128x32xf32>
    %59 = arith.addf %58, %57 : vector<128x32xf32>
    %60 = vector.shape_cast %59 : vector<128x32xf32> to vector<16x8x32xf32>
    %c0_17 = arith.constant 0 : index
    %c0_18 = arith.constant 0 : index
    %c0_19 = arith.constant 0 : index
    %c0_20 = arith.constant 0 : index
    %61 = vector.load %arg6[%c0_17, %c0_18, %c0_19, %c0_20] : memref<16x2x8x32xf32, #tpu.memory_space<vmem>>, vector<16x1x8x32xf32>
    %62 = vector.shape_cast %61 : vector<16x1x8x32xf32> to vector<16x8x32xf32>
    %63 = vector.shape_cast %60 : vector<16x8x32xf32> to vector<16x1x8x32xf32>
    tpu.vector_store %arg6[%c0_17, %c0_18, %c0_19, %c0_20], %63 {strides = array<i32>} : memref<16x2x8x32xf32, #tpu.memory_space<vmem>>, vector<16x1x8x32xf32>,
    %64 = vector.extract_strided_slice %7 {offsets = [0, 32], sizes = [128, 32], strides = [1, 1]} : vector<128x64xf32> to vector<128x32xf32>
    %65 = vector.extract_strided_slice %64 {offsets = [0, 0], sizes = [128, 16], strides = [1, 1]} : vector<128x32xf32> to vector<128x16xf32>
    %66 = vector.extract_strided_slice %64 {offsets = [0, 16], sizes = [128, 16], strides = [1, 1]} : vector<128x32xf32> to vector<128x16xf32>
    %cst_21 = arith.constant dense<0.000000e+00> : vector<128xf32>
    %67 = vector.multi_reduction <add>, %65, %cst_21 [1] : vector<128x16xf32> to vector<128xf32>
    %68 = vector.shape_cast %67 : vector<128xf32> to vector<128x1xf32>
    %cst_22 = arith.constant 1.600000e+01 : f32
    %69 = vector.broadcast %cst_22 : f32 to vector<128x1xf32>
    %70 = arith.divf %68, %69 : vector<128x1xf32>
    %71 = vector.broadcast %70 : vector<128x1xf32> to vector<128x16xf32>
    %72 = arith.subf %65, %71 : vector<128x16xf32>
    %73 = arith.mulf %72, %72 : vector<128x16xf32>
    %cst_23 = arith.constant dense<0.000000e+00> : vector<128xf32>
    %74 = vector.multi_reduction <add>, %73, %cst_23 [1] : vector<128x16xf32> to vector<128xf32>
    %75 = vector.shape_cast %74 : vector<128xf32> to vector<128x1xf32>
    %cst_24 = arith.constant 1.600000e+01 : f32
    %76 = vector.broadcast %cst_24 : f32 to vector<128x1xf32>
    %77 = arith.divf %75, %76 : vector<128x1xf32>
    %cst_25 = arith.constant 9.99999974E-6 : f32
    %78 = vector.broadcast %cst_25 : f32 to vector<128x1xf32>
    %79 = arith.addf %77, %78 : vector<128x1xf32>
    %80 = math.rsqrt %79 : vector<128x1xf32>
    %cst_26 = arith.constant dense<0.000000e+00> : vector<128xf32>
    %81 = vector.multi_reduction <add>, %66, %cst_26 [1] : vector<128x16xf32> to vector<128xf32>
    %82 = vector.shape_cast %81 : vector<128xf32> to vector<128x1xf32>
    %cst_27 = arith.constant 1.600000e+01 : f32
    %83 = vector.broadcast %cst_27 : f32 to vector<128x1xf32>
    %84 = arith.divf %82, %83 : vector<128x1xf32>
    %85 = vector.broadcast %84 : vector<128x1xf32> to vector<128x16xf32>
    %86 = arith.subf %66, %85 : vector<128x16xf32>
    %87 = arith.mulf %86, %86 : vector<128x16xf32>
    %cst_28 = arith.constant dense<0.000000e+00> : vector<128xf32>
    %88 = vector.multi_reduction <add>, %87, %cst_28 [1] : vector<128x16xf32> to vector<128xf32>
    %89 = vector.shape_cast %88 : vector<128xf32> to vector<128x1xf32>
    %cst_29 = arith.constant 1.600000e+01 : f32
    %90 = vector.broadcast %cst_29 : f32 to vector<128x1xf32>
    %91 = arith.divf %89, %90 : vector<128x1xf32>
    %cst_30 = arith.constant 9.99999974E-6 : f32
    %92 = vector.broadcast %cst_30 : f32 to vector<128x1xf32>
    %93 = arith.addf %91, %92 : vector<128x1xf32>
    %94 = math.rsqrt %93 : vector<128x1xf32>
    %95 = vector.shape_cast %5 : vector<1x32xi1> to vector<1x32xi1>
    %96 = vector.broadcast %95 : vector<1x32xi1> to vector<128x32xi1>
    %97 = vector.shape_cast %94 : vector<128x1xf32> to vector<128x1xf32>
    %98 = vector.broadcast %97 : vector<128x1xf32> to vector<128x32xf32>
    %99 = vector.shape_cast %80 : vector<128x1xf32> to vector<128x1xf32>
    %100 = vector.broadcast %99 : vector<128x1xf32> to vector<128x32xf32>
    %101 = arith.select %96, %98, %100 : vector<128x32xi1>, vector<128x32xf32>
    %102 = vector.shape_cast %5 : vector<1x32xi1> to vector<1x32xi1>
    %103 = vector.broadcast %102 : vector<1x32xi1> to vector<128x32xi1>
    %104 = vector.shape_cast %84 : vector<128x1xf32> to vector<128x1xf32>
    %105 = vector.broadcast %104 : vector<128x1xf32> to vector<128x32xf32>
    %106 = vector.shape_cast %70 : vector<128x1xf32> to vector<128x1xf32>
    %107 = vector.broadcast %106 : vector<128x1xf32> to vector<128x32xf32>
    %108 = arith.select %103, %105, %107 : vector<128x32xi1>, vector<128x32xf32>
    %109 = vector.broadcast %1 : vector<1x32xf32> to vector<128x32xf32>
    %110 = arith.mulf %101, %109 : vector<128x32xf32>
    %111 = arith.mulf %108, %110 : vector<128x32xf32>
    %112 = vector.broadcast %2 : vector<1x32xf32> to vector<128x32xf32>
    %113 = arith.subf %112, %111 : vector<128x32xf32>
    %114 = arith.mulf %64, %110 : vector<128x32xf32>
    %115 = arith.addf %114, %113 : vector<128x32xf32>
    %116 = vector.shape_cast %115 : vector<128x32xf32> to vector<16x8x32xf32>
    %c0_31 = arith.constant 0 : index
    %c1 = arith.constant 1 : index
    %c0_32 = arith.constant 0 : index
    %c0_33 = arith.constant 0 : index
    %117 = vector.load %arg6[%c0_31, %c1, %c0_32, %c0_33] : memref<16x2x8x32xf32, #tpu.memory_space<vmem>>, vector<16x1x8x32xf32>
    %118 = vector.shape_cast %117 : vector<16x1x8x32xf32> to vector<16x8x32xf32>
    %119 = vector.shape_cast %116 : vector<16x8x32xf32> to vector<16x1x8x32xf32>
    tpu.vector_store %arg6[%c0_31, %c1, %c0_32, %c0_33], %119 {strides = array<i32>} : memref<16x2x8x32xf32, #tpu.memory_space<vmem>>, vector<16x1x8x32xf32>,
    %c0_34 = arith.constant 0 : index
    %c0_35 = arith.constant 0 : index
    %120 = vector.load %arg2[%c0_34, %c0_35] : memref<128x32xf32, #tpu.memory_space<vmem>>, vector<128x32xf32>
    %cst_36 = arith.constant dense<0.000000e+00> : vector<128x64xf32>
    %121 = tpu.matmul %120, %0, %cst_36 {dimension_numbers = #tpu.dot_dimension_numbers<[1], [0], [0], [1], [0, 0, 1, 1], [], []>} : vector<128x32xf32>, vector<32x64xf32>, vector<128x64xf32> -> vector<128x64xf32>
    %122 = vector.extract_strided_slice %121 {offsets = [0, 0], sizes = [128, 32], strides = [1, 1]} : vector<128x64xf32> to vector<128x32xf32>
    %123 = vector.extract_strided_slice %122 {offsets = [0, 0], sizes = [128, 16], strides = [1, 1]} : vector<128x32xf32> to vector<128x16xf32>
    %124 = vector.extract_strided_slice %122 {offsets = [0, 16], sizes = [128, 16], strides = [1, 1]} : vector<128x32xf32> to vector<128x16xf32>
    %cst_37 = arith.constant dense<0.000000e+00> : vector<128xf32>
    %125 = vector.multi_reduction <add>, %123, %cst_37 [1] : vector<128x16xf32> to vector<128xf32>
    %126 = vector.shape_cast %125 : vector<128xf32> to vector<128x1xf32>
    %cst_38 = arith.constant 1.600000e+01 : f32
    %127 = vector.broadcast %cst_38 : f32 to vector<128x1xf32>
    %128 = arith.divf %126, %127 : vector<128x1xf32>
    %129 = vector.broadcast %128 : vector<128x1xf32> to vector<128x16xf32>
    %130 = arith.subf %123, %129 : vector<128x16xf32>
    %131 = arith.mulf %130, %130 : vector<128x16xf32>
    %cst_39 = arith.constant dense<0.000000e+00> : vector<128xf32>
    %132 = vector.multi_reduction <add>, %131, %cst_39 [1] : vector<128x16xf32> to vector<128xf32>
    %133 = vector.shape_cast %132 : vector<128xf32> to vector<128x1xf32>
    %cst_40 = arith.constant 1.600000e+01 : f32
    %134 = vector.broadcast %cst_40 : f32 to vector<128x1xf32>
    %135 = arith.divf %133, %134 : vector<128x1xf32>
    %cst_41 = arith.constant 9.99999974E-6 : f32
    %136 = vector.broadcast %cst_41 : f32 to vector<128x1xf32>
    %137 = arith.addf %135, %136 : vector<128x1xf32>
    %138 = math.rsqrt %137 : vector<128x1xf32>
    %cst_42 = arith.constant dense<0.000000e+00> : vector<128xf32>
    %139 = vector.multi_reduction <add>, %124, %cst_42 [1] : vector<128x16xf32> to vector<128xf32>
    %140 = vector.shape_cast %139 : vector<128xf32> to vector<128x1xf32>
    %cst_43 = arith.constant 1.600000e+01 : f32
    %141 = vector.broadcast %cst_43 : f32 to vector<128x1xf32>
    %142 = arith.divf %140, %141 : vector<128x1xf32>
    %143 = vector.broadcast %142 : vector<128x1xf32> to vector<128x16xf32>
    %144 = arith.subf %124, %143 : vector<128x16xf32>
    %145 = arith.mulf %144, %144 : vector<128x16xf32>
    %cst_44 = arith.constant dense<0.000000e+00> : vector<128xf32>
    %146 = vector.multi_reduction <add>, %145, %cst_44 [1] : vector<128x16xf32> to vector<128xf32>
    %147 = vector.shape_cast %146 : vector<128xf32> to vector<128x1xf32>
    %cst_45 = arith.constant 1.600000e+01 : f32
    %148 = vector.broadcast %cst_45 : f32 to vector<128x1xf32>
    %149 = arith.divf %147, %148 : vector<128x1xf32>
    %cst_46 = arith.constant 9.99999974E-6 : f32
    %150 = vector.broadcast %cst_46 : f32 to vector<128x1xf32>
    %151 = arith.addf %149, %150 : vector<128x1xf32>
    %152 = math.rsqrt %151 : vector<128x1xf32>
    %153 = vector.shape_cast %5 : vector<1x32xi1> to vector<1x32xi1>
    %154 = vector.broadcast %153 : vector<1x32xi1> to vector<128x32xi1>
    %155 = vector.shape_cast %152 : vector<128x1xf32> to vector<128x1xf32>
    %156 = vector.broadcast %155 : vector<128x1xf32> to vector<128x32xf32>
    %157 = vector.shape_cast %138 : vector<128x1xf32> to vector<128x1xf32>
    %158 = vector.broadcast %157 : vector<128x1xf32> to vector<128x32xf32>
    %159 = arith.select %154, %156, %158 : vector<128x32xi1>, vector<128x32xf32>
    %160 = vector.shape_cast %5 : vector<1x32xi1> to vector<1x32xi1>
    %161 = vector.broadcast %160 : vector<1x32xi1> to vector<128x32xi1>
    %162 = vector.shape_cast %142 : vector<128x1xf32> to vector<128x1xf32>
    %163 = vector.broadcast %162 : vector<128x1xf32> to vector<128x32xf32>
    %164 = vector.shape_cast %128 : vector<128x1xf32> to vector<128x1xf32>
    %165 = vector.broadcast %164 : vector<128x1xf32> to vector<128x32xf32>
    %166 = arith.select %161, %163, %165 : vector<128x32xi1>, vector<128x32xf32>
    %167 = vector.broadcast %1 : vector<1x32xf32> to vector<128x32xf32>
    %168 = arith.mulf %159, %167 : vector<128x32xf32>
    %169 = arith.mulf %166, %168 : vector<128x32xf32>
    %170 = vector.broadcast %2 : vector<1x32xf32> to vector<128x32xf32>
    %171 = arith.subf %170, %169 : vector<128x32xf32>
    %172 = arith.mulf %122, %168 : vector<128x32xf32>
    %173 = arith.addf %172, %171 : vector<128x32xf32>
    %174 = vector.shape_cast %173 : vector<128x32xf32> to vector<16x8x32xf32>
    %c0_47 = arith.constant 0 : index
    %c0_48 = arith.constant 0 : index
    %c0_49 = arith.constant 0 : index
    %c0_50 = arith.constant 0 : index
    %175 = vector.load %arg7[%c0_47, %c0_48, %c0_49, %c0_50] : memref<16x2x8x32xf32, #tpu.memory_space<vmem>>, vector<16x1x8x32xf32>
    %176 = vector.shape_cast %175 : vector<16x1x8x32xf32> to vector<16x8x32xf32>
    %177 = vector.shape_cast %174 : vector<16x8x32xf32> to vector<16x1x8x32xf32>
    tpu.vector_store %arg7[%c0_47, %c0_48, %c0_49, %c0_50], %177 {strides = array<i32>} : memref<16x2x8x32xf32, #tpu.memory_space<vmem>>, vector<16x1x8x32xf32>,
    %178 = vector.extract_strided_slice %121 {offsets = [0, 32], sizes = [128, 32], strides = [1, 1]} : vector<128x64xf32> to vector<128x32xf32>
    %179 = vector.extract_strided_slice %178 {offsets = [0, 0], sizes = [128, 16], strides = [1, 1]} : vector<128x32xf32> to vector<128x16xf32>
    %180 = vector.extract_strided_slice %178 {offsets = [0, 16], sizes = [128, 16], strides = [1, 1]} : vector<128x32xf32> to vector<128x16xf32>
    %cst_51 = arith.constant dense<0.000000e+00> : vector<128xf32>
    %181 = vector.multi_reduction <add>, %179, %cst_51 [1] : vector<128x16xf32> to vector<128xf32>
    %182 = vector.shape_cast %181 : vector<128xf32> to vector<128x1xf32>
    %cst_52 = arith.constant 1.600000e+01 : f32
    %183 = vector.broadcast %cst_52 : f32 to vector<128x1xf32>
    %184 = arith.divf %182, %183 : vector<128x1xf32>
    %185 = vector.broadcast %184 : vector<128x1xf32> to vector<128x16xf32>
    %186 = arith.subf %179, %185 : vector<128x16xf32>
    %187 = arith.mulf %186, %186 : vector<128x16xf32>
    %cst_53 = arith.constant dense<0.000000e+00> : vector<128xf32>
    %188 = vector.multi_reduction <add>, %187, %cst_53 [1] : vector<128x16xf32> to vector<128xf32>
    %189 = vector.shape_cast %188 : vector<128xf32> to vector<128x1xf32>
    %cst_54 = arith.constant 1.600000e+01 : f32
    %190 = vector.broadcast %cst_54 : f32 to vector<128x1xf32>
    %191 = arith.divf %189, %190 : vector<128x1xf32>
    %cst_55 = arith.constant 9.99999974E-6 : f32
    %192 = vector.broadcast %cst_55 : f32 to vector<128x1xf32>
    %193 = arith.addf %191, %192 : vector<128x1xf32>
    %194 = math.rsqrt %193 : vector<128x1xf32>
    %cst_56 = arith.constant dense<0.000000e+00> : vector<128xf32>
    %195 = vector.multi_reduction <add>, %180, %cst_56 [1] : vector<128x16xf32> to vector<128xf32>
    %196 = vector.shape_cast %195 : vector<128xf32> to vector<128x1xf32>
    %cst_57 = arith.constant 1.600000e+01 : f32
    %197 = vector.broadcast %cst_57 : f32 to vector<128x1xf32>
    %198 = arith.divf %196, %197 : vector<128x1xf32>
    %199 = vector.broadcast %198 : vector<128x1xf32> to vector<128x16xf32>
    %200 = arith.subf %180, %199 : vector<128x16xf32>
    %201 = arith.mulf %200, %200 : vector<128x16xf32>
    %cst_58 = arith.constant dense<0.000000e+00> : vector<128xf32>
    %202 = vector.multi_reduction <add>, %201, %cst_58 [1] : vector<128x16xf32> to vector<128xf32>
    %203 = vector.shape_cast %202 : vector<128xf32> to vector<128x1xf32>
    %cst_59 = arith.constant 1.600000e+01 : f32
    %204 = vector.broadcast %cst_59 : f32 to vector<128x1xf32>
    %205 = arith.divf %203, %204 : vector<128x1xf32>
    %cst_60 = arith.constant 9.99999974E-6 : f32
    %206 = vector.broadcast %cst_60 : f32 to vector<128x1xf32>
    %207 = arith.addf %205, %206 : vector<128x1xf32>
    %208 = math.rsqrt %207 : vector<128x1xf32>
    %209 = vector.shape_cast %5 : vector<1x32xi1> to vector<1x32xi1>
    %210 = vector.broadcast %209 : vector<1x32xi1> to vector<128x32xi1>
    %211 = vector.shape_cast %208 : vector<128x1xf32> to vector<128x1xf32>
    %212 = vector.broadcast %211 : vector<128x1xf32> to vector<128x32xf32>
    %213 = vector.shape_cast %194 : vector<128x1xf32> to vector<128x1xf32>
    %214 = vector.broadcast %213 : vector<128x1xf32> to vector<128x32xf32>
    %215 = arith.select %210, %212, %214 : vector<128x32xi1>, vector<128x32xf32>
    %216 = vector.shape_cast %5 : vector<1x32xi1> to vector<1x32xi1>
    %217 = vector.broadcast %216 : vector<1x32xi1> to vector<128x32xi1>
    %218 = vector.shape_cast %198 : vector<128x1xf32> to vector<128x1xf32>
    %219 = vector.broadcast %218 : vector<128x1xf32> to vector<128x32xf32>
    %220 = vector.shape_cast %184 : vector<128x1xf32> to vector<128x1xf32>
    %221 = vector.broadcast %220 : vector<128x1xf32> to vector<128x32xf32>
    %222 = arith.select %217, %219, %221 : vector<128x32xi1>, vector<128x32xf32>
    %223 = vector.broadcast %1 : vector<1x32xf32> to vector<128x32xf32>
    %224 = arith.mulf %215, %223 : vector<128x32xf32>
    %225 = arith.mulf %222, %224 : vector<128x32xf32>
    %226 = vector.broadcast %2 : vector<1x32xf32> to vector<128x32xf32>
    %227 = arith.subf %226, %225 : vector<128x32xf32>
    %228 = arith.mulf %178, %224 : vector<128x32xf32>
    %229 = arith.addf %228, %227 : vector<128x32xf32>
    %230 = vector.shape_cast %229 : vector<128x32xf32> to vector<16x8x32xf32>
    %c0_61 = arith.constant 0 : index
    %c1_62 = arith.constant 1 : index
    %c0_63 = arith.constant 0 : index
    %c0_64 = arith.constant 0 : index
    %231 = vector.load %arg7[%c0_61, %c1_62, %c0_63, %c0_64] : memref<16x2x8x32xf32, #tpu.memory_space<vmem>>, vector<16x1x8x32xf32>
    %232 = vector.shape_cast %231 : vector<16x1x8x32xf32> to vector<16x8x32xf32>
    %233 = vector.shape_cast %230 : vector<16x8x32xf32> to vector<16x1x8x32xf32>
    tpu.vector_store %arg7[%c0_61, %c1_62, %c0_63, %c0_64], %233 {strides = array<i32>} : memref<16x2x8x32xf32, #tpu.memory_space<vmem>>, vector<16x1x8x32xf32>,
    return
  }
  func.func @transform_0(%arg0: i32) -> (i32, i32) {
    %c0_i32 = arith.constant 0 : i32
    %c0_i32_0 = arith.constant 0 : i32
    return %arg0, %c0_i32 : i32, i32
  }
  func.func @transform_1(%arg0: i32) -> (i32, i32) {
    %c0_i32 = arith.constant 0 : i32
    %c0_i32_0 = arith.constant 0 : i32
    return %arg0, %c0_i32 : i32, i32
  }
  func.func @transform_2(%arg0: i32) -> (i32, i32) {
    %c0_i32 = arith.constant 0 : i32
    %c0_i32_0 = arith.constant 0 : i32
    %c0_i32_1 = arith.constant 0 : i32
    return %c0_i32, %c0_i32_0 : i32, i32
  }
  func.func @transform_3(%arg0: i32) -> (i32, i32) {
    %c0_i32 = arith.constant 0 : i32
    %c0_i32_0 = arith.constant 0 : i32
    %c0_i32_1 = arith.constant 0 : i32
    return %c0_i32, %c0_i32_0 : i32, i32
  }
  func.func @transform_4(%arg0: i32) -> (i32, i32) {
    %c0_i32 = arith.constant 0 : i32
    %c0_i32_0 = arith.constant 0 : i32
    %c0_i32_1 = arith.constant 0 : i32
    return %c0_i32, %c0_i32_0 : i32, i32
  }
  func.func @transform_5(%arg0: i32) -> (i32, i32, i32, i32) {
    %c0_i32 = arith.constant 0 : i32
    %c0_i32_0 = arith.constant 0 : i32
    %c0_i32_1 = arith.constant 0 : i32
    %c0_i32_2 = arith.constant 0 : i32
    return %arg0, %c0_i32, %c0_i32_0, %c0_i32_1 : i32, i32, i32, i32
  }
  func.func @transform_6(%arg0: i32) -> (i32, i32, i32, i32) {
    %c0_i32 = arith.constant 0 : i32
    %c0_i32_0 = arith.constant 0 : i32
    %c0_i32_1 = arith.constant 0 : i32
    %c0_i32_2 = arith.constant 0 : i32
    return %arg0, %c0_i32, %c0_i32_0, %c0_i32_1 : i32, i32, i32, i32
  }
}

</mosaic_0001>

<bundles_post_ra>
// kernel: cross_patch_expand.1
= control target key start
LH: loop header
LB: loop body
LE: loop exit
PB: predicated region body
PF: predicated region fallthrough
CT: control target
= control target key end

     0   :  { %vm47_vm0 = vcmask 261120   ;;  %vm241_vm1 = vcmask 130048   ;;  %s4064_s8 = smov 112   ;;  %s4066_s9 = smov 80   ;;  %s6754_s2 = inlined_call_operand.vmem [shape: f32[32,64], index: 2, kind: input, shape index: {}]   ;;  %s6755_s0 = inlined_call_operand.vmem [shape: f32[128,32], index: 0, kind: input, shape index: {}]   ;;  %s6756_s3 = inlined_call_operand.vmem [shape: f32[1,32], index: 3, kind: input, shape index: {}]   ;;  %s6757_s4 = inlined_call_operand.vmem [shape: f32[1,32], index: 4, kind: input, shape index: {}]   ;;  %s6758_s5 = inlined_call_operand.vmem [shape: f32[16,2,8,32], index: 5, kind: output, shape index: {0}]   ;;  %s6759_s1 = inlined_call_operand.vmem [shape: f32[128,32], index: 1, kind: input, shape index: {}]   ;;  %s6760_s6 = inlined_call_operand.vmem [shape: f32[16,2,8,32], index: 6, kind: output, shape index: {1}]  }
   0x1   :  { %v22_v0 = vld [vmem:[%s6754_s2] sm:$0xff]  ;;  %v23_v1 = vld [vmem:[%s6754_s2 + $0x8] sm:$0xff]  ;;  %v24_v2 = vld [vmem:[%s6754_s2 + $0x10] sm:$0xff]  ;;  %s4067_s11 = smov 32  }
   0x2   :  { %v3782_v3 = vpack.c.bf16 %v23_v1, %v22_v0  ;;  %v25_v4 = vld [vmem:[%s6754_s2 + $0x18] sm:$0xff]  ;;  %v31_v5 = vld [vmem:[%s6755_s0] sm:$0xff]  ;;  %v32_v7 = vld [vmem:[%s6755_s0 + $0x8] sm:$0xff]  ;;  %s4065_s2 = smov 96  }
   0x3   :  { %v3786_v6 = vpack.c.bf16 %v25_v4, %v24_v2  ;;  %3726 = vmatprep.mubr.msk.f32.mxu0 %vm47_vm0, %v31_v5  ;;  %v33_v8 = vld [vmem:[%s6755_s0 + $0x10] sm:$0xff]  ;;  %v34_v9 = vld [vmem:[%s6755_s0 + $0x18] sm:$0xff]  ;;  %v35_v10 = vld [vmem:[%s6755_s0 + $0x20] sm:$0xff] }
   0x4   :  { %3783 = vmatprep.subr.bf16.mxu0 %v3782_v3  ;;  %3791 = vmatprep.subr.bf16.mxu1 %v3782_v3  ;;  %v36_v11 = vld [vmem:[%s6755_s0 + $0x28] sm:$0xff]  ;;  %v37_v12 = vld [vmem:[%s6755_s0 + $0x30] sm:$0xff]  ;;  %v38_v13 = vld [vmem:[%s6755_s0 + $0x38] sm:$0xff] }
   0x5   :  { %3785 = vmatpush3.bf16.msra.mxu0 %v3782_v3  ;;  %3793 = vmatpush3.bf16.msra.mxu1 %v3782_v3  ;;  %v39_v14 = vld [vmem:[%s6755_s0 + $0x40] sm:$0xff]  ;;  %v40_v15 = vld [vmem:[%s6755_s0 + $0x48] sm:$0xff]  ;;  %v41_v16 = vld [vmem:[%s6755_s0 + $0x50] sm:$0xff] }
   0x6   :  { %3787 = vmatprep.subr.bf16.mxu0 %v3786_v6  ;;  %3795 = vmatprep.subr.bf16.mxu1 %v3786_v6  ;;  %v42_v17 = vld [vmem:[%s6755_s0 + $0x58] sm:$0xff]  ;;  %v43_v18 = vld [vmem:[%s6755_s0 + $0x60] sm:$0xff]  ;;  %v44_v19 = vld [vmem:[%s6755_s0 + $0x68] sm:$0xff] }
   0x7   :  { %v45_v29 = vld [vmem:[%s6755_s0 + $0x70] sm:$0xff]  ;;  %v46_v30 = vld [vmem:[%s6755_s0 + $0x78] sm:$0xff] }
   0x9   :  { %3789 = vmatpush3.bf16.msra.mxu0 %v3786_v6  ;;  %3797 = vmatpush3.bf16.msra.mxu1 %v3786_v6 }
   0xc   :  { %3727 = vmatmul.mubr.msk.f32.vlgmr.msra.gmra.mrb[0].mxu0 %vm47_vm0, %v32_v7 }
   0xd   :  { %3729 = vmatprep.mubr.msk.f32.mxu0 %vm47_vm0, %v33_v8 }
  0x10   :  { %3730 = vmatmul.mubr.msk.f32.gmra.mrb[2].mxu0 %vm47_vm0, %v34_v9 }
  0x11   :  { %3732 = vmatprep.mubr.msk.f32.mxu0 %vm47_vm0, %v35_v10 }
  0x14   :  { %3733 = vmatmul.mubr.msk.f32.gmra.mrb[4].mxu0 %vm47_vm0, %v36_v11 }
  0x15   :  { %3735 = vmatprep.mubr.msk.f32.mxu0 %vm47_vm0, %v37_v12 }
  0x18   :  { %3736 = vmatmul.mubr.msk.f32.gmra.mrb[6].mxu0 %vm47_vm0, %v38_v13 }
  0x19   :  { %3738 = vmatprep.mubr.msk.f32.mxu0 %vm47_vm0, %v39_v14 }
  0x1c   :  { %3739 = vmatmul.mubr.msk.f32.gmra.mrb[8].mxu0 %vm47_vm0, %v40_v15 }
  0x1d   :  { %3741 = vmatprep.mubr.msk.f32.mxu0 %vm47_vm0, %v41_v16 }
  0x20   :  { %3742 = vmatmul.mubr.msk.f32.gmra.mrb[10].mxu0 %vm47_vm0, %v42_v17 }
  0x21   :  { %3744 = vmatprep.mubr.msk.f32.mxu0 %vm47_vm0, %v43_v18 }
  0x24   :  { %3745 = vmatmul.mubr.msk.f32.gmra.mrb[12].mxu0 %vm47_vm0, %v44_v19 }
  0x25   :  { %3747 = vmatprep.mubr.msk.f32.mxu0 %vm47_vm0, %v45_v29 }
  0x28   :  { %3748 = vmatmul.mubr.msk.f32.gmra.mrb[14].mxu0 %vm47_vm0, %v46_v30 }
  0xdf   :  { %v4171_v20 = vpop.f32.mrb[0].mxu0 }
  0xe0   :  { %453 = vrot.lane.b32.xlu1 %v4171_v20, %s4064_s8  ;;  %v4175_v21 = vpop.f32.mrb[1].mxu0  ;;  %v245_v22 = vsel %vm241_vm1, %v4171_v20, 0.0 }
  0xe1   :  { %246 = vadd.xlane.f32.xlu0 %v245_v22  ;;  %v242_v32 = vsel %vm241_vm1, %v4175_v21, 0.0 }
  0xe3   :  { %v4179_v23 = vpop.f32.mrb[2].mxu0 }
  0xe4   :  { %899 = vrot.lane.b32.xlu1 %v4171_v20, %s4065_s2  ;;  %v4183_v24 = vpop.f32.mrb[3].mxu0  ;;  %v251_v31 = vsel %vm241_vm1, %v4179_v23, 0.0 }
  0xe5   :  { %v248_v35 = vsel %vm241_vm1, %v4183_v24, 0.0 }
  0xe7   :  { %v4185_v25 = vpop.f32.mrb[4].mxu0 }
  0xe8   :  { %1203 = vrot.lane.b32.xlu1 %v4171_v20, %s4066_s9  ;;  %v4189_v26 = vpop.f32.mrb[5].mxu0  ;;  %v257_v39 = vsel %vm241_vm1, %v4185_v25, 0.0 }
  0xe9   :  { %6829 = vst [vmem:[#allocation2_spill] sm:$0xff] %v4189_v26  ;;  %v254_v36 = vsel %vm241_vm1, %v4189_v26, 0.0 }
  0xeb   :  { %v4193_v27 = vpop.f32.mrb[6].mxu0 }
  0xec   :  { %457 = vrot.lane.b32.xlu1 %v4179_v23, %s4064_s8  ;;  %v4197_v28 = vpop.f32.mrb[7].mxu0  ;;  %v263_v43 = vsel %vm241_vm1, %v4193_v27, 0.0 }
  0xed   :  { %v260_v40 = vsel %vm241_vm1, %v4197_v28, 0.0 }
  0xef   :  { %v4221_v33 = vpop.f32.mrb[8].mxu0 }
  0xf0   :  { %903 = vrot.lane.b32.xlu1 %v4179_v23, %s4065_s2  ;;  %v4225_v34 = vpop.f32.mrb[9].mxu0  ;;  %v269_v47 = vsel %vm241_vm1, %v4221_v33, 0.0 }
  0xf1   :  { %v266_v44 = vsel %vm241_vm1, %v4225_v34, 0.0 }
  0xf3   :  { %v4241_v37 = vpop.f32.mrb[10].mxu0 }
  0xf4   :  { %1207 = vrot.lane.b32.xlu1 %v4179_v23, %s4066_s9  ;;  %v4245_v38 = vpop.f32.mrb[11].mxu0  ;;  %v275_v49 = vsel %vm241_vm1, %v4241_v37, 0.0 }
  0xf5   :  { %v272_v48 = vsel %vm241_vm1, %v4245_v38, 0.0 }
  0xf7   :  { %451 = vrot.lane.b32.xlu0 %v4175_v21, %s4064_s8  ;;  %v4261_v41 = vpop.f32.mrb[12].mxu0 }
  0xf8   :  { %6830 = vst [vmem:[#allocation3_spill] sm:$0xff] %v4261_v41  ;;  %v4265_v42 = vpop.f32.mrb[13].mxu0  ;;  %v281_v63 = vsel %vm241_vm1, %v4261_v41, 0.0 }
  0xf9   :  { %v278_v50 = vsel %vm241_vm1, %v4265_v42, 0.0 }
  0xfb   :  { %897 = vrot.lane.b32.xlu0 %v4175_v21, %s4065_s2  ;;  %v4281_v45 = vpop.f32.mrb[14].mxu0 }
  0xfc   :  { %6831 = vst [vmem:[#allocation4_spill] sm:$0xff] %v4281_v45  ;;  %v4285_v46 = vpop.f32.mrb[15].mxu0 }
  0xfd   :  { %v284_v2 = vsel %vm241_vm1, %v4285_v46, 0.0 }
  0xff   :  { %1201 = vrot.lane.b32.xlu0 %v4175_v21, %s4066_s9 }
 0x118   :  { %252 = vadd.xlane.f32.xlu1 %v251_v31 }
 0x11e   :  { %243 = vadd.xlane.f32.xlu0 %v242_v32 }
 0x129   :  { %455 = vrot.lane.b32.xlu1 %v4183_v24, %s4064_s8 }
 0x12d   :  { %901 = vrot.lane.b32.xlu1 %v4183_v24, %s4065_s2 }
 0x131   :  { %1205 = vrot.lane.b32.xlu1 %v4183_v24, %s4066_s9 }
 0x134   :  { %459 = vrot.lane.b32.xlu0 %v4189_v26, %s4064_s8 }
 0x138   :  { %905 = vrot.lane.b32.xlu0 %v4189_v26, %s4065_s2 }
 0x13c   :  { %1209 = vrot.lane.b32.xlu0 %v4189_v26, %s4066_s9 }
 0x152   :  { %v4321_v51 = vpop.permute.xlu1 %453 }
 0x155   :  { %249 = vadd.xlane.f32.xlu1 %v248_v35 }
 0x156   :  { %v4329_v53 = vpop.permute.xlu1 %899 }
 0x15a   :  { %v4333_v55 = vpop.permute.xlu1 %1203 }
 0x15b   :  { %255 = vadd.xlane.f32.xlu0 %v254_v36 }
 0x15e   :  { %v458_v57 = vpop.permute.xlu1 %457 }
 0x15f   :  { %v508_v12 = vsel %vm241_vm1, %v458_v57, 0.0  ;;  %v287_v57 = vsel %vm241_vm1, %v4281_v45, 0.0 }
 0x162   :  { %v904_v59 = vpop.permute.xlu1 %903 }
 0x163   :  { %v954_v15 = vsel %vm241_vm1, %v904_v59, 0.0 }
 0x166   :  { %461 = vrot.lane.b32.xlu1 %v4185_v25, %s4064_s8  ;;  %v1208_v62 = vpop.permute.xlu1 %1207 }
 0x167   :  { %v1258_v18 = vsel %vm241_vm1, %v1208_v62, 0.0  ;;  %v502_v62 = vsel %vm241_vm1, %v4321_v51, 0.0 }
 0x16a   :  { %907 = vrot.lane.b32.xlu1 %v4185_v25, %s4065_s2 }
 0x16e   :  { %1211 = vrot.lane.b32.xlu1 %v4185_v25, %s4066_s9  ;;  %v4325_v52 = vpop.xlane.xlu0 %246 }
 0x171   :  { %463 = vrot.lane.b32.xlu0 %v4197_v28, %s4064_s8 }
 0x172   :  { %v452_v54 = vpop.permute.xlu0 %451 }
 0x173   :  { %v499_v5 = vsel %vm241_vm1, %v452_v54, 0.0 }
 0x175   :  { %909 = vrot.lane.b32.xlu0 %v4197_v28, %s4065_s2 }
 0x176   :  { %v898_v56 = vpop.permute.xlu0 %897 }
 0x177   :  { %v945_v8 = vsel %vm241_vm1, %v898_v56, 0.0 }
 0x179   :  { %1213 = vrot.lane.b32.xlu0 %v4197_v28, %s4066_s9 }
 0x17a   :  { %v1202_v58 = vpop.permute.xlu0 %1201 }
 0x17b   :  { %v1249_v10 = vsel %vm241_vm1, %v1202_v58, 0.0 }
 0x192   :  { %258 = vadd.xlane.f32.xlu1 %v257_v39 }
 0x198   :  { %261 = vadd.xlane.f32.xlu0 %v260_v40 }
 0x1a3   :  { %465 = vrot.lane.b32.xlu1 %v4193_v27, %s4064_s8 }
 0x1a5   :  { %v4339_v0 = vpop.xlane.xlu1 %252 }
 0x1a7   :  { %911 = vrot.lane.b32.xlu1 %v4193_v27, %s4065_s2 }
 0x1a9   :  { %v456_v3 = vpop.permute.xlu1 %455 }
 0x1aa   :  { %v505_v22 = vsel %vm241_vm1, %v456_v3, 0.0  ;;  %v948_v3 = vsel %vm241_vm1, %v4329_v53, 0.0 }
 0x1ab   :  { %1215 = vrot.lane.b32.xlu1 %v4193_v27, %s4066_s9  ;;  %v4335_v60 = vpop.xlane.xlu0 %243 }
 0x1ad   :  { %v902_v7 = vpop.permute.xlu1 %901 }
 0x1ae   :  { %467 = vrot.lane.b32.xlu0 %v4225_v34, %s4064_s8  ;;  %v951_v31 = vsel %vm241_vm1, %v902_v7, 0.0  ;;  %v1252_v7 = vsel %vm241_vm1, %v4333_v55, 0.0 }
 0x1af   :  { %v460_v61 = vpop.permute.xlu0 %459 }
 0x1b0   :  { %v511_v40 = vsel %vm241_vm1, %v460_v61, 0.0 }
 0x1b1   :  { %v1206_v11 = vpop.permute.xlu1 %1205 }
 0x1b2   :  { %913 = vrot.lane.b32.xlu0 %v4225_v34, %s4065_s2  ;;  %v1255_v35 = vsel %vm241_vm1, %v1206_v11, 0.0 }
 0x1b3   :  { %v906_v1 = vpop.permute.xlu0 %905 }
 0x1b6   :  { %1217 = vrot.lane.b32.xlu0 %v4225_v34, %s4066_s9 }
 0x1b7   :  { %v1210_v4 = vpop.permute.xlu0 %1209 }
 0x1cf   :  { %264 = vadd.xlane.f32.xlu1 %v263_v43 }
 0x1d5   :  { %267 = vadd.xlane.f32.xlu0 %v266_v44  ;;  %v957_v44 = vsel %vm241_vm1, %v906_v1, 0.0 }
 0x1e0   :  { %469 = vrot.lane.b32.xlu1 %v4221_v33, %s4064_s8 }
 0x1e2   :  { %v4353_v14 = vpop.xlane.xlu1 %249 }
 0x1e4   :  { %915 = vrot.lane.b32.xlu1 %v4221_v33, %s4065_s2 }
 0x1e6   :  { %v462_v17 = vpop.permute.xlu1 %461 }
 0x1e8   :  { %1219 = vrot.lane.b32.xlu1 %v4221_v33, %s4066_s9  ;;  %v4344_v6 = vpop.xlane.xlu0 %255 }
 0x1ea   :  { %v908_v29 = vpop.permute.xlu1 %907 }
 0x1eb   :  { %471 = vrot.lane.b32.xlu0 %v4245_v38, %s4064_s8 }
 0x1ec   :  { %v464_v9 = vpop.permute.xlu0 %463 }
 0x1ed   :  { %v517_v56 = vsel %vm241_vm1, %v464_v9, 0.0 }
 0x1ee   :  { %v1212_v32 = vpop.permute.xlu1 %1211 }
 0x1ef   :  { %917 = vrot.lane.b32.xlu0 %v4245_v38, %s4065_s2  ;;  %v1264_v55 = vsel %vm241_vm1, %v1212_v32, 0.0 }
 0x1f0   :  { %v910_v13 = vpop.permute.xlu0 %909 }
 0x1f1   :  { %v963_v58 = vsel %vm241_vm1, %v910_v13, 0.0 }
 0x1f3   :  { %1221 = vrot.lane.b32.xlu0 %v4245_v38, %s4066_s9 }
 0x1f4   :  { %v1214_v16 = vpop.permute.xlu0 %1213 }
 0x20c   :  { %270 = vadd.xlane.f32.xlu1 %v269_v47 }
 0x212   :  { %273 = vadd.xlane.f32.xlu0 %v272_v48 }
 0x21d   :  { %473 = vrot.lane.b32.xlu1 %v4241_v37, %s4064_s8 }
 0x21f   :  { %v4364_v39 = vpop.xlane.xlu1 %258 }
 0x221   :  { %919 = vrot.lane.b32.xlu1 %v4241_v37, %s4065_s2 }
 0x223   :  { %v466_v47 = vpop.permute.xlu1 %465 }
 0x225   :  { %1223 = vrot.lane.b32.xlu1 %v4241_v37, %s4066_s9  ;;  %v4359_v19 = vpop.xlane.xlu0 %261 }
 0x227   :  { %v912_v54 = vpop.permute.xlu1 %911 }
 0x228   :  { %475 = vrot.lane.b32.xlu0 %v4265_v42, %s4064_s8 }
 0x229   :  { %v468_v30 = vpop.permute.xlu0 %467 }
 0x22b   :  { %v1216_v61 = vpop.permute.xlu1 %1215 }
 0x22c   :  { %921 = vrot.lane.b32.xlu0 %v4265_v42, %s4065_s2 }
 0x22d   :  { %v914_v36 = vpop.permute.xlu0 %913 }
 0x230   :  { %1225 = vrot.lane.b32.xlu0 %v4265_v42, %s4066_s9 }
 0x231   :  { %v1218_v43 = vpop.permute.xlu0 %1217 }
 0x232   :  { %v1273_v53 = vsel %vm241_vm1, %v1218_v43, 0.0 }
 0x249   :  { %276 = vadd.xlane.f32.xlu1 %v275_v49  ;;  %v1261_v49 = vsel %vm241_vm1, %v1210_v4, 0.0  ;;  %v523_v4 = vsel %vm241_vm1, %v468_v30, 0.0 }
 0x24f   :  { %279 = vadd.xlane.f32.xlu0 %v278_v50 }
 0x25a   :  { %477 = vrot.lane.b32.xlu1 %v4261_v41, %s4064_s8 }
 0x25c   :  { %v4378_v1 = vpop.xlane.xlu1 %264 }
 0x25e   :  { %923 = vrot.lane.b32.xlu1 %v4261_v41, %s4065_s2 }
 0x260   :  { %v470_v51 = vpop.permute.xlu1 %469 }
 0x262   :  { %1227 = vrot.lane.b32.xlu1 %v4261_v41, %s4066_s9  ;;  %v4368_v48 = vpop.xlane.xlu0 %267 }
 0x264   :  { %v916_v11 = vpop.permute.xlu1 %915 }
 0x265   :  { %479 = vrot.lane.b32.xlu0 %v4285_v46, %s4064_s8 }
 0x266   :  { %v472_v50 = vpop.permute.xlu0 %471 }
 0x267   :  { %v529_v13 = vsel %vm241_vm1, %v472_v50, 0.0 }
 0x269   :  { %925 = vrot.lane.b32.xlu0 %v4285_v46, %s4065_s2 }
 0x26a   :  { %v918_v59 = vpop.permute.xlu0 %917 }
 0x26d   :  { %1229 = vrot.lane.b32.xlu0 %v4285_v46, %s4066_s9 }
 0x286   :  { %282 = vadd.xlane.f32.xlu1 %v281_v63  ;;  %v1267_v63 = vsel %vm241_vm1, %v1214_v16, 0.0  ;;  %v1220_v16 = vpop.permute.xlu1 %1219 }
 0x28c   :  { %285 = vadd.xlane.f32.xlu0 %v284_v2  ;;  %v1222_v2 = vpop.permute.xlu0 %1221 }
 0x290   :  { %500 = vadd.xlane.f32.xlu0 %v499_v5 }
 0x294   :  { %946 = vadd.xlane.f32.xlu0 %v945_v8  ;;  %v969_v8 = vsel %vm241_vm1, %v914_v36, 0.0 }
 0x297   :  { %481 = vrot.lane.b32.xlu1 %v4281_v45, %s4064_s8 }
 0x298   :  { %1250 = vadd.xlane.f32.xlu0 %v1249_v10  ;;  %v514_v10 = vsel %vm241_vm1, %v462_v17, 0.0 }
 0x299   :  { %v4395_v30 = vpop.xlane.xlu1 %270 }
 0x29b   :  { %927 = vrot.lane.b32.xlu1 %v4281_v45, %s4065_s2 }
 0x29c   :  { %509 = vadd.xlane.f32.xlu0 %v508_v12  ;;  %v960_v12 = vsel %vm241_vm1, %v908_v29, 0.0  ;;  %v1279_v29 = vsel %vm241_vm1, %v1222_v2, 0.0 }
 0x29d   :  { %v474_v36 = vpop.permute.xlu1 %473 }
 0x29f   :  { %1231 = vrot.lane.b32.xlu1 %v4281_v45, %s4066_s9  ;;  %v4383_v5 = vpop.xlane.xlu0 %273 }
 0x2a0   :  { %955 = vadd.xlane.f32.xlu0 %v954_v15 }
 0x2a3   :  { %v476_v9 = vpop.permute.xlu0 %475 }
 0x2a4   :  { %1259 = vadd.xlane.f32.xlu0 %v1258_v18  ;;  %v975_v18 = vsel %vm241_vm1, %v918_v59, 0.0  ;;  %v535_v32 = vsel %vm241_vm1, %v476_v9, 0.0 }
 0x2a7   :  { %v922_v15 = vpop.permute.xlu0 %921 }
 0x2a8   :  { %506 = vadd.xlane.f32.xlu0 %v505_v22  ;;  %v520_v22 = vsel %vm241_vm1, %v466_v47, 0.0  ;;  %v526_v47 = vsel %vm241_vm1, %v470_v51, 0.0 }
 0x2ab   :  { %v1226_v17 = vpop.permute.xlu0 %1225 }
 0x2ac   :  { %952 = vadd.xlane.f32.xlu0 %v951_v31  ;;  %v1285_v50 = vsel %vm241_vm1, %v1226_v17, 0.0 }
 0x2b0   :  { %1256 = vadd.xlane.f32.xlu0 %v1255_v35  ;;  %v966_v35 = vsel %vm241_vm1, %v912_v54, 0.0 }
 0x2b4   :  { %512 = vadd.xlane.f32.xlu0 %v511_v40  ;;  %v1270_v40 = vsel %vm241_vm1, %v1216_v61, 0.0 }
 0x2b8   :  { %958 = vadd.xlane.f32.xlu0 %v957_v44  ;;  %v981_v44 = vsel %vm241_vm1, %v922_v15, 0.0 }
 0x2bc   :  { %1262 = vadd.xlane.f32.xlu0 %v1261_v49  ;;  %v920_v49 = vpop.permute.xlu1 %919 }
 0x2c0   :  { %518 = vadd.xlane.f32.xlu0 %v517_v56  ;;  %v1224_v59 = vpop.permute.xlu1 %1223 }
 0x2c3   :  { %288 = vadd.xlane.f32.xlu1 %v287_v57  ;;  %v972_v57 = vsel %vm241_vm1, %v916_v11, 0.0 }
 0x2c4   :  { %964 = vadd.xlane.f32.xlu0 %v963_v58  ;;  %v4409_v58 = vmul.f32 0.0625, %v4335_v60 }
 0x2c6   :  { %v307_v2 = vsub.f32 %v4175_v21, %v4409_v58 }
 0x2c7   :  { %503 = vadd.xlane.f32.xlu1 %v502_v62  ;;  %v1276_v62 = vsel %vm241_vm1, %v1220_v16, 0.0 }
 0x2c8   :  { %1268 = vadd.xlane.f32.xlu0 %v1267_v63  ;;  %v323_v9 = vmul.f32 %v307_v2, %v307_v2 }
 0x2cb   :  { %949 = vadd.xlane.f32.xlu1 %v948_v3  ;;  %v4416_v3 = vmul.f32 0.0625, %v4353_v14  ;;  %v978_v14 = vsel %vm241_vm1, %v920_v49, 0.0 }
 0x2cc   :  { %524 = vadd.xlane.f32.xlu0 %v523_v4 }
 0x2cd   :  { %v309_v51 = vsub.f32 %v4183_v24, %v4416_v3 }
 0x2cf   :  { %1253 = vadd.xlane.f32.xlu1 %v1252_v7  ;;  %v532_v7 = vsel %vm241_vm1, %v474_v36, 0.0 }
 0x2d0   :  { %970 = vadd.xlane.f32.xlu0 %v969_v8  ;;  %v4425_v8 = vmul.f32 0.0625, %v4344_v6  ;;  %v1282_v6 = vsel %vm241_vm1, %v1224_v59, 0.0 }
 0x2d2   :  { %6832 = vst [vmem:[#allocation5_spill] sm:$0xff] %v4425_v8 }
 0x2d3   :  { %515 = vadd.xlane.f32.xlu1 %v514_v10  ;;  %v311_v10 = vsub.f32 %v4189_v26, %v4425_v8 }
 0x2d4   :  { %1274 = vadd.xlane.f32.xlu0 %v1273_v53  ;;  %v4431_v53 = vmul.f32 0.0625, %v4359_v19 }
 0x2d6   :  { %v4418_v4 = vpop.xlane.xlu1 %276  ;;  %6833 = vst [vmem:[#allocation6_spill] sm:$0xff] %v4431_v53  ;;  %v313_v15 = vsub.f32 %v4197_v28, %v4431_v53 }
 0x2d7   :  { %961 = vadd.xlane.f32.xlu1 %v960_v12  ;;  %v339_v12 = vsel %vm241_vm1, %v323_v9, 0.0 }
 0x2d8   :  { %530 = vadd.xlane.f32.xlu0 %v529_v13  ;;  %v325_v13 = vmul.f32 %v309_v51, %v309_v51 }
 0x2da   :  { %v478_v11 = vpop.permute.xlu1 %477  ;;  %v345_v16 = vsel %vm241_vm1, %v325_v13, 0.0  ;;  %v28_v13 = vlaneseq }
 0x2db   :  { %1265 = vadd.xlane.f32.xlu1 %v1264_v55  ;;  %v4438_v55 = vmul.f32 0.0625, %v4368_v48  ;;  %v538_v17 = vsel %vm241_vm1, %v478_v11, 0.0 }
 0x2dc   :  { %976 = vadd.xlane.f32.xlu0 %v975_v18  ;;  %v4398_v31 = vpop.xlane.xlu0 %279  ;;  %v327_v18 = vmul.f32 %v311_v10, %v311_v10 }
 0x2dd   :  { %6834 = vst [vmem:[#allocation7_spill] sm:$0xff] %v4438_v55 }
 0x2de   :  { %v924_v19 = vpop.permute.xlu1 %923 }
 0x2df   :  { %521 = vadd.xlane.f32.xlu1 %v520_v22  ;;  %v315_v22 = vsub.f32 %v4225_v34, %v4438_v55  ;;  %v984_v48 = vsel %vm241_vm1, %v924_v19, 0.0 }
 0x2e0   :  { %1280 = vadd.xlane.f32.xlu0 %v1279_v29  ;;  %v480_v43 = vpop.permute.xlu0 %479  ;;  %v4445_v29 = vmul.f32 0.0625, %v4383_v5 }
 0x2e1   :  { %v541_v56 = vsel %vm241_vm1, %v480_v43, 0.0 }
 0x2e2   :  { %6835 = vst [vmem:[#allocation8_spill] sm:$0xff] %v4445_v29  ;;  %v317_v36 = vsub.f32 %v4245_v38, %v4445_v29  ;;  %v1228_v43 = vpop.permute.xlu1 %1227 }
 0x2e3   :  { %967 = vadd.xlane.f32.xlu1 %v966_v35  ;;  %v351_v35 = vsel %vm241_vm1, %v327_v18, 0.0  ;;  %v1288_v5 = vsel %vm241_vm1, %v1228_v43, 0.0 }
 0x2e4   :  { %536 = vadd.xlane.f32.xlu0 %v535_v32  ;;  %v926_v54 = vpop.permute.xlu0 %925  ;;  %v329_v32 = vmul.f32 %v313_v15, %v313_v15 }
 0x2e5   :  { %v987_v61 = vsel %vm241_vm1, %v926_v54, 0.0  ;;  %v333_v54 = vmul.f32 %v317_v36, %v317_v36 }
 0x2e7   :  { %1271 = vadd.xlane.f32.xlu1 %v1270_v40  ;;  %v4452_v40 = vmul.f32 0.0625, %v4398_v31 }
 0x2e8   :  { %982 = vadd.xlane.f32.xlu0 %v981_v44  ;;  %v1230_v63 = vpop.permute.xlu0 %1229  ;;  %v357_v44 = vsel %vm241_vm1, %v329_v32, 0.0  ;;  %v4487_v32 = vmul.f32 0.0625, %v4378_v1 }
 0x2e9   :  { %v1291_v60 = vsel %vm241_vm1, %v1230_v63, 0.0  ;;  %6836 = vst [vmem:[#allocation9_spill] sm:$0xff] %v4452_v40  ;;  %v319_v49 = vsub.f32 %v4265_v42, %v4452_v40 }
 0x2ea   :  { %6840 = vst [vmem:[#allocation13_spill] sm:$0xff] %v4487_v32 }
 0x2eb   :  { %527 = vadd.xlane.f32.xlu1 %v526_v47  ;;  %v331_v47 = vmul.f32 %v315_v22, %v315_v22  ;;  %v335_v31 = vmul.f32 %v319_v49, %v319_v49 }
 0x2ec   :  { %1286 = vadd.xlane.f32.xlu0 %v1285_v50 }
 0x2ed   :  { %v363_v50 = vsel %vm241_vm1, %v331_v47, 0.0  ;;  %v375_v59 = vsel %vm241_vm1, %v335_v31, 0.0  ;;  %v314_v47 = vsub.f32 %v4193_v27, %v4487_v32 }
 0x2ef   :  { %973 = vadd.xlane.f32.xlu1 %v972_v57 }
 0x2f0   :  { %542 = vadd.xlane.f32.xlu0 %v541_v56  ;;  %v369_v56 = vsel %vm241_vm1, %v333_v54, 0.0 }
 0x2f3   :  { %1277 = vadd.xlane.f32.xlu1 %v1276_v62  ;;  %v4462_v62 = vmul.f32 0.0625, %v4325_v52 }
 0x2f4   :  { %988 = vadd.xlane.f32.xlu0 %v987_v61 }
 0x2f5   :  { %v308_v9 = vsub.f32 %v4171_v20, %v4462_v62 }
 0x2f7   :  { %533 = vadd.xlane.f32.xlu1 %v532_v7  ;;  %v4468_v7 = vmul.f32 0.0625, %v4339_v0  ;;  %v4478_v0 = vmul.f32 0.0625, %v4364_v39  ;;  %v324_v18 = vmul.f32 %v308_v9, %v308_v9 }
 0x2f8   :  { %1292 = vadd.xlane.f32.xlu0 %v1291_v60 }
 0x2f9   :  { %6838 = vst [vmem:[#allocation11_spill] sm:$0xff] %v4478_v0  ;;  %v342_v39 = vsel %vm241_vm1, %v324_v18, 0.0 }
 0x2fb   :  { %979 = vadd.xlane.f32.xlu1 %v978_v14 }
 0x2fc   :  { %340 = vadd.xlane.f32.xlu0 %v339_v12  ;;  %v310_v12 = vsub.f32 %v4179_v23, %v4468_v7 }
 0x2fe   :  { %v326_v22 = vmul.f32 %v310_v12, %v310_v12 }
 0x2ff   :  { %1283 = vadd.xlane.f32.xlu1 %v1282_v6 }
 0x300   :  { %346 = vadd.xlane.f32.xlu0 %v345_v16 }
 0x303   :  { %539 = vadd.xlane.f32.xlu1 %v538_v17  ;;  %v4482_v17 = vand.u32 127, %v28_v13 }
 0x304   :  { %352 = vadd.xlane.f32.xlu0 %v351_v35  ;;  %v312_v35 = vsub.f32 %v4185_v25, %v4478_v0 }
 0x305   :  { %6839 = vst [vmem:[#allocation12_spill] sm:$0xff] %v4482_v17  ;;  %vm30_vm2 = vcmp.ge.s32.totalorder %v4482_v17, 16 }
 0x306   :  { %v328_v49 = vmul.f32 %v312_v35, %v312_v35 }
 0x307   :  { %985 = vadd.xlane.f32.xlu1 %v984_v48 }
 0x308   :  { %358 = vadd.xlane.f32.xlu0 %v357_v44  ;;  %v348_v44 = vsel %vm241_vm1, %v326_v22, 0.0  ;;  %v354_v31 = vsel %vm241_vm1, %v328_v49, 0.0 }
 0x30b   :  { %1289 = vadd.xlane.f32.xlu1 %v1288_v5  ;;  %v4495_v5 = vmul.f32 0.0625, %v4395_v30 }
 0x30c   :  { %364 = vadd.xlane.f32.xlu0 %v363_v50 }
 0x30d   :  { %6841 = vst [vmem:[#allocation14_spill] sm:$0xff] %v4495_v5  ;;  %v316_v54 = vsub.f32 %v4221_v33, %v4495_v5 }
 0x30f   :  { %v332_v9 = vmul.f32 %v316_v54, %v316_v54 }
 0x310   :  { %370 = vadd.xlane.f32.xlu0 %v369_v56  ;;  %v4506_v56 = vmul.f32 0.0625, %v4418_v4 }
 0x311   :  { %v366_v12 = vsel %vm241_vm1, %v332_v9, 0.0 }
 0x312   :  { %6843 = vst [vmem:[#allocation16_spill] sm:$0xff] %v4506_v56 }
 0x313   :  { %v283_v57 = vpop.xlane.xlu1 %282 }
 0x314   :  { %376 = vadd.xlane.f32.xlu0 %v375_v59  ;;  %v330_v59 = vmul.f32 %v314_v47, %v314_v47 }
 0x317   :  { %v482_v61 = vpop.permute.xlu1 %481 }
 0x318   :  { %v544_v63 = vsel %vm241_vm1, %v482_v61, 0.0 }
 0x319   :  { %545 = vadd.xlane.f32.xlu1 %v544_v63  ;;  %v286_v2 = vpop.xlane.xlu0 %285  ;;  %v318_v63 = vsub.f32 %v4241_v37, %v4506_v56 }
 0x31a   :  { %v4465_v60 = vmul.f32 0.0625, %v286_v2  ;;  %v4513_v2 = vmul.f32 0.0625, %v283_v57 }
 0x31b   :  { %v928_v51 = vpop.permute.xlu1 %927  ;;  %v334_v13 = vmul.f32 %v318_v63, %v318_v63 }
 0x31c   :  { %6837 = vst [vmem:[#allocation10_spill] sm:$0xff] %v4465_v60  ;;  %v321_v14 = vsub.f32 %v4285_v46, %v4465_v60  ;;  %v990_v10 = vsel %vm241_vm1, %v928_v51, 0.0  ;;  %6844 = vst [vmem:[#allocation17_spill] sm:$0xff] %v4513_v2  ;;  %v360_v51 = vsel %vm241_vm1, %v330_v59, 0.0 }
 0x31d   :  { %991 = vadd.xlane.f32.xlu1 %v990_v10  ;;  %v501_v52 = vpop.xlane.xlu0 %500  ;;  %v372_v18 = vsel %vm241_vm1, %v334_v13, 0.0 }
 0x31e   :  { %v337_v11 = vmul.f32 %v321_v14, %v321_v14  ;;  %v4509_v61 = vmul.f32 0.0625, %v501_v52  ;;  %v320_v52 = vsub.f32 %v4261_v41, %v4513_v2 }
 0x31f   :  { %v1232_v6 = vpop.permute.xlu1 %1231 }
 0x320   :  { %v1294_v15 = vsel %vm241_vm1, %v1232_v6, 0.0  ;;  %v381_v16 = vsel %vm241_vm1, %v337_v11, 0.0  ;;  %v563_v14 = vsub.f32 %v4175_v21, %v4509_v61 }
 0x321   :  { %1295 = vadd.xlane.f32.xlu1 %v1294_v15  ;;  %382 = vadd.xlane.f32.xlu0 %v381_v16  ;;  %v947_v19 = vpop.xlane.xlu0 %946 }
 0x322   :  { %v993_v36 = vmul.f32 0.0625, %v947_v19  ;;  %v579_v6 = vmul.f32 %v563_v14, %v563_v14  ;;  %v336_v19 = vmul.f32 %v320_v52, %v320_v52 }
 0x324   :  { %v1009_v15 = vsub.f32 %v4175_v21, %v993_v36 }
 0x325   :  { %343 = vadd.xlane.f32.xlu1 %v342_v39  ;;  %v1251_v48 = vpop.xlane.xlu0 %1250 }
 0x326   :  { %v1297_v43 = vmul.f32 0.0625, %v1251_v48  ;;  %v1025_v22 = vmul.f32 %v1009_v15, %v1009_v15  ;;  %v378_v48 = vsel %vm241_vm1, %v336_v19, 0.0 }
 0x328   :  { %v4499_v1 = vsel %vm30_vm2, %v1297_v43, %v993_v36  ;;  %v1313_v35 = vsub.f32 %v4175_v21, %v1297_v43 }
 0x329   :  { %6842 = vst [vmem:[#allocation15_spill] sm:$0xff] %v4499_v1  ;;  %349 = vadd.xlane.f32.xlu1 %v348_v44  ;;  %v4501_v50 = vpop.xlane.xlu0 %509 }
 0x32a   :  { %v1329_v44 = vmul.f32 %v1313_v35, %v1313_v35 }
 0x32d   :  { %355 = vadd.xlane.f32.xlu1 %v354_v31  ;;  %v956_v30 = vpop.xlane.xlu0 %955 }
 0x32e   :  { %v4518_v10 = vmul.f32 0.0625, %v956_v30 }
 0x331   :  { %361 = vadd.xlane.f32.xlu1 %v360_v51  ;;  %v1260_v4 = vpop.xlane.xlu0 %1259 }
 0x332   :  { %v4520_v11 = vmul.f32 0.0625, %v1260_v4 }
 0x334   :  { %v4528_v57 = vsel %vm30_vm2, %v4520_v11, %v4518_v10 }
 0x335   :  { %6845 = vst [vmem:[#allocation18_spill] sm:$0xff] %v4528_v57  ;;  %367 = vadd.xlane.f32.xlu1 %v366_v12  ;;  %v4532_v16 = vpop.xlane.xlu0 %506 }
 0x337   :  { %611 = vrot.lane.b32.xlu0 %v579_v6, %s4064_s8 }
 0x339   :  { %373 = vadd.xlane.f32.xlu1 %v372_v18  ;;  %v953_v39 = vpop.xlane.xlu0 %952 }
 0x33a   :  { %v4539_v47 = vmul.f32 0.0625, %v953_v39 }
 0x33b   :  { %1057 = vrot.lane.b32.xlu0 %v1025_v22, %s4065_s2 }
 0x33d   :  { %379 = vadd.xlane.f32.xlu1 %v378_v48  ;;  %v1257_v36 = vpop.xlane.xlu0 %1256 }
 0x33e   :  { %v4541_v49 = vmul.f32 0.0625, %v1257_v36 }
 0x33f   :  { %1361 = vrot.lane.b32.xlu0 %v1329_v44, %s4066_s9 }
 0x340   :  { %v4548_v43 = vsel %vm30_vm2, %v4541_v49, %v4539_v47 }
 0x341   :  { %6846 = vst [vmem:[#allocation19_spill] sm:$0xff] %v4548_v43  ;;  %v513_v54 = vpop.xlane.xlu0 %512 }
 0x342   :  { %v4550_v31 = vmul.f32 0.0625, %v513_v54 }
 0x344   :  { %6847 = vst [vmem:[#allocation20_spill] sm:$0xff] %v4550_v31  ;;  %v567_v59 = vsub.f32 %v4189_v26, %v4550_v31 }
 0x345   :  { %v959_v30 = vpop.xlane.xlu0 %958 }
 0x346   :  { %v583_v63 = vmul.f32 %v567_v59, %v567_v59  ;;  %v997_v51 = vmul.f32 0.0625, %v959_v30 }
 0x348   :  { %v1013_v9 = vsub.f32 %v4189_v26, %v997_v51  ;;  %619 = vrot.lane.b32.xlu0 %v583_v63, %s4064_s8 }
 0x349   :  { %v1263_v14 = vpop.xlane.xlu0 %1262 }
 0x34a   :  { %v1029_v4 = vmul.f32 %v1013_v9, %v1013_v9  ;;  %v1301_v52 = vmul.f32 0.0625, %v1263_v14 }
 0x34c   :  { %v1317_v12 = vsub.f32 %v4189_v26, %v1301_v52  ;;  %v4559_v13 = vsel %vm30_vm2, %v1301_v52, %v997_v51  ;;  %1065 = vrot.lane.b32.xlu0 %v1029_v4, %s4065_s2 }
 0x34d   :  { %6848 = vst [vmem:[#allocation21_spill] sm:$0xff] %v4559_v13  ;;  %v519_v6 = vpop.xlane.xlu0 %518 }
 0x34e   :  { %v1333_v15 = vmul.f32 %v1317_v12, %v1317_v12  ;;  %v4562_v18 = vmul.f32 0.0625, %v519_v6 }
 0x350   :  { %6849 = vst [vmem:[#allocation22_spill] sm:$0xff] %v4562_v18  ;;  %v569_v19 = vsub.f32 %v4197_v28, %v4562_v18  ;;  %v289_v22 = vpop.xlane.xlu1 %288  ;;  %1369 = vrot.lane.b32.xlu0 %v1333_v15, %s4066_s9 }
 0x351   :  { %v4567_v35 = vmul.f32 0.0625, %v289_v22  ;;  %v965_v39 = vpop.xlane.xlu0 %964 }
 0x352   :  { %v585_v48 = vmul.f32 %v569_v19, %v569_v19  ;;  %v999_v44 = vmul.f32 0.0625, %v965_v39 }
 0x353   :  { %6850 = vst [vmem:[#allocation23_spill] sm:$0xff] %v4567_v35  ;;  %v322_v36 = vsub.f32 %v4281_v45, %v4567_v35 }
 0x354   :  { %v1015_v54 = vsub.f32 %v4197_v28, %v999_v44  ;;  %v504_v59 = vpop.xlane.xlu1 %503  ;;  %623 = vrot.lane.b32.xlu0 %v585_v48, %s4064_s8 }
 0x355   :  { %v1269_v30 = vpop.xlane.xlu0 %1268  ;;  %v338_v63 = vmul.f32 %v322_v36, %v322_v36 }
 0x356   :  { %v1031_v51 = vmul.f32 %v1015_v54, %v1015_v54  ;;  %v4573_v9 = vmul.f32 0.0625, %v1269_v30  ;;  %v4586_v30 = vmul.f32 0.0625, %v504_v59 }
 0x357   :  { %v384_v14 = vsel %vm241_vm1, %v338_v63, 0.0 }
 0x358   :  { %v4579_v4 = vsel %vm30_vm2, %v4573_v9, %v999_v44  ;;  %385 = vadd.xlane.f32.xlu1 %v384_v14  ;;  %v950_v52 = vpop.xlane.xlu1 %949  ;;  %1069 = vrot.lane.b32.xlu0 %v1031_v51, %s4065_s2 }
 0x359   :  { %6851 = vst [vmem:[#allocation24_spill] sm:$0xff] %v4579_v4  ;;  %v525_v12 = vpop.xlane.xlu0 %524  ;;  %v994_v22 = vmul.f32 0.0625, %v950_v52  ;;  %v564_v52 = vsub.f32 %v4171_v20, %v4586_v30 }
 0x35a   :  { %v4582_v6 = vmul.f32 0.0625, %v525_v12 }
 0x35b   :  { %v580_v13 = vmul.f32 %v564_v52, %v564_v52 }
 0x35c   :  { %6852 = vst [vmem:[#allocation25_spill] sm:$0xff] %v4582_v6  ;;  %v571_v15 = vsub.f32 %v4225_v34, %v4582_v6  ;;  %v1254_v19 = vpop.xlane.xlu1 %1253 }
 0x35d   :  { %v1298_v39 = vmul.f32 0.0625, %v1254_v19  ;;  %v971_v48 = vpop.xlane.xlu0 %970 }
 0x35e   :  { %v587_v36 = vmul.f32 %v571_v15, %v571_v15  ;;  %v1001_v54 = vmul.f32 0.0625, %v971_v48 }
 0x35f   :  { %v4590_v44 = vsel %vm30_vm2, %v1298_v39, %v994_v22  ;;  %v1314_v52 = vsub.f32 %v4171_v20, %v1298_v39 }
 0x360   :  { %6853 = vst [vmem:[#allocation26_spill] sm:$0xff] %v4590_v44  ;;  %v1017_v63 = vsub.f32 %v4225_v34, %v1001_v54  ;;  %v4593_v51 = vpop.xlane.xlu1 %515  ;;  %627 = vrot.lane.b32.xlu0 %v587_v36, %s4064_s8  ;;  %v1010_v36 = vsub.f32 %v4171_v20, %v994_v22 }
 0x361   :  { %v1275_v14 = vpop.xlane.xlu0 %1274 }
 0x362   :  { %v1033_v12 = vmul.f32 %v1017_v63, %v1017_v63  ;;  %v4596_v4 = vmul.f32 0.0625, %v1275_v14 }
 0x364   :  { %v4603_v59 = vsel %vm30_vm2, %v4596_v4, %v1001_v54  ;;  %v962_v15 = vpop.xlane.xlu1 %961  ;;  %1073 = vrot.lane.b32.xlu0 %v1033_v12, %s4065_s2  ;;  %v4617_v12 = vmul.f32 0.0625, %v4501_v50 }
 0x365   :  { %6854 = vst [vmem:[#allocation27_spill] sm:$0xff] %v4603_v59  ;;  %v531_v19 = vpop.xlane.xlu0 %530  ;;  %v4611_v43 = vmul.f32 0.0625, %v962_v15 }
 0x366   :  { %v4606_v48 = vmul.f32 0.0625, %v531_v19  ;;  %v1026_v19 = vmul.f32 %v1010_v36, %v1010_v36  ;;  %v566_v39 = vsub.f32 %v4179_v23, %v4617_v12  ;;  %v1330_v36 = vmul.f32 %v1314_v52, %v1314_v52 }
 0x368   :  { %6855 = vst [vmem:[#allocation28_spill] sm:$0xff] %v4606_v48  ;;  %v573_v63 = vsub.f32 %v4245_v38, %v4606_v48  ;;  %v1266_v14 = vpop.xlane.xlu1 %1265 }
 0x369   :  { %v4613_v44 = vmul.f32 0.0625, %v1266_v14  ;;  %613 = vrot.lane.b32.xlu1 %v580_v13, %s4064_s8  ;;  %v977_v54 = vpop.xlane.xlu0 %976 }
 0x36a   :  { %v589_v59 = vmul.f32 %v573_v63, %v573_v63  ;;  %v1003_v57 = vmul.f32 0.0625, %v977_v54 }
 0x36b   :  { %v4624_v22 = vsel %vm30_vm2, %v4613_v44, %v4611_v43 }
 0x36c   :  { %6856 = vst [vmem:[#allocation29_spill] sm:$0xff] %v4624_v22  ;;  %v1019_v15 = vsub.f32 %v4245_v38, %v1003_v57  ;;  %v4627_v14 = vpop.xlane.xlu1 %521  ;;  %631 = vrot.lane.b32.xlu0 %v589_v59, %s4064_s8 }
 0x36d   :  { %1059 = vrot.lane.b32.xlu1 %v1026_v19, %s4065_s2  ;;  %v1281_v13 = vpop.xlane.xlu0 %1280 }
 0x36e   :  { %v1035_v50 = vmul.f32 %v1019_v15, %v1019_v15  ;;  %v4631_v63 = vmul.f32 0.0625, %v1281_v13  ;;  %v582_v15 = vmul.f32 %v566_v39, %v566_v39  ;;  %v1012_v13 = vsub.f32 %v4179_v23, %v4518_v10 }
 0x36f   :  { %v1316_v39 = vsub.f32 %v4179_v23, %v4520_v11 }
 0x370   :  { %v4638_v54 = vsel %vm30_vm2, %v4631_v63, %v1003_v57  ;;  %v968_v22 = vpop.xlane.xlu1 %967  ;;  %1077 = vrot.lane.b32.xlu0 %v1035_v50, %s4065_s2  ;;  %v1028_v60 = vmul.f32 %v1012_v13, %v1012_v13 }
 0x371   :  { %6857 = vst [vmem:[#allocation30_spill] sm:$0xff] %v4638_v54  ;;  %1363 = vrot.lane.b32.xlu1 %v1330_v36, %s4066_s9  ;;  %v537_v59 = vpop.xlane.xlu0 %536  ;;  %v4648_v35 = vmul.f32 0.0625, %v968_v22  ;;  %v1332_v11 = vmul.f32 %v1316_v39, %v1316_v39  ;;  %v1011_v39 = vsub.f32 %v4183_v24, %v4539_v47 }
 0x372   :  { %v4642_v19 = vmul.f32 0.0625, %v537_v59  ;;  %v4656_v59 = vmul.f32 0.0625, %v4532_v16 }
 0x374   :  { %6858 = vst [vmem:[#allocation31_spill] sm:$0xff] %v4642_v19  ;;  %v575_v52 = vsub.f32 %v4265_v42, %v4642_v19  ;;  %v1272_v1 = vpop.xlane.xlu1 %1271  ;;  %v565_v16 = vsub.f32 %v4183_v24, %v4656_v59 }
 0x375   :  { %v4650_v57 = vmul.f32 0.0625, %v1272_v1  ;;  %617 = vrot.lane.b32.xlu1 %v582_v15, %s4064_s8  ;;  %v983_v50 = vpop.xlane.xlu0 %982 }
 0x376   :  { %v591_v54 = vmul.f32 %v575_v52, %v575_v52  ;;  %v1005_v36 = vmul.f32 0.0625, %v983_v50 }
 0x377   :  { %v4662_v10 = vsel %vm30_vm2, %v4650_v57, %v4648_v35 }
 0x378   :  { %6859 = vst [vmem:[#allocation32_spill] sm:$0xff] %v4662_v10  ;;  %v1021_v1 = vsub.f32 %v4265_v42, %v1005_v36  ;;  %v528_v22 = vpop.xlane.xlu1 %527  ;;  %635 = vrot.lane.b32.xlu0 %v591_v54, %s4064_s8 }
 0x379   :  { %1063 = vrot.lane.b32.xlu1 %v1028_v60, %s4065_s2  ;;  %v1287_v15 = vpop.xlane.xlu0 %1286 }
 0x37a   :  { %v1037_v13 = vmul.f32 %v1021_v1, %v1021_v1  ;;  %v4667_v52 = vmul.f32 0.0625, %v1287_v15  ;;  %v581_v1 = vmul.f32 %v565_v16, %v565_v16  ;;  %v4690_v16 = vmul.f32 0.0625, %v4593_v51 }
 0x37c   :  { %v4674_v50 = vsel %vm30_vm2, %v4667_v52, %v1005_v36  ;;  %v974_v10 = vpop.xlane.xlu1 %973  ;;  %1081 = vrot.lane.b32.xlu0 %v1037_v13, %s4065_s2  ;;  %6862 = vst [vmem:[#allocation35_spill] sm:$0xff] %v4690_v16  ;;  %v568_v51 = vsub.f32 %v4185_v25, %v4690_v16 }
 0x37d   :  { %6860 = vst [vmem:[#allocation33_spill] sm:$0xff] %v4674_v50  ;;  %1367 = vrot.lane.b32.xlu1 %v1332_v11, %s4066_s9  ;;  %v543_v54 = vpop.xlane.xlu0 %542  ;;  %v1002_v19 = vmul.f32 0.0625, %v974_v10  ;;  %v1027_v11 = vmul.f32 %v1011_v39, %v1011_v39 }
 0x37e   :  { %v4678_v60 = vmul.f32 0.0625, %v543_v54  ;;  %v1315_v54 = vsub.f32 %v4183_v24, %v4541_v49 }
 0x380   :  { %6861 = vst [vmem:[#allocation34_spill] sm:$0xff] %v4678_v60  ;;  %v577_v15 = vsub.f32 %v4285_v46, %v4678_v60  ;;  %v1278_v2 = vpop.xlane.xlu1 %1277  ;;  %v1331_v49 = vmul.f32 %v1315_v54, %v1315_v54  ;;  %v4716_v54 = vmul.f32 0.0625, %v4627_v14 }
 0x381   :  { %v4684_v40 = vmul.f32 0.0625, %v1278_v2  ;;  %615 = vrot.lane.b32.xlu1 %v581_v1, %s4064_s8  ;;  %v989_v36 = vpop.xlane.xlu0 %988 }
 0x382   :  { %v593_v13 = vmul.f32 %v577_v15, %v577_v15  ;;  %v1007_v50 = vmul.f32 0.0625, %v989_v36  ;;  %6865 = vst [vmem:[#allocation38_spill] sm:$0xff] %v4716_v54 }
 0x383   :  { %v4695_v47 = vsel %vm30_vm2, %v4684_v40, %v1002_v19 }
 0x384   :  { %6863 = vst [vmem:[#allocation36_spill] sm:$0xff] %v4695_v47  ;;  %v1023_v2 = vsub.f32 %v4285_v46, %v1007_v50  ;;  %v534_v10 = vpop.xlane.xlu1 %533  ;;  %639 = vrot.lane.b32.xlu0 %v593_v13, %s4064_s8 }
 0x385   :  { %1061 = vrot.lane.b32.xlu1 %v1027_v11, %s4065_s2  ;;  %v1293_v1 = vpop.xlane.xlu0 %1292  ;;  %v584_v11 = vmul.f32 %v568_v51, %v568_v51 }
 0x386   :  { %v1039_v39 = vmul.f32 %v1023_v2, %v1023_v2  ;;  %v4700_v15 = vmul.f32 0.0625, %v1293_v1  ;;  %v1014_v2 = vsub.f32 %v4185_v25, %v4611_v43 }
 0x388   :  { %v4707_v36 = vsel %vm30_vm2, %v4700_v15, %v1007_v50  ;;  %v980_v47 = vpop.xlane.xlu1 %979  ;;  %1085 = vrot.lane.b32.xlu0 %v1039_v39, %s4065_s2  ;;  %v1030_v39 = vmul.f32 %v1014_v2, %v1014_v2 }
 0x389   :  { %6864 = vst [vmem:[#allocation37_spill] sm:$0xff] %v4707_v36  ;;  %1365 = vrot.lane.b32.xlu1 %v1331_v49, %s4066_s9  ;;  %v4711_v13 = vpop.xlane.xlu0 %340  ;;  %v1004_v60 = vmul.f32 0.0625, %v980_v47  ;;  %v570_v49 = vsub.f32 %v4193_v27, %v4716_v54 }
 0x38b   :  { %v586_v47 = vmul.f32 %v570_v49, %v570_v49 }
 0x38c   :  { %v1284_v1 = vpop.xlane.xlu1 %1283 }
 0x38d   :  { %v4718_v56 = vmul.f32 0.0625, %v1284_v1  ;;  %621 = vrot.lane.b32.xlu1 %v584_v11, %s4064_s8  ;;  %v4721_v50 = vpop.xlane.xlu0 %346  ;;  %v1016_v11 = vsub.f32 %v4193_v27, %v4648_v35  ;;  %v4735_v1 = vmul.f32 0.0625, %v528_v22  ;;  %v1018_v35 = vsub.f32 %v4221_v33, %v1002_v19 }
 0x38e   :  { %v4746_v22 = vmul.f32 0.0625, %v534_v10  ;;  %v1020_v19 = vsub.f32 %v4241_v37, %v1004_v60 }
 0x38f   :  { %v4728_v51 = vsel %vm30_vm2, %v4718_v56, %v1004_v60  ;;  %6867 = vst [vmem:[#allocation40_spill] sm:$0xff] %v4735_v1  ;;  %v1032_v36 = vmul.f32 %v1016_v11, %v1016_v11  ;;  %v572_v48 = vsub.f32 %v4221_v33, %v4735_v1  ;;  %v1034_v1 = vmul.f32 %v1018_v35, %v1018_v35 }
 0x390   :  { %6866 = vst [vmem:[#allocation39_spill] sm:$0xff] %v4728_v51  ;;  %v540_v43 = vpop.xlane.xlu1 %539  ;;  %6868 = vst [vmem:[#allocation41_spill] sm:$0xff] %v4746_v22 }
 0x391   :  { %1067 = vrot.lane.b32.xlu1 %v1030_v39, %s4065_s2  ;;  %v4731_v14 = vpop.xlane.xlu0 %352  ;;  %v588_v49 = vmul.f32 %v572_v48, %v572_v48  ;;  %v4760_v10 = vmul.f32 0.0625, %v540_v43 }
 0x393   :  { %6870 = vst [vmem:[#allocation43_spill] sm:$0xff] %v4760_v10 }
 0x394   :  { %v986_v2 = vpop.xlane.xlu1 %985 }
 0x395   :  { %625 = vrot.lane.b32.xlu1 %v586_v47, %s4064_s8  ;;  %v4740_v29 = vpop.xlane.xlu0 %358  ;;  %v1006_v5 = vmul.f32 0.0625, %v986_v2 }
 0x398   :  { %v1290_v51 = vpop.xlane.xlu1 %1289 }
 0x399   :  { %v4742_v39 = vmul.f32 0.0625, %v1290_v51  ;;  %1071 = vrot.lane.b32.xlu1 %v1032_v36, %s4065_s2  ;;  %v4754_v11 = vpop.xlane.xlu0 %364  ;;  %v574_v51 = vsub.f32 %v4241_v37, %v4746_v22 }
 0x39b   :  { %v4751_v47 = vsel %vm30_vm2, %v4742_v39, %v1006_v5  ;;  %v590_v48 = vmul.f32 %v574_v51, %v574_v51  ;;  %v1022_v51 = vsub.f32 %v4261_v41, %v1006_v5 }
 0x39c   :  { %6869 = vst [vmem:[#allocation42_spill] sm:$0xff] %v4751_v47  ;;  %v1036_v47 = vmul.f32 %v1020_v19, %v1020_v19 }
 0x39d   :  { %629 = vrot.lane.b32.xlu1 %v588_v49, %s4064_s8  ;;  %v4762_v36 = vpop.xlane.xlu0 %370  ;;  %v576_v49 = vsub.f32 %v4261_v41, %v4760_v10 }
 0x39e   :  { %6871 = vst [vmem:[#allocation44_spill] sm:$0xff] %v4762_v36 }
 0x3a1   :  { %1075 = vrot.lane.b32.xlu1 %v1034_v1, %s4065_s2  ;;  %v4768_v35 = vpop.xlane.xlu0 %376  ;;  %v592_v1 = vmul.f32 %v576_v49, %v576_v49 }
 0x3a2   :  { %6872 = vst [vmem:[#allocation45_spill] sm:$0xff] %v4768_v35 }
 0x3a5   :  { %633 = vrot.lane.b32.xlu1 %v590_v48, %s4064_s8  ;;  %v1038_v48 = vmul.f32 %v1022_v51, %v1022_v51 }
 0x3a6   :  { %v546_v2 = vpop.xlane.xlu1 %545 }
 0x3a7   :  { %v4771_v60 = vmul.f32 0.0625, %v546_v2 }
 0x3a9   :  { %1079 = vrot.lane.b32.xlu1 %v1036_v47, %s4065_s2  ;;  %6873 = vst [vmem:[#allocation46_spill] sm:$0xff] %v4771_v60  ;;  %v578_v19 = vsub.f32 %v4281_v45, %v4771_v60 }
 0x3aa   :  { %v992_v22 = vpop.xlane.xlu1 %991 }
 0x3ab   :  { %v1008_v10 = vmul.f32 0.0625, %v992_v22  ;;  %v594_v2 = vmul.f32 %v578_v19, %v578_v19 }
 0x3ad   :  { %637 = vrot.lane.b32.xlu1 %v592_v1, %s4064_s8  ;;  %v1024_v49 = vsub.f32 %v4281_v45, %v1008_v10 }
 0x3ae   :  { %v1296_v43 = vpop.xlane.xlu1 %1295  ;;  %v4774_v6 = vpop.xlane.xlu0 %382 }
 0x3af   :  { %6874 = vst [vmem:[#allocation47_spill] sm:$0xff] %v4774_v6  ;;  %v4778_v55 = vmul.f32 0.0625, %v1296_v43  ;;  %v1040_v22 = vmul.f32 %v1024_v49, %v1024_v49 }
 0x3b1   :  { %v4783_v47 = vsel %vm30_vm2, %v4778_v55, %v1008_v10  ;;  %1083 = vrot.lane.b32.xlu1 %v1038_v48, %s4065_s2 }
 0x3b2   :  { %6875 = vst [vmem:[#allocation48_spill] sm:$0xff] %v4783_v47  ;;  %v612_v5 = vpop.permute.xlu0 %611  ;;  %v4791_v60 = vpop.xlane.xlu1 %343 }
 0x3b3   :  { %v659_v1 = vsel %vm241_vm1, %v612_v5, 0.0 }
 0x3b4   :  { %660 = vadd.xlane.f32.xlu0 %v659_v1 }
 0x3b5   :  { %641 = vrot.lane.b32.xlu1 %v594_v2, %s4064_s8 }
 0x3b6   :  { %v1058_v51 = vpop.permute.xlu0 %1057  ;;  %v4793_v47 = vpop.xlane.xlu1 %349 }
 0x3b7   :  { %v1105_v43 = vsel %vm241_vm1, %v1058_v51, 0.0 }
 0x3b8   :  { %1106 = vadd.xlane.f32.xlu0 %v1105_v43 }
 0x3b9   :  { %1087 = vrot.lane.b32.xlu1 %v1040_v22, %s4065_s2 }
 0x3ba   :  { %v4795_v48 = vpop.xlane.xlu1 %355  ;;  %v4808_v22 = vpop.permute.xlu0 %1361 }
 0x3be   :  { %v4797_v19 = vpop.xlane.xlu1 %361  ;;  %v620_v54 = vpop.permute.xlu0 %619 }
 0x3c2   :  { %v4799_v10 = vpop.xlane.xlu1 %367  ;;  %v1066_v53 = vpop.permute.xlu0 %1065 }
 0x3c3   :  { %v1117_v36 = vsel %vm241_vm1, %v1066_v53, 0.0 }
 0x3c6   :  { %v4801_v5 = vpop.xlane.xlu1 %373 }
 0x3c7   :  { %6876 = vst [vmem:[#allocation49_spill] sm:$0xff] %v4801_v5 }
 0x3ca   :  { %v4803_v2 = vpop.xlane.xlu1 %379 }
 0x3cb   :  { %6877 = vst [vmem:[#allocation50_spill] sm:$0xff] %v4803_v2 }
 0x3e5   :  { %v4805_v49 = vpop.xlane.xlu1 %385 }
 0x3e6   :  { %6878 = vst [vmem:[#allocation51_spill] sm:$0xff] %v4805_v49 }
 0x3e9   :  { %v614_v1 = vpop.permute.xlu1 %613 }
 0x3ea   :  { %v662_v51 = vsel %vm241_vm1, %v614_v1, 0.0  ;;  %v4815_v1 = vpop.permute.xlu0 %1369 }
 0x3eb   :  { %663 = vadd.xlane.f32.xlu1 %v662_v51 }
 0x3ed   :  { %v1060_v43 = vpop.permute.xlu1 %1059 }
 0x3ee   :  { %v1108_v6 = vsel %vm241_vm1, %v1060_v43, 0.0 }
 0x3ef   :  { %1109 = vadd.xlane.f32.xlu1 %v1108_v6  ;;  %v624_v6 = vpop.permute.xlu0 %623 }
 0x3f1   :  { %v4811_v32 = vpop.permute.xlu1 %1363 }
 0x3f5   :  { %v618_v35 = vpop.permute.xlu1 %617 }
 0x3f6   :  { %v668_v18 = vsel %vm241_vm1, %v618_v35, 0.0  ;;  %v1070_v35 = vpop.permute.xlu0 %1069 }
 0x3f7   :  { %669 = vadd.xlane.f32.xlu0 %v668_v18  ;;  %v671_v18 = vsel %vm241_vm1, %v620_v54, 0.0 }
 0x3f9   :  { %v1064_v2 = vpop.permute.xlu1 %1063 }
 0x3fa   :  { %v1114_v49 = vsel %vm241_vm1, %v1064_v2, 0.0  ;;  %v628_v31 = vpop.permute.xlu0 %627 }
 0x3fb   :  { %1115 = vadd.xlane.f32.xlu0 %v1114_v49 }
 0x3fd   :  { %v4817_v5 = vpop.permute.xlu1 %1367 }
 0x401   :  { %v616_v51 = vpop.permute.xlu1 %615 }
 0x402   :  { %v665_v43 = vsel %vm241_vm1, %v616_v51, 0.0 }
 0x403   :  { %666 = vadd.xlane.f32.xlu0 %v665_v43 }
 0x405   :  { %v1062_v16 = vpop.permute.xlu1 %1061 }
 0x406   :  { %v1111_v0 = vsel %vm241_vm1, %v1062_v16, 0.0  ;;  %v677_v16 = vsel %vm241_vm1, %v624_v6, 0.0 }
 0x407   :  { %1112 = vadd.xlane.f32.xlu0 %v1111_v0  ;;  %v1074_v0 = vpop.permute.xlu0 %1073 }
 0x409   :  { %v4821_v26 = vpop.permute.xlu1 %1365 }
 0x40b   :  { %672 = vadd.xlane.f32.xlu0 %v671_v18  ;;  %v1123_v18 = vsel %vm241_vm1, %v1070_v35, 0.0 }
 0x40d   :  { %v622_v2 = vpop.permute.xlu1 %621 }
 0x40e   :  { %v674_v49 = vsel %vm241_vm1, %v622_v2, 0.0  ;;  %v632_v2 = vpop.permute.xlu0 %631 }
 0x40f   :  { %675 = vadd.xlane.f32.xlu1 %v674_v49  ;;  %1118 = vadd.xlane.f32.xlu0 %v1117_v36  ;;  %v683_v36 = vsel %vm241_vm1, %v628_v31, 0.0 }
 0x411   :  { %v1068_v51 = vpop.permute.xlu1 %1067 }
 0x412   :  { %v1120_v43 = vsel %vm241_vm1, %v1068_v51, 0.0 }
 0x413   :  { %1121 = vadd.xlane.f32.xlu1 %v1120_v43  ;;  %678 = vadd.xlane.f32.xlu0 %v677_v16  ;;  %v1129_v43 = vsel %vm241_vm1, %v1074_v0, 0.0  ;;  %v1078_v16 = vpop.permute.xlu0 %1077 }
 0x415   :  { %v626_v8 = vpop.permute.xlu1 %625 }
 0x416   :  { %v680_v54 = vsel %vm241_vm1, %v626_v8, 0.0 }
 0x417   :  { %681 = vadd.xlane.f32.xlu1 %v680_v54  ;;  %1124 = vadd.xlane.f32.xlu0 %v1123_v18  ;;  %v689_v54 = vsel %vm241_vm1, %v632_v2, 0.0  ;;  %v636_v18 = vpop.permute.xlu0 %635 }
 0x419   :  { %v1072_v53 = vpop.permute.xlu1 %1071 }
 0x41a   :  { %v1126_v49 = vsel %vm241_vm1, %v1072_v53, 0.0 }
 0x41b   :  { %1127 = vadd.xlane.f32.xlu1 %v1126_v49  ;;  %684 = vadd.xlane.f32.xlu0 %v683_v36  ;;  %v1135_v49 = vsel %vm241_vm1, %v1078_v16, 0.0  ;;  %v1082_v36 = vpop.permute.xlu0 %1081 }
 0x41d   :  { %v630_v51 = vpop.permute.xlu1 %629 }
 0x41e   :  { %v686_v6 = vsel %vm241_vm1, %v630_v51, 0.0 }
 0x41f   :  { %687 = vadd.xlane.f32.xlu1 %v686_v6  ;;  %1130 = vadd.xlane.f32.xlu0 %v1129_v43  ;;  %v695_v6 = vsel %vm241_vm1, %v636_v18, 0.0  ;;  %v640_v43 = vpop.permute.xlu0 %639 }
 0x421   :  { %v1076_v8 = vpop.permute.xlu1 %1075 }
 0x422   :  { %v1132_v35 = vsel %vm241_vm1, %v1076_v8, 0.0 }
 0x423   :  { %1133 = vadd.xlane.f32.xlu1 %v1132_v35  ;;  %690 = vadd.xlane.f32.xlu0 %v689_v54  ;;  %v1141_v35 = vsel %vm241_vm1, %v1082_v36, 0.0 }
 0x425   :  { %v634_v53 = vpop.permute.xlu1 %633 }
 0x426   :  { %v692_v31 = vsel %vm241_vm1, %v634_v53, 0.0  ;;  %v701_v53 = vsel %vm241_vm1, %v640_v43, 0.0 }
 0x427   :  { %693 = vadd.xlane.f32.xlu1 %v692_v31  ;;  %1136 = vadd.xlane.f32.xlu0 %v1135_v49  ;;  %v1086_v31 = vpop.permute.xlu0 %1085 }
 0x429   :  { %v1080_v0 = vpop.permute.xlu1 %1079 }
 0x42a   :  { %v1138_v51 = vsel %vm241_vm1, %v1080_v0, 0.0  ;;  %v1147_v0 = vsel %vm241_vm1, %v1086_v31, 0.0  ;;  %v1320_v31 = vsub.f32 %v4193_v27, %v4650_v57  ;;  %v4865_v57 = vld [vmem:[%s6756_s3] ss:$0 sm:$0xff] }
 0x42b   :  { %1139 = vadd.xlane.f32.xlu1 %v1138_v51  ;;  %696 = vadd.xlane.f32.xlu0 %v695_v6  ;;  %v387_v6 = vmul.f32 0.0625, %v4711_v13  ;;  %v1321_v13 = vsub.f32 %v4225_v34, %v4596_v4 }
 0x42d   :  { %v638_v2 = vpop.permute.xlu1 %637 }
 0x42e   :  { %v698_v8 = vsel %vm241_vm1, %v638_v2, 0.0  ;;  %v403_v2 = vadd.f32 1e-05, %v387_v6 }
 0x42f   :  { %699 = vadd.xlane.f32.xlu1 %v698_v8  ;;  %1142 = vadd.xlane.f32.xlu0 %v1141_v35 }
 0x430   :  { %3802 = vrsqrt.f32 %v403_v2 }
 0x431   :  { %v1084_v54 = vpop.permute.xlu1 %1083 }
 0x432   :  { %v1144_v16 = vsel %vm241_vm1, %v1084_v54, 0.0  ;;  %v1318_v54 = vsub.f32 %v4185_v25, %v4613_v44  ;;  %v1322_v44 = vsub.f32 %v4221_v33, %v4684_v40  ;;  %v1324_v40 = vsub.f32 %v4241_v37, %v4718_v56 }
 0x433   :  { %1145 = vadd.xlane.f32.xlu1 %v1144_v16  ;;  %702 = vadd.xlane.f32.xlu0 %v701_v53  ;;  %v1319_v16 = vsub.f32 %v4197_v28, %v4573_v9  ;;  %v1323_v9 = vsub.f32 %v4245_v38, %v4631_v63  ;;  %v773_v63 = vsel %vm30_vm2, %v4509_v61, %v4409_v58 }
 0x434   :  { %v1334_v53 = vmul.f32 %v1318_v54, %v1318_v54  ;;  %v1338_v6 = vmul.f32 %v1322_v44, %v1322_v44  ;;  %v1340_v56 = vmul.f32 %v1324_v40, %v1324_v40  ;;  %v1835_v40 = vld [vmem:[%s6759_s1 + $0x48] sm:$0xff] }
 0x435   :  { %v642_v49 = vpop.permute.xlu1 %641 }
 0x436   :  { %v704_v18 = vsel %vm241_vm1, %v642_v49, 0.0  ;;  %v1335_v49 = vmul.f32 %v1319_v16, %v1319_v16  ;;  %v1326_v16 = vsub.f32 %v4261_v41, %v4742_v39  ;;  %v1826_v39 = vld [vmem:[%s6759_s1] sm:$0xff] }
 0x437   :  { %705 = vadd.xlane.f32.xlu1 %v704_v18  ;;  %1148 = vadd.xlane.f32.xlu0 %v1147_v0  ;;  %v1336_v18 = vmul.f32 %v1320_v31, %v1320_v31 }
 0x438   :  { %3758 = vmatprep.mubr.msk.f32.mxu1 %vm47_vm0, %v1826_v39  ;;  %v1412_v39 = vsel %vm241_vm1, %v4811_v32, 0.0 }
 0x439   :  { %v1088_v51 = vpop.permute.xlu1 %1087 }
 0x43a   :  { %v1150_v36 = vsel %vm241_vm1, %v1088_v51, 0.0  ;;  %v3803_v0 = vpop.eup %3802  ;;  %v1337_v51 = vmul.f32 %v1321_v13, %v1321_v13  ;;  %v1328_v13 = vsub.f32 %v4281_v45, %v4778_v55  ;;  %v1828_v55 = vld [vmem:[%s6759_s1 + $0x10] sm:$0xff] }
 0x43b   :  { %1151 = vadd.xlane.f32.xlu1 %v1150_v36 }
 0x43c   :  { %v1344_v44 = vmul.f32 %v1328_v13, %v1328_v13 }
 0x441   :  { %v661_v8 = vpop.xlane.xlu0 %660 }
 0x442   :  { %v707_v35 = vmul.f32 0.0625, %v661_v8  ;;  %v1339_v8 = vmul.f32 %v1323_v9, %v1323_v9  ;;  %v1831_v9 = vld [vmem:[%s6759_s1 + $0x28] sm:$0xff] }
 0x444   :  { %v723_v43 = vadd.f32 1e-05, %v707_v35  ;;  %v1325_v35 = vsub.f32 %v4265_v42, %v4667_v52  ;;  %v1327_v52 = vsub.f32 %v4285_v46, %v4700_v15  ;;  %v1827_v15 = vld [vmem:[%s6759_s1 + $0x8] sm:$0xff] }
 0x445   :  { %3759 = vmatmul.mubr.msk.f32.vlgmr.msra.gmra.mrb[0].mxu1 %vm47_vm0, %v1827_v15  ;;  %v4974_v13 = vpop.xlane.xlu0 %1106 }
 0x446   :  { %3804 = vrsqrt.f32 %v723_v43  ;;  %v4883_v43 = vld [vmem:[%s6757_s4] ss:$0 sm:$0xff]  ;;  %3761 = vmatprep.mubr.msk.f32.mxu1 %vm47_vm0, %v1828_v55 }
 0x44c   :  { %1371 = vrot.lane.b32.xlu1 %v1334_v53, %s4066_s9  ;;  %v1341_v53 = vmul.f32 %v1325_v35, %v1325_v35  ;;  %v1839_v35 = vld [vmem:[%s6759_s1 + $0x68] sm:$0xff] }
 0x44d   :  { %1373 = vrot.lane.b32.xlu0 %v1335_v49, %s4066_s9  ;;  %v1342_v49 = vmul.f32 %v1326_v16, %v1326_v16  ;;  %v1841_v16 = vld [vmem:[%s6759_s1 + $0x78] sm:$0xff] }
 0x450   :  { %v3805_v36 = vpop.eup %3804  ;;  %1375 = vrot.lane.b32.xlu1 %v1336_v18, %s4066_s9  ;;  %v1343_v18 = vmul.f32 %v1327_v52, %v1327_v52 }
 0x451   :  { %v757_v4 = vsel %vm30_vm2, %v3805_v36, %v3803_v0  ;;  %1377 = vrot.lane.b32.xlu0 %v1337_v51, %s4066_s9  ;;  %v1829_v0 = vld [vmem:[%s6759_s1 + $0x18] sm:$0xff]  ;;  %v1830_v51 = vld [vmem:[%s6759_s1 + $0x20] sm:$0xff]  ;;  %v1832_v36 = vld [vmem:[%s6759_s1 + $0x30] sm:$0xff] }
 0x452   :  { %v795_v2 = vmul.f32 %v4865_v57, %v757_v4  ;;  %3762 = vmatmul.mubr.msk.f32.gmra.mrb[2].mxu1 %vm47_vm0, %v1829_v0  ;;  %v1833_v4 = vld [vmem:[%s6759_s1 + $0x38] sm:$0xff] }
 0x453   :  { %3764 = vmatprep.mubr.msk.f32.mxu1 %vm47_vm0, %v1830_v51 }
 0x454   :  { %v811_v54 = vmul.f32 %v795_v2, %v773_v63  ;;  %1379 = vrot.lane.b32.xlu1 %v1338_v6, %s4066_s9  ;;  %v849_v61 = vmul.f32 %v795_v2, %v4175_v21  ;;  %v1834_v6 = vld [vmem:[%s6759_s1 + $0x40] sm:$0xff]  ;;  %v1836_v2 = vld [vmem:[%s6759_s1 + $0x50] sm:$0xff]  ;;  %v1837_v63 = vld [vmem:[%s6759_s1 + $0x58] sm:$0xff] }
 0x455   :  { %1381 = vrot.lane.b32.xlu0 %v1339_v8, %s4066_s9  ;;  %v1838_v8 = vld [vmem:[%s6759_s1 + $0x60] sm:$0xff] }
 0x456   :  { %v833_v58 = vsub.f32 %v4883_v43, %v811_v54  ;;  %3765 = vmatmul.mubr.msk.f32.gmra.mrb[4].mxu1 %vm47_vm0, %v1831_v9  ;;  %v1840_v54 = vld [vmem:[%s6759_s1 + $0x70] sm:$0xff] }
 0x457   :  { %3767 = vmatprep.mubr.msk.f32.mxu1 %vm47_vm0, %v1832_v36  ;;  %v389_v36 = vmul.f32 0.0625, %v4721_v50  ;;  %v391_v50 = vmul.f32 0.0625, %v4731_v14 }
 0x458   :  { %v865_v31 = vadd.f32 %v849_v61, %v833_v58  ;;  %1383 = vrot.lane.b32.xlu1 %v1340_v56, %s4066_s9  ;;  %v388_v56 = vmul.f32 0.0625, %v4791_v60  ;;  %v1415_v60 = vsel %vm241_vm1, %v4821_v26, 0.0  ;;  %v1421_v26 = vsel %vm241_vm1, %v4815_v1, 0.0 }
 0x459   :  { %1385 = vrot.lane.b32.xlu0 %v1341_v53, %s4066_s9 }
 0x45a   :  { %881 = vst.msk [vmem:[%s6758_s5] sm:$0xff] %vm47_vm0, %v865_v31  ;;  %3768 = vmatmul.mubr.msk.f32.gmra.mrb[6].mxu1 %vm47_vm0, %v1833_v4  ;;  %v404_v58 = vadd.f32 1e-05, %v388_v56  ;;  %v1409_v31 = vsel %vm241_vm1, %v4808_v22, 0.0 }
 0x45b   :  { %3770 = vmatprep.mubr.msk.f32.mxu1 %vm47_vm0, %v1834_v6 }
 0x45c   :  { %1387 = vrot.lane.b32.xlu1 %v1342_v49, %s4066_s9  ;;  %3806 = vrsqrt.f32 %v404_v58  ;;  %v390_v49 = vmul.f32 0.0625, %v4793_v47  ;;  %v776_v58 = vsel %vm30_vm2, %v4617_v12, %v4468_v7  ;;  %v393_v7 = vmul.f32 0.0625, %v4740_v29 }
 0x45d   :  { %1389 = vrot.lane.b32.xlu0 %v1343_v18, %s4066_s9  ;;  %v1418_v18 = vsel %vm241_vm1, %v4817_v5, 0.0  ;;  %v774_v5 = vsel %vm30_vm2, %v4586_v30, %v4462_v62 }
 0x45e   :  { %3771 = vmatmul.mubr.msk.f32.gmra.mrb[8].mxu1 %vm47_vm0, %v1835_v40  ;;  %v406_v15 = vadd.f32 1e-05, %v390_v49  ;;  %v409_v29 = vadd.f32 1e-05, %v393_v7 }
 0x45f   :  { %3773 = vmatprep.mubr.msk.f32.mxu1 %vm47_vm0, %v1836_v2  ;;  %v405_v2 = vadd.f32 1e-05, %v389_v36 }
 0x460   :  { %1391 = vrot.lane.b32.xlu1 %v1344_v44, %s4066_s9 }
 0x462   :  { %3774 = vmatmul.mubr.msk.f32.gmra.mrb[10].mxu1 %vm47_vm0, %v1837_v63 }
 0x463   :  { %3776 = vmatprep.mubr.msk.f32.mxu1 %vm47_vm0, %v1838_v8 }
 0x466   :  { %3777 = vmatmul.mubr.msk.f32.gmra.mrb[12].mxu1 %vm47_vm0, %v1839_v35  ;;  %v3807_v44 = vpop.eup %3806 }
 0x467   :  { %3779 = vmatprep.mubr.msk.f32.mxu1 %vm47_vm0, %v1840_v54 }
 0x46a   :  { %3780 = vmatmul.mubr.msk.f32.gmra.mrb[14].mxu1 %vm47_vm0, %v1841_v16 }
 0x478   :  { %v664_v61 = vpop.xlane.xlu1 %663 }
 0x479   :  { %v708_v53 = vmul.f32 0.0625, %v664_v61 }
 0x47b   :  { %v724_v52 = vadd.f32 1e-05, %v708_v53  ;;  %v407_v53 = vadd.f32 1e-05, %v391_v50 }
 0x47c   :  { %1410 = vadd.xlane.f32.xlu0 %v1409_v31  ;;  %v5009_v31 = vpop.xlane.xlu1 %1109 }
 0x47d   :  { %3808 = vrsqrt.f32 %v724_v52  ;;  %v392_v52 = vmul.f32 0.0625, %v4795_v48 }
 0x47e   :  { %3810 = vrsqrt.f32 %v406_v15 }
 0x480   :  { %1416 = vadd.xlane.f32.xlu0 %v1415_v60 }
 0x484   :  { %1413 = vadd.xlane.f32.xlu1 %v1412_v39  ;;  %1419 = vadd.xlane.f32.xlu0 %v1418_v18  ;;  %v670_v22 = vpop.xlane.xlu0 %669 }
 0x485   :  { %v710_v55 = vmul.f32 0.0625, %v670_v22  ;;  %v408_v22 = vadd.f32 1e-05, %v392_v52 }
 0x487   :  { %v3809_v0 = vpop.eup %3808  ;;  %v726_v51 = vadd.f32 1e-05, %v710_v55 }
 0x488   :  { %v758_v47 = vsel %vm30_vm2, %v3809_v0, %v3807_v44  ;;  %1422 = vadd.xlane.f32.xlu0 %v1421_v26  ;;  %v4990_v4 = vpop.xlane.xlu0 %1115  ;;  %v3811_v35 = vpop.eup %3810  ;;  %v394_v26 = vmul.f32 0.0625, %v4797_v19  ;;  %v395_v19 = vmul.f32 0.0625, %v4754_v11 }
 0x489   :  { %v796_v32 = vmul.f32 %v4865_v57, %v758_v47  ;;  %3812 = vrsqrt.f32 %v726_v51 }
 0x48a   :  { %3814 = vrsqrt.f32 %v405_v2  ;;  %v410_v2 = vadd.f32 1e-05, %v394_v26 }
 0x48b   :  { %v812_v9 = vmul.f32 %v796_v32, %v774_v5  ;;  %v850_v6 = vmul.f32 %v4171_v20, %v796_v32 }
 0x48d   :  { %v834_v1 = vsub.f32 %v4883_v43, %v812_v9 }
 0x48f   :  { %v866_v40 = vadd.f32 %v850_v6, %v834_v1  ;;  %v775_v1 = vsel %vm30_vm2, %v4656_v59, %v4416_v3  ;;  %v411_v3 = vadd.f32 1e-05, %v395_v19  ;;  %v396_v59 = vmul.f32 0.0625, %v4799_v10 }
 0x490   :  { %v667_v63 = vpop.xlane.xlu0 %666 }
 0x491   :  { %882 = vst.msk [vmem:[%s6758_s5 + $0x10] sm:$0xff] %vm47_vm0, %v866_v40  ;;  %v709_v8 = vmul.f32 0.0625, %v667_v63 }
 0x493   :  { %v3813_v62 = vpop.eup %3812  ;;  %v725_v30 = vadd.f32 1e-05, %v709_v8 }
 0x494   :  { %v760_v54 = vsel %vm30_vm2, %v3813_v62, %v3811_v35  ;;  %v5001_v56 = vpop.xlane.xlu0 %1112  ;;  %v3815_v48 = vpop.eup %3814 }
 0x495   :  { %v798_v16 = vmul.f32 %v4865_v57, %v760_v54  ;;  %3816 = vrsqrt.f32 %v725_v30 }
 0x496   :  { %3818 = vrsqrt.f32 %v407_v53 }
 0x497   :  { %v814_v61 = vmul.f32 %v798_v16, %v776_v58  ;;  %v852_v49 = vmul.f32 %v4179_v23, %v798_v16 }
 0x498   :  { %v673_v14 = vpop.xlane.xlu0 %672 }
 0x499   :  { %v836_v60 = vsub.f32 %v4883_v43, %v814_v61  ;;  %v711_v39 = vmul.f32 0.0625, %v673_v14 }
 0x49b   :  { %v868_v18 = vadd.f32 %v852_v49, %v836_v60  ;;  %v727_v15 = vadd.f32 1e-05, %v711_v39  ;;  %v6879_v49 = vld [vmem:[#allocation5_spill] sm:$0xff]  ;;  %v6880_v39 = vld [vmem:[#allocation20_spill] sm:$0xff] }
 0x49c   :  { %v676_v55 = vpop.xlane.xlu1 %675  ;;  %v5013_v44 = vpop.xlane.xlu0 %1118  ;;  %v777_v10 = vsel %vm30_vm2, %v6880_v39, %v6879_v49  ;;  %v6887_v49 = vld [vmem:[#allocation22_spill] sm:$0xff] }
 0x49d   :  { %884 = vst.msk [vmem:[%s6758_s5 + $0x30] sm:$0xff] %vm47_vm0, %v868_v18  ;;  %3820 = vrsqrt.f32 %v727_v15  ;;  %v712_v12 = vmul.f32 0.0625, %v676_v55  ;;  %v6881_v55 = vld [vmem:[#allocation44_spill] sm:$0xff] }
 0x49e   :  { %3822 = vrsqrt.f32 %v408_v22  ;;  %v397_v7 = vmul.f32 0.0625, %v6881_v55 }
 0x49f   :  { %v3817_v0 = vpop.eup %3816  ;;  %v728_v51 = vadd.f32 1e-05, %v712_v12  ;;  %v412_v12 = vadd.f32 1e-05, %v396_v59 }
 0x4a0   :  { %v759_v47 = vsel %vm30_vm2, %v3817_v0, %v3815_v48  ;;  %v5023_v32 = vpop.xlane.xlu1 %1121  ;;  %v679_v5 = vpop.xlane.xlu0 %678 }
 0x4a1   :  { %v797_v9 = vmul.f32 %v4865_v57, %v759_v47  ;;  %3824 = vrsqrt.f32 %v728_v51  ;;  %v713_v36 = vmul.f32 0.0625, %v679_v5  ;;  %v3819_v50 = vpop.eup %3818  ;;  %v6882_v47 = vld [vmem:[#allocation2_spill] sm:$0xff] }
 0x4a2   :  { %3826 = vrsqrt.f32 %v409_v29 }
 0x4a3   :  { %v813_v6 = vmul.f32 %v797_v9, %v775_v1  ;;  %v729_v40 = vadd.f32 1e-05, %v713_v36  ;;  %v851_v62 = vmul.f32 %v797_v9, %v4183_v24  ;;  %v6883_v36 = vld [vmem:[#allocation11_spill] sm:$0xff] }
 0x4a4   :  { %v682_v63 = vpop.xlane.xlu1 %681  ;;  %v5031_v8 = vpop.xlane.xlu0 %1124  ;;  %v6884_v1 = vld [vmem:[#allocation35_spill] sm:$0xff] }
 0x4a5   :  { %v835_v35 = vsub.f32 %v4883_v43, %v813_v6  ;;  %v714_v30 = vmul.f32 0.0625, %v682_v63  ;;  %3828 = vrsqrt.f32 %v729_v40  ;;  %v778_v6 = vsel %vm30_vm2, %v6884_v1, %v6883_v36  ;;  %v6890_v36 = vld [vmem:[#allocation38_spill] sm:$0xff] }
 0x4a6   :  { %3830 = vrsqrt.f32 %v410_v2 }
 0x4a7   :  { %v3821_v54 = vpop.eup %3820  ;;  %v867_v16 = vadd.f32 %v851_v62, %v835_v35  ;;  %v730_v58 = vadd.f32 1e-05, %v714_v30  ;;  %v413_v62 = vadd.f32 1e-05, %v397_v7  ;;  %v6885_v30 = vld [vmem:[#allocation49_spill] sm:$0xff] }
 0x4a8   :  { %v761_v11 = vsel %vm30_vm2, %v3821_v54, %v3819_v50  ;;  %v5038_v61 = vpop.xlane.xlu1 %1127  ;;  %v685_v53 = vpop.xlane.xlu0 %684  ;;  %v398_v50 = vmul.f32 0.0625, %v6885_v30 }
 0x4a9   :  { %883 = vst.msk [vmem:[%s6758_s5 + $0x20] sm:$0xff] %vm47_vm0, %v867_v16  ;;  %v799_v52 = vmul.f32 %v4865_v57, %v761_v11  ;;  %3832 = vrsqrt.f32 %v730_v58  ;;  %v715_v14 = vmul.f32 0.0625, %v685_v53  ;;  %v3823_v60 = vpop.eup %3822 }
 0x4aa   :  { %3834 = vrsqrt.f32 %v411_v3 }
 0x4ab   :  { %v3825_v18 = vpop.eup %3824  ;;  %v815_v15 = vmul.f32 %v799_v52, %v777_v10  ;;  %v731_v22 = vadd.f32 1e-05, %v715_v14  ;;  %v853_v5 = vmul.f32 %v799_v52, %v6882_v47  ;;  %v6888_v10 = vld [vmem:[#allocation45_spill] sm:$0xff] }
 0x4ac   :  { %v762_v48 = vsel %vm30_vm2, %v3825_v18, %v3823_v60  ;;  %v688_v0 = vpop.xlane.xlu1 %687  ;;  %v5052_v51 = vpop.xlane.xlu0 %1130  ;;  %v6886_v60 = vld [vmem:[#allocation6_spill] sm:$0xff]  ;;  %v399_v18 = vmul.f32 0.0625, %v6888_v10 }
 0x4ad   :  { %v837_v26 = vsub.f32 %v4883_v43, %v815_v15  ;;  %v800_v29 = vmul.f32 %v4865_v57, %v762_v48  ;;  %v716_v9 = vmul.f32 0.0625, %v688_v0  ;;  %3836 = vrsqrt.f32 %v731_v22  ;;  %v3827_v40 = vpop.eup %3826 }
 0x4ae   :  { %3838 = vrsqrt.f32 %v412_v12  ;;  %v779_v39 = vsel %vm30_vm2, %v6887_v49, %v6886_v60  ;;  %v414_v22 = vadd.f32 1e-05, %v398_v50  ;;  %v6892_v49 = vld [vmem:[#allocation7_spill] sm:$0xff] }
 0x4af   :  { %v869_v19 = vadd.f32 %v853_v5, %v837_v26  ;;  %v816_v2 = vmul.f32 %v800_v29, %v778_v6  ;;  %v732_v63 = vadd.f32 1e-05, %v716_v9  ;;  %v3829_v35 = vpop.eup %3828  ;;  %v854_v3 = vmul.f32 %v4185_v25, %v800_v29  ;;  %v6889_v9 = vld [vmem:[#allocation13_spill] sm:$0xff] }
 0x4b0   :  { %v5062_v54 = vpop.xlane.xlu1 %1133  ;;  %v691_v16 = vpop.xlane.xlu0 %690  ;;  %v763_v59 = vsel %vm30_vm2, %v3829_v35, %v3827_v40  ;;  %v780_v1 = vsel %vm30_vm2, %v6890_v36, %v6889_v9  ;;  %v415_v35 = vadd.f32 1e-05, %v399_v18  ;;  %v6894_v18 = vld [vmem:[#allocation47_spill] sm:$0xff]  ;;  %v6895_v36 = vld [vmem:[#allocation14_spill] sm:$0xff] }
 0x4b1   :  { %885 = vst.msk [vmem:[%s6758_s5 + $0x40] sm:$0xff] %vm47_vm0, %v869_v19  ;;  %v838_v58 = vsub.f32 %v4883_v43, %v816_v2  ;;  %3840 = vrsqrt.f32 %v732_v63  ;;  %v3831_v11 = vpop.eup %3830  ;;  %v801_v53 = vmul.f32 %v4865_v57, %v763_v59  ;;  %v717_v52 = vmul.f32 0.0625, %v691_v16 }
 0x4b2   :  { %3842 = vrsqrt.f32 %v413_v62  ;;  %v6891_v62 = vld [vmem:[#allocation50_spill] sm:$0xff] }
 0x4b3   :  { %v3833_v14 = vpop.eup %3832  ;;  %v870_v15 = vadd.f32 %v854_v3, %v838_v58  ;;  %v817_v55 = vmul.f32 %v801_v53, %v779_v39  ;;  %v733_v12 = vadd.f32 1e-05, %v717_v52  ;;  %v855_v40 = vmul.f32 %v801_v53, %v4197_v28  ;;  %v6893_v39 = vld [vmem:[#allocation25_spill] sm:$0xff] }
 0x4b4   :  { %v764_v7 = vsel %vm30_vm2, %v3833_v14, %v3831_v11  ;;  %v694_v48 = vpop.xlane.xlu1 %693  ;;  %v5080_v0 = vpop.xlane.xlu0 %1136  ;;  %v400_v30 = vmul.f32 0.0625, %v6891_v62  ;;  %v781_v10 = vsel %vm30_vm2, %v6893_v39, %v6892_v49 }
 0x4b5   :  { %886 = vst.msk [vmem:[%s6758_s5 + $0x50] sm:$0xff] %vm47_vm0, %v870_v15  ;;  %v802_v26 = vmul.f32 %v4865_v57, %v764_v7  ;;  %v718_v5 = vmul.f32 0.0625, %v694_v48  ;;  %v3835_v29 = vpop.eup %3834  ;;  %v839_v6 = vsub.f32 %v4883_v43, %v817_v55  ;;  %3844 = vrsqrt.f32 %v733_v12 }
 0x4b6   :  { %3846 = vrsqrt.f32 %v414_v22  ;;  %v401_v15 = vmul.f32 0.0625, %v6894_v18  ;;  %v416_v55 = vadd.f32 1e-05, %v400_v30  ;;  %v6898_v18 = vld [vmem:[#allocation8_spill] sm:$0xff] }
 0x4b7   :  { %v818_v19 = vmul.f32 %v802_v26, %v780_v1  ;;  %v734_v2 = vadd.f32 1e-05, %v718_v5  ;;  %v3837_v63 = vpop.eup %3836  ;;  %v871_v50 = vadd.f32 %v855_v40, %v839_v6  ;;  %v856_v59 = vmul.f32 %v4193_v27, %v802_v26  ;;  %v6896_v1 = vld [vmem:[#allocation40_spill] sm:$0xff] }
 0x4b8   :  { %v5094_v16 = vpop.xlane.xlu1 %1139  ;;  %v697_v58 = vpop.xlane.xlu0 %696  ;;  %v765_v11 = vsel %vm30_vm2, %v3837_v63, %v3835_v29  ;;  %v782_v6 = vsel %vm30_vm2, %v6896_v1, %v6895_v36  ;;  %v417_v30 = vadd.f32 1e-05, %v401_v15  ;;  %v6899_v15 = vld [vmem:[#allocation28_spill] sm:$0xff] }
 0x4b9   :  { %v840_v3 = vsub.f32 %v4883_v43, %v818_v19  ;;  %3848 = vrsqrt.f32 %v734_v2  ;;  %v3839_v53 = vpop.eup %3838  ;;  %887 = vst.msk [vmem:[%s6758_s5 + $0x60] sm:$0xff] %vm47_vm0, %v871_v50  ;;  %v803_v52 = vmul.f32 %v4865_v57, %v765_v11  ;;  %v719_v14 = vmul.f32 0.0625, %v697_v58  ;;  %v6897_v50 = vld [vmem:[#allocation51_spill] sm:$0xff] }
 0x4ba   :  { %3850 = vrsqrt.f32 %v415_v35  ;;  %v402_v58 = vmul.f32 0.0625, %v6897_v50 }
 0x4bb   :  { %v3841_v60 = vpop.eup %3840  ;;  %v872_v22 = vadd.f32 %v856_v59, %v840_v3  ;;  %v819_v7 = vmul.f32 %v803_v52, %v781_v10  ;;  %v735_v48 = vadd.f32 1e-05, %v719_v14  ;;  %v857_v19 = vmul.f32 %v803_v52, %v4225_v34 }
 0x4bc   :  { %v766_v12 = vsel %vm30_vm2, %v3841_v60, %v3839_v53  ;;  %v700_v26 = vpop.xlane.xlu1 %699  ;;  %v5112_v5 = vpop.xlane.xlu0 %1142 }
 0x4bd   :  { %888 = vst.msk [vmem:[%s6758_s5 + $0x70] sm:$0xff] %vm47_vm0, %v872_v22  ;;  %v804_v29 = vmul.f32 %v4865_v57, %v766_v12  ;;  %v720_v9 = vmul.f32 0.0625, %v700_v26  ;;  %v841_v40 = vsub.f32 %v4883_v43, %v819_v7  ;;  %3852 = vrsqrt.f32 %v735_v48  ;;  %v3843_v2 = vpop.eup %3842 }
 0x4be   :  { %3854 = vrsqrt.f32 %v416_v55  ;;  %v783_v22 = vsel %vm30_vm2, %v6899_v15, %v6898_v18  ;;  %v418_v7 = vadd.f32 1e-05, %v402_v58  ;;  %v6902_v18 = vld [vmem:[#allocation9_spill] sm:$0xff]  ;;  %v6903_v15 = vld [vmem:[#allocation31_spill] sm:$0xff] }
 0x4bf   :  { %v820_v63 = vmul.f32 %v804_v29, %v782_v6  ;;  %v736_v35 = vadd.f32 1e-05, %v720_v9  ;;  %v3845_v62 = vpop.eup %3844  ;;  %v873_v3 = vadd.f32 %v857_v19, %v841_v40  ;;  %v858_v14 = vmul.f32 %v4221_v33, %v804_v29  ;;  %v6900_v6 = vld [vmem:[#allocation16_spill] sm:$0xff]  ;;  %v6901_v40 = vld [vmem:[#allocation41_spill] sm:$0xff] }
 0x4c0   :  { %v5126_v59 = vpop.xlane.xlu1 %1145  ;;  %v703_v11 = vpop.xlane.xlu0 %702  ;;  %v767_v52 = vsel %vm30_vm2, %v3845_v62, %v3843_v2  ;;  %v784_v19 = vsel %vm30_vm2, %v6901_v40, %v6900_v6  ;;  %v6904_v6 = vld [vmem:[#allocation17_spill] sm:$0xff]  ;;  %v6905_v40 = vld [vmem:[#allocation43_spill] sm:$0xff] }
 0x4c1   :  { %v842_v53 = vsub.f32 %v4883_v43, %v820_v63  ;;  %3856 = vrsqrt.f32 %v736_v35  ;;  %v3847_v60 = vpop.eup %3846  ;;  %889 = vst.msk [vmem:[%s6758_s5 + $0x80] sm:$0xff] %vm47_vm0, %v873_v3  ;;  %v805_v49 = vmul.f32 %v4865_v57, %v767_v52  ;;  %v721_v39 = vmul.f32 0.0625, %v703_v11 }
 0x4c2   :  { %3858 = vrsqrt.f32 %v417_v30 }
 0x4c3   :  { %v3849_v10 = vpop.eup %3848  ;;  %v874_v55 = vadd.f32 %v858_v14, %v842_v53  ;;  %v821_v12 = vmul.f32 %v805_v49, %v783_v22  ;;  %v737_v26 = vadd.f32 1e-05, %v721_v39  ;;  %v859_v63 = vmul.f32 %v805_v49, %v4245_v38 }
 0x4c4   :  { %v768_v48 = vsel %vm30_vm2, %v3849_v10, %v3847_v60  ;;  %v706_v29 = vpop.xlane.xlu1 %705  ;;  %v5143_v9 = vpop.xlane.xlu0 %1148  ;;  %v785_v22 = vsel %vm30_vm2, %v6903_v15, %v6902_v18  ;;  %v6906_v15 = vld [vmem:[#allocation10_spill] sm:$0xff] }
 0x4c5   :  { %890 = vst.msk [vmem:[%s6758_s5 + $0x90] sm:$0xff] %vm47_vm0, %v874_v55  ;;  %v806_v36 = vmul.f32 %v4865_v57, %v768_v48  ;;  %v722_v1 = vmul.f32 0.0625, %v706_v29  ;;  %v843_v2 = vsub.f32 %v4883_v43, %v821_v12  ;;  %3860 = vrsqrt.f32 %v737_v26  ;;  %v3851_v35 = vpop.eup %3850 }
 0x4c6   :  { %3862 = vrsqrt.f32 %v418_v7 }
 0x4c7   :  { %v822_v62 = vmul.f32 %v806_v36, %v784_v19  ;;  %v738_v30 = vadd.f32 1e-05, %v722_v1  ;;  %v3853_v50 = vpop.eup %3852  ;;  %v875_v58 = vadd.f32 %v859_v63, %v843_v2  ;;  %v860_v14 = vmul.f32 %v4241_v37, %v806_v36 }
 0x4c8   :  { %v5156_v3 = vpop.xlane.xlu1 %1151  ;;  %v1374_v11 = vpop.permute.xlu0 %1373  ;;  %v769_v52 = vsel %vm30_vm2, %v3853_v50, %v3851_v35  ;;  %v786_v19 = vsel %vm30_vm2, %v6905_v40, %v6904_v6  ;;  %v6908_v40 = vld [vmem:[#allocation23_spill] sm:$0xff] }
 0x4c9   :  { %v844_v53 = vsub.f32 %v4883_v43, %v822_v62  ;;  %3864 = vrsqrt.f32 %v738_v30  ;;  %v3855_v60 = vpop.eup %3854  ;;  %891 = vst.msk [vmem:[%s6758_s5 + $0xa0] sm:$0xff] %vm47_vm0, %v875_v58  ;;  %v807_v49 = vmul.f32 %v4865_v57, %v769_v52  ;;  %v1427_v39 = vsel %vm241_vm1, %v1374_v11, 0.0 }
 0x4ca   :  { %1428 = vadd.xlane.f32.xlu0 %v1427_v39 }
 0x4cb   :  { %v3857_v10 = vpop.eup %3856  ;;  %v876_v55 = vadd.f32 %v860_v14, %v844_v53  ;;  %v823_v7 = vmul.f32 %v807_v49, %v785_v22  ;;  %v861_v63 = vmul.f32 %v807_v49, %v4265_v42  ;;  %v6907_v22 = vld [vmem:[#allocation34_spill] sm:$0xff] }
 0x4cc   :  { %v770_v12 = vsel %vm30_vm2, %v3857_v10, %v3855_v60  ;;  %v1372_v48 = vpop.permute.xlu1 %1371  ;;  %v1378_v26 = vpop.permute.xlu0 %1377 }
 0x4cd   :  { %892 = vst.msk [vmem:[%s6758_s5 + $0xb0] sm:$0xff] %vm47_vm0, %v876_v55  ;;  %v808_v29 = vmul.f32 %v4865_v57, %v770_v12  ;;  %v1424_v36 = vsel %vm241_vm1, %v1372_v48, 0.0  ;;  %v1433_v1 = vsel %vm241_vm1, %v1378_v26, 0.0  ;;  %v845_v2 = vsub.f32 %v4883_v43, %v823_v7  ;;  %v3859_v35 = vpop.eup %3858 }
 0x4ce   :  { %1425 = vadd.xlane.f32.xlu1 %v1424_v36  ;;  %1434 = vadd.xlane.f32.xlu0 %v1433_v1  ;;  %v787_v55 = vsel %vm30_vm2, %v6907_v22, %v6906_v15  ;;  %v1153_v15 = vmul.f32 0.0625, %v4974_v13  ;;  %v1157_v13 = vmul.f32 0.0625, %v5013_v44 }
 0x4cf   :  { %v824_v62 = vmul.f32 %v808_v29, %v786_v19  ;;  %v3861_v30 = vpop.eup %3860  ;;  %v877_v50 = vadd.f32 %v861_v63, %v845_v2  ;;  %v862_v58 = vmul.f32 %v4261_v41, %v808_v29  ;;  %v6909_v19 = vld [vmem:[#allocation46_spill] sm:$0xff] }
 0x4d0   :  { %v1376_v11 = vpop.permute.xlu1 %1375  ;;  %v1382_v53 = vpop.permute.xlu0 %1381  ;;  %v771_v52 = vsel %vm30_vm2, %v3861_v30, %v3859_v35  ;;  %v788_v2 = vsel %vm30_vm2, %v6909_v19, %v6908_v40  ;;  %v1169_v22 = vadd.f32 1e-05, %v1153_v15 }
 0x4d1   :  { %v846_v14 = vsub.f32 %v4883_v43, %v824_v62  ;;  %v1430_v60 = vsel %vm241_vm1, %v1376_v11, 0.0  ;;  %v1439_v39 = vsel %vm241_vm1, %v1382_v53, 0.0  ;;  %v3863_v49 = vpop.eup %3862  ;;  %893 = vst.msk [vmem:[%s6758_s5 + $0xc0] sm:$0xff] %vm47_vm0, %v877_v50  ;;  %v809_v10 = vmul.f32 %v4865_v57, %v771_v52 }
 0x4d2   :  { %1431 = vadd.xlane.f32.xlu1 %v1430_v60  ;;  %1440 = vadd.xlane.f32.xlu0 %v1439_v39  ;;  %3866 = vrsqrt.f32 %v1169_v22 }
 0x4d3   :  { %v3865_v18 = vpop.eup %3864  ;;  %v878_v7 = vadd.f32 %v862_v58, %v846_v14  ;;  %v825_v12 = vmul.f32 %v809_v10, %v787_v55  ;;  %v863_v35 = vmul.f32 %v809_v10, %v4285_v46 }
 0x4d4   :  { %v772_v48 = vsel %vm30_vm2, %v3865_v18, %v3863_v49  ;;  %v1380_v26 = vpop.permute.xlu1 %1379  ;;  %v1386_v29 = vpop.permute.xlu0 %1385 }
 0x4d5   :  { %894 = vst.msk [vmem:[%s6758_s5 + $0xd0] sm:$0xff] %vm47_vm0, %v878_v7  ;;  %v810_v36 = vmul.f32 %v4865_v57, %v772_v48  ;;  %v1436_v1 = vsel %vm241_vm1, %v1380_v26, 0.0  ;;  %v1445_v6 = vsel %vm241_vm1, %v1386_v29, 0.0  ;;  %v847_v63 = vsub.f32 %v4883_v43, %v825_v12 }
 0x4d6   :  { %1437 = vadd.xlane.f32.xlu1 %v1436_v1  ;;  %1446 = vadd.xlane.f32.xlu0 %v1445_v6  ;;  %v1154_v12 = vmul.f32 0.0625, %v5009_v31  ;;  %v1155_v48 = vmul.f32 0.0625, %v5001_v56  ;;  %v1156_v29 = vmul.f32 0.0625, %v4990_v4  ;;  %v1173_v4 = vadd.f32 1e-05, %v1157_v13 }
 0x4d7   :  { %v826_v62 = vmul.f32 %v810_v36, %v788_v2  ;;  %v879_v30 = vadd.f32 %v863_v35, %v847_v63  ;;  %v864_v53 = vmul.f32 %v4281_v45, %v810_v36 }
 0x4d8   :  { %v1384_v50 = vpop.permute.xlu1 %1383  ;;  %v1390_v58 = vpop.permute.xlu0 %1389  ;;  %v1170_v6 = vadd.f32 1e-05, %v1154_v12  ;;  %v1171_v40 = vadd.f32 1e-05, %v1155_v48  ;;  %v1172_v2 = vadd.f32 1e-05, %v1156_v29 }
 0x4d9   :  { %v848_v11 = vsub.f32 %v4883_v43, %v826_v62  ;;  %v1442_v14 = vsel %vm241_vm1, %v1384_v50, 0.0  ;;  %v1451_v52 = vsel %vm241_vm1, %v1390_v58, 0.0  ;;  %895 = vst.msk [vmem:[%s6758_s5 + $0xe0] sm:$0xff] %vm47_vm0, %v879_v30 }
 0x4da   :  { %1443 = vadd.xlane.f32.xlu1 %v1442_v14  ;;  %1452 = vadd.xlane.f32.xlu0 %v1451_v52 }
 0x4db   :  { %v880_v60 = vadd.f32 %v864_v53, %v848_v11 }
 0x4dc   :  { %v1388_v39 = vpop.permute.xlu1 %1387  ;;  %v3867_v11 = vpop.eup %3866 }
 0x4dd   :  { %896 = vst.msk [vmem:[%s6758_s5 + $0xf0] sm:$0xff] %vm47_vm0, %v880_v60  ;;  %v1448_v49 = vsel %vm241_vm1, %v1388_v39, 0.0  ;;  %v6910_v39 = vld [vmem:[#allocation15_spill] sm:$0xff] }
 0x4de   :  { %1449 = vadd.xlane.f32.xlu1 %v1448_v49 }
 0x4e0   :  { %v1392_v10 = vpop.permute.xlu1 %1391 }
 0x4e1   :  { %v1454_v18 = vsel %vm241_vm1, %v1392_v10, 0.0 }
 0x4e2   :  { %1455 = vadd.xlane.f32.xlu1 %v1454_v18 }
 0x509   :  { %v1411_v55 = vpop.xlane.xlu0 %1410 }
 0x50a   :  { %v1457_v7 = vmul.f32 0.0625, %v1411_v55 }
 0x50c   :  { %v1473_v26 = vadd.f32 1e-05, %v1457_v7 }
 0x50d   :  { %v1417_v36 = vpop.xlane.xlu0 %1416 }
 0x50e   :  { %3868 = vrsqrt.f32 %v1473_v26  ;;  %v1459_v1 = vmul.f32 0.0625, %v1417_v36 }
 0x510   :  { %v1475_v19 = vadd.f32 1e-05, %v1459_v1 }
 0x511   :  { %v1414_v63 = vpop.xlane.xlu1 %1413  ;;  %v1420_v35 = vpop.xlane.xlu0 %1419 }
 0x512   :  { %3870 = vrsqrt.f32 %v1475_v19  ;;  %v1458_v62 = vmul.f32 0.0625, %v1414_v63  ;;  %v1460_v31 = vmul.f32 0.0625, %v1420_v35  ;;  %v6912_v35 = vld [vmem:[#allocation26_spill] sm:$0xff] }
 0x513   :  { %3872 = vrsqrt.f32 %v1170_v6 }
 0x514   :  { %3874 = vrsqrt.f32 %v1171_v40  ;;  %v1474_v56 = vadd.f32 1e-05, %v1458_v62  ;;  %v1476_v30 = vadd.f32 1e-05, %v1460_v31  ;;  %v6913_v31 = vld [vmem:[#allocation19_spill] sm:$0xff] }
 0x515   :  { %3876 = vrsqrt.f32 %v1172_v2  ;;  %v1423_v50 = vpop.xlane.xlu0 %1422  ;;  %v6911_v2 = vld [vmem:[#allocation18_spill] sm:$0xff] }
 0x516   :  { %3878 = vrsqrt.f32 %v1474_v56  ;;  %v1461_v58 = vmul.f32 0.0625, %v1423_v50 }
 0x517   :  { %3880 = vrsqrt.f32 %v1476_v30  ;;  %v6914_v30 = vld [vmem:[#allocation21_spill] sm:$0xff] }
 0x518   :  { %v3869_v53 = vpop.eup %3868  ;;  %v1477_v14 = vadd.f32 1e-05, %v1461_v58  ;;  %3882 = vrsqrt.f32 %v1173_v4 }
 0x519   :  { %v1505_v44 = vsel %vm30_vm2, %v3869_v53, %v3867_v11 }
 0x51a   :  { %3884 = vrsqrt.f32 %v1477_v14  ;;  %v1537_v52 = vmul.f32 %v4865_v57, %v1505_v44 }
 0x51c   :  { %v3871_v60 = vpop.eup %3870  ;;  %1601 = vrot.lane.b32.xlu0 %v1537_v52, %s4067_s11  ;;  %v1553_v49 = vmul.f32 %v1537_v52, %v6910_v39 }
 0x51d   :  { %v3873_v10 = vpop.eup %3872 }
 0x51e   :  { %v3875_v18 = vpop.eup %3874  ;;  %v1569_v15 = vsub.f32 %v4883_v43, %v1553_v49 }
 0x51f   :  { %v3877_v22 = vpop.eup %3876  ;;  %v1507_v55 = vsel %vm30_vm2, %v3871_v60, %v3875_v18 }
 0x520   :  { %v3879_v7 = vpop.eup %3878  ;;  %1681 = vrot.lane.b32.xlu0 %v1569_v15, %s4067_s11  ;;  %v1539_v36 = vmul.f32 %v4865_v57, %v1507_v55 }
 0x521   :  { %v3881_v12 = vpop.eup %3880  ;;  %v1506_v48 = vsel %vm30_vm2, %v3879_v7, %v3873_v10 }
 0x522   :  { %v1538_v26 = vmul.f32 %v4865_v57, %v1506_v48  ;;  %v1508_v29 = vsel %vm30_vm2, %v3881_v12, %v3877_v22  ;;  %v3883_v1 = vpop.eup %3882  ;;  %v1555_v56 = vmul.f32 %v1539_v36, %v6913_v31  ;;  %v1159_v12 = vmul.f32 0.0625, %v5031_v8 }
 0x523   :  { %v1540_v6 = vmul.f32 %v4865_v57, %v1508_v29  ;;  %v1158_v48 = vmul.f32 0.0625, %v5023_v32 }
 0x524   :  { %v3885_v40 = vpop.eup %3884  ;;  %1603 = vrot.lane.b32.xlu1 %v1538_v26, %s4067_s11  ;;  %v1554_v62 = vmul.f32 %v1538_v26, %v6912_v35  ;;  %v1571_v58 = vsub.f32 %v4883_v43, %v1555_v56  ;;  %v1175_v26 = vadd.f32 1e-05, %v1159_v12 }
 0x525   :  { %v1509_v19 = vsel %vm30_vm2, %v3885_v40, %v3883_v1  ;;  %v5256_v13 = vmul.f32 %v1540_v6, %v6911_v2  ;;  %v1174_v1 = vadd.f32 1e-05, %v1158_v48  ;;  %v1163_v48 = vmul.f32 0.0625, %v5080_v0  ;;  %v5314_v0 = vld [vmem:[%s6756_s3] ss:$0 sm:$0xff] }
 0x526   :  { %v1541_v63 = vmul.f32 %v4865_v57, %v1509_v19  ;;  %v1570_v50 = vsub.f32 %v4883_v43, %v1554_v62  ;;  %v5270_v57 = vpop.f32.mrb[0].mxu1  ;;  %3886 = vrsqrt.f32 %v1175_v26  ;;  %v1160_v62 = vmul.f32 0.0625, %v5038_v61 }
 0x527   :  { %v5273_v11 = vpop.f32.mrb[1].mxu1 }
 0x528   :  { %1607 = vrot.lane.b32.xlu1 %v1540_v6, %s4067_s11  ;;  %1609 = vrot.lane.b32.xlu0 %v1541_v63, %s4067_s11  ;;  %v5264_v4 = vmul.f32 %v1541_v63, %v6914_v30  ;;  %6915 = vst [vmem:[#allocation5_spill] sm:$0xff] %v5273_v11  ;;  %v5275_v53 = vpop.f32.mrb[2].mxu1  ;;  %v1161_v6 = vmul.f32 0.0625, %v5052_v51  ;;  %v1176_v51 = vadd.f32 1e-05, %v1160_v62 }
 0x529   :  { %6916 = vst [vmem:[#allocation20_spill] sm:$0xff] %v5275_v53  ;;  %v5277_v14 = vpop.f32.mrb[3].mxu1 }
 0x52a   :  { %6917 = vst [vmem:[#allocation44_spill] sm:$0xff] %v5277_v14  ;;  %v5279_v44 = vpop.f32.mrb[4].mxu1  ;;  %v1177_v8 = vadd.f32 1e-05, %v1161_v6 }
 0x52b   :  { %6918 = vst [vmem:[#allocation2_spill] sm:$0xff] %v5279_v44  ;;  %v5281_v52 = vpop.f32.mrb[5].mxu1 }
 0x52c   :  { %1683 = vrot.lane.b32.xlu1 %v1570_v50, %s4067_s11  ;;  %1685 = vrot.lane.b32.xlu0 %v1571_v58, %s4067_s11  ;;  %6919 = vst [vmem:[#allocation11_spill] sm:$0xff] %v5281_v52 }
 0x52d   :  { %v5283_v60 = vpop.f32.mrb[6].mxu1 }
 0x52e   :  { %6920 = vst [vmem:[#allocation35_spill] sm:$0xff] %v5283_v60  ;;  %v5285_v43 = vpop.f32.mrb[7].mxu1 }
 0x530   :  { %1605 = vrot.lane.b32.xlu1 %v1539_v36, %s4067_s11 }
 0x531   :  { %v5287_v39 = vpop.f32.mrb[8].mxu1 }
 0x532   :  { %6921 = vst [vmem:[#allocation49_spill] sm:$0xff] %v5287_v39  ;;  %v5289_v49 = vpop.f32.mrb[9].mxu1 }
 0x533   :  { %6922 = vst [vmem:[#allocation6_spill] sm:$0xff] %v5289_v49 }
 0x535   :  { %v5291_v10 = vpop.f32.mrb[10].mxu1 }
 0x536   :  { %6923 = vst [vmem:[#allocation22_spill] sm:$0xff] %v5291_v10  ;;  %v5293_v18 = vpop.f32.mrb[11].mxu1 }
 0x537   :  { %6924 = vst [vmem:[#allocation45_spill] sm:$0xff] %v5293_v18 }
 0x539   :  { %v5295_v15 = vpop.f32.mrb[12].mxu1 }
 0x53a   :  { %6925 = vst [vmem:[#allocation13_spill] sm:$0xff] %v5295_v15  ;;  %v5297_v22 = vpop.f32.mrb[13].mxu1 }
 0x53b   :  { %6926 = vst [vmem:[#allocation38_spill] sm:$0xff] %v5297_v22 }
 0x53d   :  { %v5299_v55 = vpop.f32.mrb[14].mxu1 }
 0x53e   :  { %6927 = vst [vmem:[#allocation50_spill] sm:$0xff] %v5299_v55  ;;  %v5301_v7 = vpop.f32.mrb[15].mxu1 }
 0x53f   :  { %6928 = vst [vmem:[#allocation7_spill] sm:$0xff] %v5301_v7 }
 0x557   :  { %v1429_v29 = vpop.xlane.xlu0 %1428 }
 0x558   :  { %v1463_v36 = vmul.f32 0.0625, %v1429_v29 }
 0x55a   :  { %v1479_v40 = vadd.f32 1e-05, %v1463_v36 }
 0x55b   :  { %v1426_v19 = vpop.xlane.xlu1 %1425  ;;  %v1435_v63 = vpop.xlane.xlu0 %1434 }
 0x55c   :  { %v1462_v2 = vmul.f32 0.0625, %v1426_v19  ;;  %3888 = vrsqrt.f32 %v1479_v40  ;;  %v1465_v35 = vmul.f32 0.0625, %v1435_v63  ;;  %v3887_v40 = vpop.eup %3886  ;;  %v1179_v19 = vadd.f32 1e-05, %v1163_v48 }
 0x55d   :  { %3890 = vrsqrt.f32 %v1174_v1  ;;  %v1162_v1 = vmul.f32 0.0625, %v5062_v54 }
 0x55e   :  { %v1478_v31 = vadd.f32 1e-05, %v1462_v2  ;;  %v1481_v56 = vadd.f32 1e-05, %v1465_v35 }
 0x55f   :  { %v1432_v32 = vpop.xlane.xlu1 %1431  ;;  %v1441_v50 = vpop.xlane.xlu0 %1440 }
 0x560   :  { %3892 = vrsqrt.f32 %v1478_v31  ;;  %v1464_v30 = vmul.f32 0.0625, %v1432_v32  ;;  %v1467_v58 = vmul.f32 0.0625, %v1441_v50  ;;  %v1178_v32 = vadd.f32 1e-05, %v1162_v1 }
 0x561   :  { %3894 = vrsqrt.f32 %v1481_v56 }
 0x562   :  { %v1480_v12 = vadd.f32 1e-05, %v1464_v30  ;;  %3896 = vrsqrt.f32 %v1177_v8  ;;  %v1483_v36 = vadd.f32 1e-05, %v1467_v58  ;;  %v1165_v30 = vmul.f32 0.0625, %v5112_v5 }
 0x563   :  { %v1438_v26 = vpop.xlane.xlu1 %1437  ;;  %v1447_v61 = vpop.xlane.xlu0 %1446 }
 0x564   :  { %3898 = vrsqrt.f32 %v1480_v12  ;;  %v1466_v29 = vmul.f32 0.0625, %v1438_v26  ;;  %v1469_v63 = vmul.f32 0.0625, %v1447_v61  ;;  %v5325_v26 = vld [vmem:[%s6757_s4] ss:$0 sm:$0xff]  ;;  %v1181_v1 = vadd.f32 1e-05, %v1165_v30 }
 0x565   :  { %3900 = vrsqrt.f32 %v1176_v51 }
 0x566   :  { %v3889_v6 = vpop.eup %3888  ;;  %v1482_v2 = vadd.f32 1e-05, %v1466_v29  ;;  %3902 = vrsqrt.f32 %v1483_v36  ;;  %v1485_v58 = vadd.f32 1e-05, %v1469_v63  ;;  %v1573_v29 = vsub.f32 %v5325_v26, %v5264_v4 }
 0x567   :  { %v1511_v35 = vsel %vm30_vm2, %v3889_v6, %v3887_v40  ;;  %v3891_v62 = vpop.eup %3890  ;;  %v1444_v31 = vpop.xlane.xlu1 %1443  ;;  %3904 = vrsqrt.f32 %v1179_v19  ;;  %v1164_v36 = vmul.f32 0.0625, %v5094_v16 }
 0x568   :  { %v1543_v8 = vmul.f32 %v5314_v0, %v1511_v35  ;;  %3906 = vrsqrt.f32 %v1482_v2  ;;  %v1468_v51 = vmul.f32 0.0625, %v1444_v31  ;;  %v1453_v61 = vpop.xlane.xlu0 %1452  ;;  %v1572_v2 = vsub.f32 %v5325_v26, %v5256_v13 }
 0x569   :  { %3908 = vrsqrt.f32 %v1178_v32  ;;  %v1471_v4 = vmul.f32 0.0625, %v1453_v61 }
 0x56a   :  { %v3893_v56 = vpop.eup %3892  ;;  %1613 = vrot.lane.b32.xlu0 %v1543_v8, %s4067_s11  ;;  %3910 = vrsqrt.f32 %v1485_v58  ;;  %v1484_v19 = vadd.f32 1e-05, %v1468_v51 }
 0x56b   :  { %v3895_v54 = vpop.eup %3894  ;;  %v1510_v50 = vsel %vm30_vm2, %v3893_v56, %v3891_v62  ;;  %v1450_v63 = vpop.xlane.xlu1 %1449  ;;  %v6929_v62 = vld [vmem:[#allocation24_spill] sm:$0xff]  ;;  %v1180_v56 = vadd.f32 1e-05, %v1164_v36  ;;  %3912 = vrsqrt.f32 %v1181_v1 }
 0x56c   :  { %v1542_v12 = vmul.f32 %v5314_v0, %v1510_v50  ;;  %v3897_v48 = vpop.eup %3896  ;;  %v1559_v31 = vmul.f32 %v1543_v8, %v6929_v62  ;;  %3914 = vrsqrt.f32 %v1484_v19  ;;  %v1470_v13 = vmul.f32 0.0625, %v1450_v63  ;;  %v6930_v50 = vld [vmem:[#allocation29_spill] sm:$0xff] }
 0x56d   :  { %v1513_v40 = vsel %vm30_vm2, %v3895_v54, %v3897_v48  ;;  %v1167_v54 = vmul.f32 0.0625, %v5143_v9  ;;  %v1487_v48 = vadd.f32 1e-05, %v1471_v4  ;;  %3916 = vrsqrt.f32 %v1180_v56 }
 0x56e   :  { %v3899_v5 = vpop.eup %3898  ;;  %1611 = vrot.lane.b32.xlu1 %v1542_v12, %s4067_s11  ;;  %1689 = vrot.lane.b32.xlu0 %v1573_v29, %s4067_s11  ;;  %v1545_v35 = vmul.f32 %v5314_v0, %v1513_v40  ;;  %v1558_v58 = vmul.f32 %v1542_v12, %v6930_v50  ;;  %v1575_v29 = vsub.f32 %v5325_v26, %v1559_v31  ;;  %v1486_v40 = vadd.f32 1e-05, %v1470_v13  ;;  %v6932_v31 = vld [vmem:[#allocation32_spill] sm:$0xff] }
 0x56f   :  { %v3901_v6 = vpop.eup %3900  ;;  %v1183_v36 = vadd.f32 1e-05, %v1167_v54  ;;  %3918 = vrsqrt.f32 %v1487_v48  ;;  %v1456_v1 = vpop.xlane.xlu1 %1455 }
 0x570   :  { %v1512_v16 = vsel %vm30_vm2, %v3899_v5, %v3901_v6  ;;  %v3903_v32 = vpop.eup %3902  ;;  %v1166_v5 = vmul.f32 0.0625, %v5126_v59  ;;  %v1574_v12 = vsub.f32 %v5325_v26, %v1558_v58  ;;  %v6931_v59 = vld [vmem:[#allocation27_spill] sm:$0xff] }
 0x571   :  { %v1544_v30 = vmul.f32 %v5314_v0, %v1512_v16  ;;  %v3905_v51 = vpop.eup %3904  ;;  %3920 = vrsqrt.f32 %v1183_v36  ;;  %v1472_v16 = vmul.f32 0.0625, %v1456_v1 }
 0x572   :  { %1687 = vrot.lane.b32.xlu1 %v1572_v2, %s4067_s11  ;;  %1617 = vrot.lane.b32.xlu0 %v1545_v35, %s4067_s11  ;;  %v3907_v8 = vpop.eup %3906  ;;  %v1515_v9 = vsel %vm30_vm2, %v3903_v32, %v3905_v51  ;;  %v1561_v2 = vmul.f32 %v1545_v35, %v6931_v59  ;;  %v1182_v63 = vadd.f32 1e-05, %v1166_v5  ;;  %3922 = vrsqrt.f32 %v1486_v40 }
 0x573   :  { %v3909_v61 = vpop.eup %3908  ;;  %v1547_v6 = vmul.f32 %v5314_v0, %v1515_v9  ;;  %v1560_v56 = vmul.f32 %v1544_v30, %v6932_v31  ;;  %v1168_v35 = vmul.f32 0.0625, %v5156_v3  ;;  %v1488_v51 = vadd.f32 1e-05, %v1472_v16  ;;  %v6935_v16 = vld [vmem:[#allocation33_spill] sm:$0xff] }
 0x574   :  { %v1514_v19 = vsel %vm30_vm2, %v3907_v8, %v3909_v61  ;;  %v3911_v4 = vpop.eup %3910  ;;  %v1577_v54 = vsub.f32 %v5325_v26, %v1561_v2  ;;  %3924 = vrsqrt.f32 %v1182_v63  ;;  %v6933_v8 = vld [vmem:[#allocation30_spill] sm:$0xff]  ;;  %v6934_v61 = vld [vmem:[#allocation36_spill] sm:$0xff] }
 0x575   :  { %v1546_v62 = vmul.f32 %v5314_v0, %v1514_v19  ;;  %v3913_v32 = vpop.eup %3912  ;;  %v1576_v48 = vsub.f32 %v5325_v26, %v1560_v56  ;;  %v1563_v5 = vmul.f32 %v1547_v6, %v6933_v8  ;;  %v1184_v9 = vadd.f32 1e-05, %v1168_v35  ;;  %v6936_v56 = vld [vmem:[#allocation39_spill] sm:$0xff]  ;;  %v6938_v8 = vld [vmem:[#allocation42_spill] sm:$0xff] }
 0x576   :  { %1615 = vrot.lane.b32.xlu1 %v1544_v30, %s4067_s11  ;;  %1693 = vrot.lane.b32.xlu0 %v1575_v29, %s4067_s11  ;;  %v3915_v13 = vpop.eup %3914  ;;  %v1517_v50 = vsel %vm30_vm2, %v3911_v4, %v3913_v32  ;;  %3926 = vrsqrt.f32 %v1488_v51 }
 0x577   :  { %v3917_v58 = vpop.eup %3916  ;;  %v1549_v30 = vmul.f32 %v5314_v0, %v1517_v50  ;;  %v1562_v40 = vmul.f32 %v1546_v62, %v6934_v61  ;;  %v1579_v1 = vsub.f32 %v5325_v26, %v1563_v5  ;;  %3928 = vrsqrt.f32 %v1184_v9 }
 0x578   :  { %v1516_v29 = vsel %vm30_vm2, %v3915_v13, %v3917_v58  ;;  %v6937_v13 = vld [vmem:[#allocation37_spill] sm:$0xff] }
 0x579   :  { %v3919_v3 = vpop.eup %3918  ;;  %v1548_v36 = vmul.f32 %v5314_v0, %v1516_v29  ;;  %v1578_v2 = vsub.f32 %v5325_v26, %v1562_v40  ;;  %v2035_v40 = vsel %vm241_vm1, %v5273_v11, 0.0 }
 0x57a   :  { %1691 = vrot.lane.b32.xlu1 %v1574_v12, %s4067_s11  ;;  %1621 = vrot.lane.b32.xlu0 %v1547_v6, %s4067_s11 }
 0x57b   :  { %v3921_v12 = vpop.eup %3920  ;;  %v1564_v32 = vmul.f32 %v1548_v36, %v6936_v56  ;;  %v2074_v56 = vsel %vm241_vm1, %v5295_v15, 0.0 }
 0x57c   :  { %v3923_v19 = vpop.eup %3922  ;;  %v1519_v6 = vsel %vm30_vm2, %v3919_v3, %v3921_v12  ;;  %v6939_v3 = vld [vmem:[#allocation48_spill] sm:$0xff]  ;;  %v2044_v12 = vsel %vm241_vm1, %v5275_v53, 0.0 }
 0x57d   :  { %v1551_v4 = vmul.f32 %v5314_v0, %v1519_v6  ;;  %v1580_v51 = vsub.f32 %v5325_v26, %v1564_v32  ;;  %v2059_v6 = vsel %vm241_vm1, %v5289_v49, 0.0  ;;  %v2080_v32 = vsel %vm241_vm1, %v5299_v55, 0.0 }
 0x57e   :  { %1619 = vrot.lane.b32.xlu1 %v1546_v62, %s4067_s11  ;;  %1697 = vrot.lane.b32.xlu0 %v1577_v54, %s4067_s11  ;;  %v3925_v59 = vpop.eup %3924  ;;  %v1565_v62 = vmul.f32 %v1549_v30, %v6935_v16  ;;  %v2062_v16 = vsel %vm241_vm1, %v5287_v39, 0.0 }
 0x57f   :  { %v1518_v63 = vsel %vm30_vm2, %v3923_v19, %v3925_v59  ;;  %v1567_v35 = vmul.f32 %v1551_v4, %v6937_v13  ;;  %v2038_v19 = vsel %vm241_vm1, %v5270_v57, 0.0  ;;  %v2050_v59 = vsel %vm241_vm1, %v5279_v44, 0.0 }
 0x580   :  { %v1550_v31 = vmul.f32 %v5314_v0, %v1518_v63  ;;  %v1581_v54 = vsub.f32 %v5325_v26, %v1565_v62  ;;  %v3927_v50 = vpop.eup %3926  ;;  %v2071_v63 = vsel %vm241_vm1, %v5297_v22, 0.0  ;;  %v2077_v62 = vsel %vm241_vm1, %v5301_v7, 0.0 }
 0x581   :  { %v3929_v58 = vpop.eup %3928 }
 0x582   :  { %1695 = vrot.lane.b32.xlu1 %v1576_v48, %s4067_s11  ;;  %1625 = vrot.lane.b32.xlu0 %v1549_v30, %s4067_s11  ;;  %v1583_v48 = vsub.f32 %v5325_v26, %v1567_v35  ;;  %v1520_v30 = vsel %vm30_vm2, %v3927_v50, %v3929_v58  ;;  %v1566_v5 = vmul.f32 %v1550_v31, %v6938_v8 }
 0x583   :  { %v1552_v29 = vmul.f32 %v5314_v0, %v1520_v30  ;;  %v2041_v0 = vsel %vm241_vm1, %v5277_v14, 0.0 }
 0x584   :  { %v1582_v9 = vsub.f32 %v5325_v26, %v1566_v5 }
 0x586   :  { %1623 = vrot.lane.b32.xlu1 %v1548_v36, %s4067_s11  ;;  %1701 = vrot.lane.b32.xlu0 %v1579_v1, %s4067_s11  ;;  %v1568_v36 = vmul.f32 %v1552_v29, %v6939_v3  ;;  %v2047_v1 = vsel %vm241_vm1, %v5281_v52, 0.0 }
 0x588   :  { %v1584_v61 = vsub.f32 %v5325_v26, %v1568_v36  ;;  %v2053_v26 = vsel %vm241_vm1, %v5285_v43, 0.0 }
 0x58a   :  { %1699 = vrot.lane.b32.xlu1 %v1578_v2, %s4067_s11  ;;  %1629 = vrot.lane.b32.xlu0 %v1551_v4, %s4067_s11  ;;  %v2065_v2 = vsel %vm241_vm1, %v5293_v18, 0.0  ;;  %v2056_v4 = vsel %vm241_vm1, %v5283_v60, 0.0 }
 0x58e   :  { %1627 = vrot.lane.b32.xlu1 %v1550_v31, %s4067_s11  ;;  %1705 = vrot.lane.b32.xlu0 %v1581_v54, %s4067_s11  ;;  %v2068_v31 = vsel %vm241_vm1, %v5291_v10, 0.0  ;;  %v5439_v54 = vpop.permute.xlu0 %1601 }
 0x592   :  { %1703 = vrot.lane.b32.xlu1 %v1580_v51, %s4067_s11  ;;  %1709 = vrot.lane.b32.xlu0 %v1583_v48, %s4067_s11  ;;  %v5443_v35 = vpop.permute.xlu0 %1681 }
 0x596   :  { %1631 = vrot.lane.b32.xlu1 %v1552_v29, %s4067_s11  ;;  %v5441_v13 = vpop.permute.xlu1 %1603 }
 0x59a   :  { %1707 = vrot.lane.b32.xlu1 %v1582_v9, %s4067_s11  ;;  %v5445_v50 = vpop.permute.xlu1 %1607  ;;  %v5447_v58 = vpop.permute.xlu0 %1609 }
 0x59e   :  { %1711 = vrot.lane.b32.xlu1 %v1584_v61, %s4067_s11  ;;  %v5449_v51 = vpop.permute.xlu1 %1683  ;;  %v5451_v48 = vpop.permute.xlu0 %1685 }
 0x5a2   :  { %v5453_v30 = vpop.permute.xlu1 %1605 }
 0x5b1   :  { %2036 = vadd.xlane.f32.xlu0 %v2035_v40 }
 0x5b5   :  { %2042 = vadd.xlane.f32.xlu0 %v2041_v0 }
 0x5b9   :  { %2045 = vadd.xlane.f32.xlu0 %v2044_v12 }
 0x5bd   :  { %2048 = vadd.xlane.f32.xlu0 %v2047_v1 }
 0x5c1   :  { %2054 = vadd.xlane.f32.xlu0 %v2053_v26 }
 0x5c2   :  { %2039 = vadd.xlane.f32.xlu1 %v2038_v19 }
 0x5c5   :  { %2060 = vadd.xlane.f32.xlu0 %v2059_v6 }
 0x5c6   :  { %2051 = vadd.xlane.f32.xlu1 %v2050_v59 }
 0x5c9   :  { %2066 = vadd.xlane.f32.xlu0 %v2065_v2 }
 0x5ca   :  { %2057 = vadd.xlane.f32.xlu1 %v2056_v4 }
 0x5cd   :  { %2072 = vadd.xlane.f32.xlu0 %v2071_v63 }
 0x5ce   :  { %2063 = vadd.xlane.f32.xlu1 %v2062_v16 }
 0x5d1   :  { %2078 = vadd.xlane.f32.xlu0 %v2077_v62 }
 0x5d2   :  { %2069 = vadd.xlane.f32.xlu1 %v2068_v31 }
 0x5d6   :  { %2075 = vadd.xlane.f32.xlu1 %v2074_v56 }
 0x5da   :  { %2081 = vadd.xlane.f32.xlu1 %v2080_v32 }
 0x5dc   :  { %v5455_v29 = vpop.permute.xlu0 %1613 }
 0x5e0   :  { %v5457_v8 = vpop.permute.xlu1 %1611  ;;  %v5459_v5 = vpop.permute.xlu0 %1689 }
 0x5e4   :  { %v5461_v9 = vpop.permute.xlu1 %1687  ;;  %v5463_v3 = vpop.permute.xlu0 %1617 }
 0x5e8   :  { %v5465_v36 = vpop.permute.xlu1 %1615  ;;  %v5467_v61 = vpop.permute.xlu0 %1693 }
 0x5ec   :  { %v5469_v40 = vpop.permute.xlu1 %1691  ;;  %v5471_v0 = vpop.permute.xlu0 %1621 }
 0x5f0   :  { %v5473_v12 = vpop.permute.xlu1 %1619  ;;  %v5475_v1 = vpop.permute.xlu0 %1697 }
 0x5f4   :  { %v5477_v26 = vpop.permute.xlu1 %1695  ;;  %v5479_v19 = vpop.permute.xlu0 %1625 }
 0x5f8   :  { %v5481_v6 = vpop.permute.xlu1 %1623  ;;  %v5483_v59 = vpop.permute.xlu0 %1701 }
 0x5fc   :  { %v5485_v2 = vpop.permute.xlu1 %1699  ;;  %v5487_v4 = vpop.permute.xlu0 %1629 }
 0x600   :  { %v5489_v63 = vpop.permute.xlu1 %1627  ;;  %v5491_v16 = vpop.permute.xlu0 %1705 }
 0x601   :  { %6940 = vst [vmem:[#allocation25_spill] sm:$0xff] %v5489_v63 }
 0x604   :  { %v5493_v62 = vpop.permute.xlu1 %1703  ;;  %v5495_v31 = vpop.permute.xlu0 %1709 }
 0x605   :  { %6941 = vst [vmem:[#allocation47_spill] sm:$0xff] %v5493_v62  ;;  %6942 = vst [vmem:[#allocation14_spill] sm:$0xff] %v5495_v31 }
 0x608   :  { %v5497_v56 = vpop.permute.xlu1 %1631 }
 0x609   :  { %6943 = vst [vmem:[#allocation40_spill] sm:$0xff] %v5497_v56 }
 0x60c   :  { %v5505_v45 = vpop.permute.xlu1 %1707 }
 0x60d   :  { %6946 = vst [vmem:[#allocation28_spill] sm:$0xff] %v5505_v45 }
 0x610   :  { %v5511_v62 = vpop.permute.xlu1 %1711 }
 0x611   :  { %6947 = vst [vmem:[#allocation16_spill] sm:$0xff] %v5511_v62 }
 0x63e   :  { %v2037_v32 = vpop.xlane.xlu0 %2036 }
 0x63f   :  { %v5499_v17 = vmul.f32 0.0625, %v2037_v32 }
 0x641   :  { %6944 = vst [vmem:[#allocation51_spill] sm:$0xff] %v5499_v17  ;;  %v2099_v55 = vsub.f32 %v5273_v11, %v5499_v17 }
 0x642   :  { %v2043_v15 = vpop.xlane.xlu0 %2042 }
 0x643   :  { %v5503_v7 = vmul.f32 0.0625, %v2043_v15  ;;  %v2115_v22 = vmul.f32 %v2099_v55, %v2099_v55 }
 0x645   :  { %6945 = vst [vmem:[#allocation8_spill] sm:$0xff] %v5503_v7  ;;  %v2101_v41 = vsub.f32 %v5277_v14, %v5503_v7  ;;  %v2131_v63 = vsel %vm241_vm1, %v2115_v22, 0.0 }
 0x646   :  { %2132 = vadd.xlane.f32.xlu0 %v2131_v63  ;;  %v2046_v31 = vpop.xlane.xlu0 %2045 }
 0x647   :  { %v2117_v56 = vmul.f32 %v2101_v41, %v2101_v41  ;;  %v5515_v15 = vmul.f32 0.0625, %v2046_v31 }
 0x649   :  { %v2137_v32 = vsel %vm241_vm1, %v2117_v56, 0.0  ;;  %6949 = vst [vmem:[#allocation9_spill] sm:$0xff] %v5515_v15  ;;  %v2102_v63 = vsub.f32 %v5275_v53, %v5515_v15 }
 0x64a   :  { %2138 = vadd.xlane.f32.xlu0 %v2137_v32  ;;  %v2049_v17 = vpop.xlane.xlu0 %2048 }
 0x64b   :  { %v5513_v11 = vmul.f32 0.0625, %v2049_v17  ;;  %v2118_v62 = vmul.f32 %v2102_v63, %v2102_v63 }
 0x64d   :  { %6948 = vst [vmem:[#allocation41_spill] sm:$0xff] %v5513_v11  ;;  %v2103_v55 = vsub.f32 %v5281_v52, %v5513_v11  ;;  %v2140_v63 = vsel %vm241_vm1, %v2118_v62, 0.0 }
 0x64e   :  { %v2055_v45 = vpop.xlane.xlu0 %2054 }
 0x64f   :  { %v2040_v7 = vpop.xlane.xlu1 %2039  ;;  %v5519_v14 = vmul.f32 0.0625, %v2055_v45  ;;  %v2119_v41 = vmul.f32 %v2103_v55, %v2103_v55 }
 0x650   :  { %v5521_v22 = vmul.f32 0.0625, %v2040_v7 }
 0x651   :  { %6950 = vst [vmem:[#allocation31_spill] sm:$0xff] %v5519_v14  ;;  %v2105_v56 = vsub.f32 %v5285_v43, %v5519_v14  ;;  %v2143_v31 = vsel %vm241_vm1, %v2119_v41, 0.0 }
 0x652   :  { %6951 = vst [vmem:[#allocation17_spill] sm:$0xff] %v5521_v22  ;;  %v2100_v17 = vsub.f32 %v5270_v57, %v5521_v22  ;;  %2144 = vadd.xlane.f32.xlu0 %v2143_v31  ;;  %v2061_v32 = vpop.xlane.xlu0 %2060 }
 0x653   :  { %v2052_v11 = vpop.xlane.xlu1 %2051  ;;  %v5530_v52 = vmul.f32 0.0625, %v2061_v32  ;;  %v2121_v7 = vmul.f32 %v2105_v56, %v2105_v56 }
 0x654   :  { %v5532_v45 = vmul.f32 0.0625, %v2052_v11  ;;  %v2116_v55 = vmul.f32 %v2100_v17, %v2100_v17 }
 0x655   :  { %6952 = vst [vmem:[#allocation43_spill] sm:$0xff] %v5530_v52  ;;  %v2107_v15 = vsub.f32 %v5289_v49, %v5530_v52  ;;  %v2149_v22 = vsel %vm241_vm1, %v2121_v7, 0.0 }
 0x656   :  { %6953 = vst [vmem:[#allocation10_spill] sm:$0xff] %v5532_v45  ;;  %v2104_v14 = vsub.f32 %v5279_v44, %v5532_v45  ;;  %v2134_v41 = vsel %vm241_vm1, %v2116_v55, 0.0  ;;  %2150 = vadd.xlane.f32.xlu0 %v2149_v22  ;;  %v2067_v31 = vpop.xlane.xlu0 %2066 }
 0x657   :  { %2135 = vadd.xlane.f32.xlu1 %v2134_v41  ;;  %v2058_v32 = vpop.xlane.xlu1 %2057  ;;  %v5540_v53 = vmul.f32 0.0625, %v2067_v31  ;;  %v2123_v56 = vmul.f32 %v2107_v15, %v2107_v15 }
 0x658   :  { %v5542_v11 = vmul.f32 0.0625, %v2058_v32  ;;  %v2120_v55 = vmul.f32 %v2104_v14, %v2104_v14 }
 0x659   :  { %6954 = vst [vmem:[#allocation34_spill] sm:$0xff] %v5540_v53  ;;  %v2109_v17 = vsub.f32 %v5293_v18, %v5540_v53  ;;  %v2155_v7 = vsel %vm241_vm1, %v2123_v56, 0.0 }
 0x65a   :  { %6955 = vst [vmem:[#allocation23_spill] sm:$0xff] %v5542_v11  ;;  %v2106_v52 = vsub.f32 %v5283_v60, %v5542_v11  ;;  %2156 = vadd.xlane.f32.xlu0 %v2155_v7  ;;  %v2146_v32 = vsel %vm241_vm1, %v2120_v55, 0.0  ;;  %v1651_v55 = vmul.f32 %v5453_v30, %v4183_v24  ;;  %v1655_v24 = vmul.f32 %v5455_v29, %v4197_v28 }
 0x65b   :  { %v2064_v22 = vpop.xlane.xlu1 %2063  ;;  %2141 = vadd.xlane.f32.xlu1 %v2140_v63  ;;  %v2125_v31 = vmul.f32 %v2109_v17, %v2109_v17  ;;  %v1660_v30 = vmul.f32 %v4241_v37, %v5481_v6  ;;  %v1663_v29 = vmul.f32 %v5487_v4, %v4285_v46  ;;  %v6963_v46 = vld [vmem:[#allocation16_spill] sm:$0xff] }
 0x65c   :  { %v5550_v41 = vmul.f32 0.0625, %v2064_v22  ;;  %v2122_v53 = vmul.f32 %v2106_v52, %v2106_v52  ;;  %v1649_v52 = vmul.f32 %v5439_v54, %v4175_v21  ;;  %v1652_v54 = vmul.f32 %v4179_v23, %v5445_v50 }
 0x65d   :  { %v2161_v62 = vsel %vm241_vm1, %v2125_v31, 0.0  ;;  %v1650_v31 = vmul.f32 %v4171_v20, %v5441_v13  ;;  %v1654_v13 = vmul.f32 %v4185_v25, %v5457_v8  ;;  %v1656_v50 = vmul.f32 %v4193_v27, %v5465_v36 }
 0x65e   :  { %v2108_v15 = vsub.f32 %v5287_v39, %v5550_v41  ;;  %2162 = vadd.xlane.f32.xlu0 %v2161_v62  ;;  %v2152_v56 = vsel %vm241_vm1, %v2122_v53, 0.0  ;;  %v1731_v53 = vadd.f32 %v5451_v48, %v1651_v55  ;;  %v1732_v20 = vadd.f32 %v5461_v9, %v1652_v54  ;;  %v6958_v9 = vld [vmem:[#allocation25_spill] sm:$0xff] }
 0x65f   :  { %v2070_v45 = vpop.xlane.xlu1 %2069  ;;  %2147 = vadd.xlane.f32.xlu1 %v2146_v32  ;;  %v1730_v62 = vadd.f32 %v5449_v51, %v1650_v31  ;;  %v1734_v23 = vadd.f32 %v5469_v40, %v1654_v13  ;;  %v1736_v25 = vadd.f32 %v5477_v26, %v1656_v50  ;;  %v1658_v51 = vmul.f32 %v4221_v33, %v5473_v12  ;;  %v6956_v33 = vld [vmem:[#allocation47_spill] sm:$0xff]  ;;  %v6961_v40 = vld [vmem:[#allocation40_spill] sm:$0xff]  ;;  %v2073_v26 = vpop.xlane.xlu0 %2072  ;;  %v6968_v31 = vld [vmem:[#allocation50_spill] sm:$0xff] }
 0x660   :  { %v5556_v11 = vmul.f32 0.0625, %v2070_v45  ;;  %v2124_v63 = vmul.f32 %v2108_v15, %v2108_v15  ;;  %v1729_v45 = vadd.f32 %v5443_v35, %v1649_v52  ;;  %v1653_v15 = vmul.f32 %v5447_v58, %v6882_v47  ;;  %v6966_v32 = vld [vmem:[#allocation7_spill] sm:$0xff]  ;;  %v6967_v52 = vld [vmem:[#allocation13_spill] sm:$0xff]  ;;  %v6971_v13 = vld [vmem:[#allocation44_spill] sm:$0xff] }
 0x661   :  { %v1735_v47 = vadd.f32 %v5467_v61, %v1655_v24  ;;  %v1657_v35 = vmul.f32 %v5463_v3, %v4225_v34  ;;  %v1659_v58 = vmul.f32 %v5471_v0, %v4245_v38  ;;  %v1661_v48 = vmul.f32 %v5479_v19, %v4265_v42  ;;  %v6959_v3 = vld [vmem:[#allocation3_spill] sm:$0xff]  ;;  %v6960_v61 = vld [vmem:[#allocation28_spill] sm:$0xff] }
 0x662   :  { %v2110_v14 = vsub.f32 %v5291_v10, %v5556_v11  ;;  %v2158_v17 = vsel %vm241_vm1, %v2124_v63, 0.0  ;;  %v1733_v21 = vadd.f32 %v5459_v5, %v1653_v15  ;;  %v1738_v27 = vadd.f32 %v5485_v2, %v1658_v51  ;;  %v6957_v5 = vld [vmem:[#allocation14_spill] sm:$0xff]  ;;  %v6962_v0 = vld [vmem:[#allocation4_spill] sm:$0xff] }
 0x663   :  { %2153 = vadd.xlane.f32.xlu1 %v2152_v56  ;;  %v1737_v28 = vadd.f32 %v5475_v1, %v1657_v35  ;;  %v1739_v34 = vadd.f32 %v5483_v59, %v1659_v58  ;;  %v1741_v38 = vadd.f32 %v5491_v16, %v1661_v48  ;;  %v1740_v8 = vadd.f32 %v6956_v33, %v1660_v30  ;;  %v2079_v6 = vpop.xlane.xlu0 %2078  ;;  %v6964_v59 = vld [vmem:[#allocation38_spill] sm:$0xff]  ;;  %v2076_v16 = vpop.xlane.xlu1 %2075 }
 0x664   :  { %v2126_v7 = vmul.f32 %v2110_v14, %v2110_v14  ;;  %v1743_v42 = vadd.f32 %v6957_v5, %v1663_v29  ;;  %v1662_v36 = vmul.f32 %v6959_v3, %v6958_v9  ;;  %v1664_v12 = vmul.f32 %v6962_v0, %v6961_v40 }
 0x665   :  { %v5627_v19 = vmul.f32 0.0625, %v2073_v26  ;;  %v5631_v4 = vmul.f32 0.0625, %v2079_v6  ;;  %v5635_v63 = vmul.f32 0.0625, %v2076_v16 }
 0x666   :  { %v2164_v22 = vsel %vm241_vm1, %v2126_v7, 0.0  ;;  %v1742_v37 = vadd.f32 %v6960_v61, %v1662_v36  ;;  %v1744_v1 = vadd.f32 %v6963_v46, %v1664_v12 }
 0x667   :  { %2159 = vadd.xlane.f32.xlu1 %v2158_v17  ;;  %v2111_v2 = vsub.f32 %v6964_v59, %v5627_v19  ;;  %6965 = vst [vmem:[#allocation46_spill] sm:$0xff] %v5631_v4  ;;  %v2113_v14 = vsub.f32 %v6966_v32, %v5631_v4 }
 0x669   :  { %v2127_v56 = vmul.f32 %v2111_v2, %v2111_v2  ;;  %v2129_v7 = vmul.f32 %v2113_v14, %v2113_v14 }
 0x66b   :  { %2165 = vadd.xlane.f32.xlu1 %v2164_v22  ;;  %v2167_v17 = vsel %vm241_vm1, %v2127_v56, 0.0  ;;  %v2082_v22 = vpop.xlane.xlu1 %2081 }
 0x66c   :  { %v5640_v55 = vmul.f32 0.0625, %v2082_v22 }
 0x66e   :  { %v2114_v15 = vsub.f32 %v6968_v31, %v5640_v55 }
 0x670   :  { %v2130_v54 = vmul.f32 %v2114_v15, %v2114_v15 }
 0x672   :  { %v2176_v24 = vsel %vm241_vm1, %v2130_v54, 0.0 }
 0x674   :  { %1761 = vrot.lane.b32.xlu0 %v1729_v45, %s4065_s2  ;;  %v2112_v45 = vsub.f32 %v6967_v52, %v5635_v63 }
 0x678   :  { %1765 = vrot.lane.b32.xlu0 %v1731_v53, %s4065_s2  ;;  %v2173_v53 = vsel %vm241_vm1, %v2129_v7, 0.0 }
 0x67c   :  { %1763 = vrot.lane.b32.xlu1 %v1730_v62, %s4065_s2  ;;  %1769 = vrot.lane.b32.xlu0 %v1733_v21, %s4065_s2  ;;  %v2128_v62 = vmul.f32 %v2112_v45, %v2112_v45 }
 0x67e   :  { %v2170_v21 = vsel %vm241_vm1, %v2128_v62, 0.0 }
 0x680   :  { %1767 = vrot.lane.b32.xlu1 %v1732_v20, %s4065_s2  ;;  %1773 = vrot.lane.b32.xlu0 %v1735_v47, %s4065_s2  ;;  %v6969_v20 = vld [vmem:[#allocation5_spill] sm:$0xff]  ;;  %v6970_v47 = vld [vmem:[#allocation11_spill] sm:$0xff] }
 0x684   :  { %1771 = vrot.lane.b32.xlu1 %v1734_v23, %s4065_s2  ;;  %1777 = vrot.lane.b32.xlu0 %v1737_v28, %s4065_s2  ;;  %v6972_v23 = vld [vmem:[#allocation20_spill] sm:$0xff] }
 0x688   :  { %1775 = vrot.lane.b32.xlu1 %v1736_v25, %s4065_s2  ;;  %1781 = vrot.lane.b32.xlu0 %v1739_v34, %s4065_s2 }
 0x68c   :  { %1779 = vrot.lane.b32.xlu1 %v1738_v27, %s4065_s2  ;;  %1785 = vrot.lane.b32.xlu0 %v1741_v38, %s4065_s2 }
 0x690   :  { %1783 = vrot.lane.b32.xlu1 %v1740_v8, %s4065_s2  ;;  %1789 = vrot.lane.b32.xlu0 %v1743_v42, %s4065_s2 }
 0x694   :  { %1787 = vrot.lane.b32.xlu1 %v1742_v37, %s4065_s2 }
 0x698   :  { %1791 = vrot.lane.b32.xlu1 %v1744_v1, %s4065_s2 }
 0x6af   :  { %2168 = vadd.xlane.f32.xlu0 %v2167_v17 }
 0x6b3   :  { %2174 = vadd.xlane.f32.xlu0 %v2173_v53 }
 0x6bc   :  { %2171 = vadd.xlane.f32.xlu1 %v2170_v21 }
 0x6c0   :  { %2177 = vadd.xlane.f32.xlu1 %v2176_v24 }
 0x6c9   :  { %2243 = vrot.lane.b32.xlu0 %v6969_v20, %s4064_s8 }
 0x6cd   :  { %2251 = vrot.lane.b32.xlu0 %v6970_v47, %s4064_s8 }
 0x6d1   :  { %2245 = vrot.lane.b32.xlu1 %v5270_v57, %s4064_s8  ;;  %2255 = vrot.lane.b32.xlu0 %v5285_v43, %s4064_s8 }
 0x6d3   :  { %v5657_v35 = vpop.xlane.xlu0 %2132 }
 0x6d5   :  { %2247 = vrot.lane.b32.xlu1 %v6971_v13, %s4064_s8  ;;  %2259 = vrot.lane.b32.xlu0 %v5289_v49, %s4064_s8 }
 0x6d7   :  { %v5665_v28 = vpop.xlane.xlu0 %2138 }
 0x6d9   :  { %2249 = vrot.lane.b32.xlu1 %v6972_v23, %s4064_s8  ;;  %2263 = vrot.lane.b32.xlu0 %v5293_v18, %s4064_s8 }
 0x6dd   :  { %2253 = vrot.lane.b32.xlu1 %v5279_v44, %s4064_s8  ;;  %2267 = vrot.lane.b32.xlu0 %v6964_v59, %s4064_s8 }
 0x6df   :  { %v5671_v50 = vpop.xlane.xlu0 %2144 }
 0x6e1   :  { %2257 = vrot.lane.b32.xlu1 %v5283_v60, %s4064_s8  ;;  %2271 = vrot.lane.b32.xlu0 %v6966_v32, %s4064_s8 }
 0x6e3   :  { %v5677_v58 = vpop.xlane.xlu0 %2150 }
 0x6e4   :  { %v5679_v25 = vpop.xlane.xlu1 %2135 }
 0x6e5   :  { %2261 = vrot.lane.b32.xlu1 %v5287_v39, %s4064_s8 }
 0x6e7   :  { %v5683_v34 = vpop.xlane.xlu0 %2156 }
 0x6e8   :  { %v5685_v51 = vpop.xlane.xlu1 %2141 }
 0x6e9   :  { %2265 = vrot.lane.b32.xlu1 %v5291_v10, %s4064_s8 }
 0x6eb   :  { %v5689_v48 = vpop.xlane.xlu0 %2162 }
 0x6ec   :  { %v5691_v27 = vpop.xlane.xlu1 %2147 }
 0x6ed   :  { %2269 = vrot.lane.b32.xlu1 %v6967_v52, %s4064_s8 }
 0x6ef   :  { %v1762_v38 = vpop.permute.xlu0 %1761 }
 0x6f0   :  { %v5695_v30 = vpop.xlane.xlu1 %2153  ;;  %3630 = vst.msk [vmem:[%s6758_s5 + $0x8] sm:$0xff] %vm47_vm0, %v1762_v38 }
 0x6f1   :  { %2273 = vrot.lane.b32.xlu1 %v6968_v31, %s4064_s8 }
 0x6f3   :  { %v1766_v29 = vpop.permute.xlu0 %1765 }
 0x6f4   :  { %v5703_v33 = vpop.xlane.xlu1 %2159  ;;  %3632 = vst.msk [vmem:[%s6758_s5 + $0x28] sm:$0xff] %vm47_vm0, %v1766_v29 }
 0x6f7   :  { %v1770_v8 = vpop.permute.xlu0 %1769 }
 0x6f8   :  { %v5709_v5 = vpop.xlane.xlu1 %2165  ;;  %3634 = vst.msk [vmem:[%s6758_s5 + $0x48] sm:$0xff] %vm47_vm0, %v1770_v8 }
 0x6fb   :  { %v1774_v42 = vpop.permute.xlu0 %1773 }
 0x6fc   :  { %v1764_v9 = vpop.permute.xlu1 %1763  ;;  %3636 = vst.msk [vmem:[%s6758_s5 + $0x68] sm:$0xff] %vm47_vm0, %v1774_v42 }
 0x6fd   :  { %3631 = vst.msk [vmem:[%s6758_s5 + $0x18] sm:$0xff] %vm47_vm0, %v1764_v9 }
 0x6ff   :  { %v1778_v3 = vpop.permute.xlu0 %1777 }
 0x700   :  { %v1768_v36 = vpop.permute.xlu1 %1767  ;;  %3638 = vst.msk [vmem:[%s6758_s5 + $0x88] sm:$0xff] %vm47_vm0, %v1778_v3 }
 0x701   :  { %3633 = vst.msk [vmem:[%s6758_s5 + $0x38] sm:$0xff] %vm47_vm0, %v1768_v36 }
 0x703   :  { %v1782_v61 = vpop.permute.xlu0 %1781 }
 0x704   :  { %v1772_v37 = vpop.permute.xlu1 %1771  ;;  %3640 = vst.msk [vmem:[%s6758_s5 + $0xa8] sm:$0xff] %vm47_vm0, %v1782_v61 }
 0x705   :  { %3635 = vst.msk [vmem:[%s6758_s5 + $0x58] sm:$0xff] %vm47_vm0, %v1772_v37 }
 0x707   :  { %v1786_v40 = vpop.permute.xlu0 %1785 }
 0x708   :  { %v1776_v0 = vpop.permute.xlu1 %1775  ;;  %3642 = vst.msk [vmem:[%s6758_s5 + $0xc8] sm:$0xff] %vm47_vm0, %v1786_v40 }
 0x709   :  { %3637 = vst.msk [vmem:[%s6758_s5 + $0x78] sm:$0xff] %vm47_vm0, %v1776_v0 }
 0x70b   :  { %v1790_v12 = vpop.permute.xlu0 %1789 }
 0x70c   :  { %v1780_v46 = vpop.permute.xlu1 %1779  ;;  %3644 = vst.msk [vmem:[%s6758_s5 + $0xe8] sm:$0xff] %vm47_vm0, %v1790_v12 }
 0x70d   :  { %3639 = vst.msk [vmem:[%s6758_s5 + $0x98] sm:$0xff] %vm47_vm0, %v1780_v46 }
 0x710   :  { %v1784_v1 = vpop.permute.xlu1 %1783 }
 0x711   :  { %3641 = vst.msk [vmem:[%s6758_s5 + $0xb8] sm:$0xff] %vm47_vm0, %v1784_v1 }
 0x714   :  { %v1788_v26 = vpop.permute.xlu1 %1787 }
 0x715   :  { %3643 = vst.msk [vmem:[%s6758_s5 + $0xd8] sm:$0xff] %vm47_vm0, %v1788_v26 }
 0x718   :  { %v1792_v6 = vpop.permute.xlu1 %1791 }
 0x719   :  { %3645 = vst.msk [vmem:[%s6758_s5 + $0xf8] sm:$0xff] %vm47_vm0, %v1792_v6 }
 0x73c   :  { %v5767_v2 = vpop.xlane.xlu0 %2168 }
 0x740   :  { %v5769_v16 = vpop.xlane.xlu0 %2174 }
 0x744   :  { %v2244_v14 = vpop.permute.xlu0 %2243 }
 0x745   :  { %v2291_v56 = vsel %vm241_vm1, %v2244_v14, 0.0 }
 0x746   :  { %2292 = vadd.xlane.f32.xlu0 %v2291_v56 }
 0x748   :  { %v2252_v22 = vpop.permute.xlu0 %2251 }
 0x749   :  { %v5772_v17 = vpop.xlane.xlu1 %2171  ;;  %v2303_v42 = vsel %vm241_vm1, %v2252_v22, 0.0 }
 0x74c   :  { %v2256_v21 = vpop.permute.xlu0 %2255 }
 0x74d   :  { %v5774_v7 = vpop.xlane.xlu1 %2177  ;;  %v2309_v36 = vsel %vm241_vm1, %v2256_v21, 0.0 }
 0x750   :  { %v2260_v38 = vpop.permute.xlu0 %2259 }
 0x751   :  { %v2246_v45 = vpop.permute.xlu1 %2245  ;;  %v2315_v0 = vsel %vm241_vm1, %v2260_v38, 0.0 }
 0x752   :  { %v2294_v53 = vsel %vm241_vm1, %v2246_v45, 0.0 }
 0x753   :  { %2295 = vadd.xlane.f32.xlu1 %v2294_v53 }
 0x754   :  { %v2264_v61 = vpop.permute.xlu0 %2263 }
 0x755   :  { %v2248_v15 = vpop.permute.xlu1 %2247  ;;  %v2321_v26 = vsel %vm241_vm1, %v2264_v61, 0.0 }
 0x756   :  { %v2297_v62 = vsel %vm241_vm1, %v2248_v15, 0.0 }
 0x757   :  { %2298 = vadd.xlane.f32.xlu0 %v2297_v62 }
 0x758   :  { %v2268_v12 = vpop.permute.xlu0 %2267 }
 0x759   :  { %v2250_v54 = vpop.permute.xlu1 %2249  ;;  %v2327_v56 = vsel %vm241_vm1, %v2268_v12, 0.0 }
 0x75a   :  { %v2300_v24 = vsel %vm241_vm1, %v2250_v54, 0.0 }
 0x75b   :  { %2301 = vadd.xlane.f32.xlu0 %v2300_v24 }
 0x75c   :  { %v2272_v22 = vpop.permute.xlu0 %2271 }
 0x75d   :  { %v2254_v29 = vpop.permute.xlu1 %2253  ;;  %v2333_v15 = vsel %vm241_vm1, %v2272_v22, 0.0 }
 0x75e   :  { %v2306_v8 = vsel %vm241_vm1, %v2254_v29, 0.0 }
 0x75f   :  { %2307 = vadd.xlane.f32.xlu1 %v2306_v8  ;;  %2304 = vadd.xlane.f32.xlu0 %v2303_v42 }
 0x761   :  { %v2258_v9 = vpop.permute.xlu1 %2257 }
 0x762   :  { %v2312_v3 = vsel %vm241_vm1, %v2258_v9, 0.0 }
 0x763   :  { %2313 = vadd.xlane.f32.xlu1 %v2312_v3  ;;  %2310 = vadd.xlane.f32.xlu0 %v2309_v36 }
 0x765   :  { %v2262_v37 = vpop.permute.xlu1 %2261 }
 0x766   :  { %v2318_v40 = vsel %vm241_vm1, %v2262_v37, 0.0 }
 0x767   :  { %2319 = vadd.xlane.f32.xlu1 %v2318_v40  ;;  %2316 = vadd.xlane.f32.xlu0 %v2315_v0 }
 0x769   :  { %v2266_v46 = vpop.permute.xlu1 %2265 }
 0x76a   :  { %v2324_v1 = vsel %vm241_vm1, %v2266_v46, 0.0 }
 0x76b   :  { %2325 = vadd.xlane.f32.xlu1 %v2324_v1  ;;  %2322 = vadd.xlane.f32.xlu0 %v2321_v26 }
 0x76d   :  { %v2270_v6 = vpop.permute.xlu1 %2269 }
 0x76e   :  { %v2330_v14 = vsel %vm241_vm1, %v2270_v6, 0.0 }
 0x76f   :  { %2331 = vadd.xlane.f32.xlu1 %v2330_v14  ;;  %2328 = vadd.xlane.f32.xlu0 %v2327_v56 }
 0x771   :  { %v2274_v45 = vpop.permute.xlu1 %2273 }
 0x772   :  { %v2336_v53 = vsel %vm241_vm1, %v2274_v45, 0.0 }
 0x773   :  { %2337 = vadd.xlane.f32.xlu1 %v2336_v53  ;;  %2334 = vadd.xlane.f32.xlu0 %v2333_v15 }
 0x7d3   :  { %v2293_v62 = vpop.xlane.xlu0 %2292 }
 0x7d4   :  { %v5791_v21 = vmul.f32 0.0625, %v2293_v62 }
 0x7d6   :  { %v2355_v54 = vsub.f32 %v6969_v20, %v5791_v21 }
 0x7d8   :  { %v2371_v24 = vmul.f32 %v2355_v54, %v2355_v54 }
 0x7da   :  { %2403 = vrot.lane.b32.xlu0 %v2371_v24, %s4064_s8 }
 0x7e0   :  { %v2296_v38 = vpop.xlane.xlu1 %2295 }
 0x7e1   :  { %v5796_v29 = vmul.f32 0.0625, %v2296_v38 }
 0x7e3   :  { %v2356_v8 = vsub.f32 %v5270_v57, %v5796_v29 }
 0x7e4   :  { %v2299_v42 = vpop.xlane.xlu0 %2298 }
 0x7e5   :  { %v2372_v9 = vmul.f32 %v2356_v8, %v2356_v8  ;;  %v5800_v3 = vmul.f32 0.0625, %v2299_v42 }
 0x7e7   :  { %v2357_v36 = vsub.f32 %v6971_v13, %v5800_v3  ;;  %2405 = vrot.lane.b32.xlu1 %v2372_v9, %s4064_s8 }
 0x7e8   :  { %v2302_v61 = vpop.xlane.xlu0 %2301 }
 0x7e9   :  { %v2373_v37 = vmul.f32 %v2357_v36, %v2357_v36  ;;  %v5805_v40 = vmul.f32 0.0625, %v2302_v61 }
 0x7eb   :  { %v2358_v0 = vsub.f32 %v6972_v23, %v5805_v40  ;;  %2407 = vrot.lane.b32.xlu1 %v2373_v37, %s4064_s8 }
 0x7ec   :  { %v2308_v12 = vpop.xlane.xlu1 %2307  ;;  %v2305_v46 = vpop.xlane.xlu0 %2304 }
 0x7ed   :  { %v2374_v1 = vmul.f32 %v2358_v0, %v2358_v0  ;;  %v5810_v26 = vmul.f32 0.0625, %v2308_v12  ;;  %v5812_v6 = vmul.f32 0.0625, %v2305_v46 }
 0x7ef   :  { %v2360_v14 = vsub.f32 %v5279_v44, %v5810_v26  ;;  %v2359_v56 = vsub.f32 %v6970_v47, %v5812_v6  ;;  %2409 = vrot.lane.b32.xlu1 %v2374_v1, %s4064_s8 }
 0x7f0   :  { %v2314_v22 = vpop.xlane.xlu1 %2313  ;;  %v2311_v45 = vpop.xlane.xlu0 %2310 }
 0x7f1   :  { %v2376_v53 = vmul.f32 %v2360_v14, %v2360_v14  ;;  %v2375_v15 = vmul.f32 %v2359_v56, %v2359_v56  ;;  %v5819_v62 = vmul.f32 0.0625, %v2314_v22  ;;  %v5821_v54 = vmul.f32 0.0625, %v2311_v45 }
 0x7f3   :  { %v2362_v24 = vsub.f32 %v5283_v60, %v5819_v62  ;;  %v2361_v38 = vsub.f32 %v5285_v43, %v5821_v54  ;;  %2413 = vrot.lane.b32.xlu1 %v2376_v53, %s4064_s8  ;;  %2411 = vrot.lane.b32.xlu0 %v2375_v15, %s4064_s8 }
 0x7f4   :  { %v2320_v8 = vpop.xlane.xlu1 %2319  ;;  %v2317_v42 = vpop.xlane.xlu0 %2316 }
 0x7f5   :  { %v2378_v9 = vmul.f32 %v2362_v24, %v2362_v24  ;;  %v2377_v36 = vmul.f32 %v2361_v38, %v2361_v38  ;;  %v5829_v61 = vmul.f32 0.0625, %v2320_v8  ;;  %v5831_v37 = vmul.f32 0.0625, %v2317_v42 }
 0x7f7   :  { %v2364_v0 = vsub.f32 %v5287_v39, %v5829_v61  ;;  %v2363_v12 = vsub.f32 %v5289_v49, %v5831_v37  ;;  %2417 = vrot.lane.b32.xlu1 %v2378_v9, %s4064_s8  ;;  %2415 = vrot.lane.b32.xlu0 %v2377_v36, %s4064_s8 }
 0x7f8   :  { %v2326_v46 = vpop.xlane.xlu1 %2325  ;;  %v2323_v1 = vpop.xlane.xlu0 %2322 }
 0x7f9   :  { %v2380_v14 = vmul.f32 %v2364_v0, %v2364_v0  ;;  %v2379_v56 = vmul.f32 %v2363_v12, %v2363_v12  ;;  %v5839_v22 = vmul.f32 0.0625, %v2326_v46  ;;  %v5841_v45 = vmul.f32 0.0625, %v2323_v1 }
 0x7fb   :  { %v2366_v53 = vsub.f32 %v5291_v10, %v5839_v22  ;;  %v2365_v15 = vsub.f32 %v5293_v18, %v5841_v45  ;;  %2421 = vrot.lane.b32.xlu1 %v2380_v14, %s4064_s8  ;;  %2419 = vrot.lane.b32.xlu0 %v2379_v56, %s4064_s8 }
 0x7fc   :  { %v2332_v24 = vpop.xlane.xlu1 %2331  ;;  %v2329_v38 = vpop.xlane.xlu0 %2328 }
 0x7fd   :  { %v2382_v8 = vmul.f32 %v2366_v53, %v2366_v53  ;;  %v2381_v42 = vmul.f32 %v2365_v15, %v2365_v15  ;;  %v5849_v9 = vmul.f32 0.0625, %v2332_v24  ;;  %v5851_v36 = vmul.f32 0.0625, %v2329_v38 }
 0x7ff   :  { %v2368_v0 = vsub.f32 %v6967_v52, %v5849_v9  ;;  %v2367_v12 = vsub.f32 %v6964_v59, %v5851_v36  ;;  %2425 = vrot.lane.b32.xlu1 %v2382_v8, %s4064_s8  ;;  %2423 = vrot.lane.b32.xlu0 %v2381_v42, %s4064_s8 }
 0x800   :  { %v2338_v46 = vpop.xlane.xlu1 %2337  ;;  %v2335_v1 = vpop.xlane.xlu0 %2334 }
 0x801   :  { %v2384_v14 = vmul.f32 %v2368_v0, %v2368_v0  ;;  %v2383_v56 = vmul.f32 %v2367_v12, %v2367_v12  ;;  %v5859_v53 = vmul.f32 0.0625, %v2338_v46  ;;  %v5861_v15 = vmul.f32 0.0625, %v2335_v1 }
 0x803   :  { %6973 = vst [vmem:[#allocation15_spill] sm:$0xff] %v5861_v15  ;;  %v2370_v24 = vsub.f32 %v6968_v31, %v5859_v53  ;;  %v2369_v38 = vsub.f32 %v6966_v32, %v5861_v15  ;;  %2429 = vrot.lane.b32.xlu1 %v2384_v14, %s4064_s8  ;;  %2427 = vrot.lane.b32.xlu0 %v2383_v56, %s4064_s8 }
 0x805   :  { %v2386_v8 = vmul.f32 %v2370_v24, %v2370_v24  ;;  %v2385_v42 = vmul.f32 %v2369_v38, %v2369_v38 }
 0x807   :  { %2433 = vrot.lane.b32.xlu1 %v2386_v8, %s4064_s8  ;;  %2431 = vrot.lane.b32.xlu0 %v2385_v42, %s4064_s8 }
 0x84c   :  { %v2404_v0 = vpop.permute.xlu0 %2403 }
 0x84d   :  { %v2451_v12 = vsel %vm241_vm1, %v2404_v0, 0.0 }
 0x84e   :  { %2452 = vadd.xlane.f32.xlu0 %v2451_v12 }
 0x859   :  { %v2406_v46 = vpop.permute.xlu1 %2405 }
 0x85a   :  { %v2454_v1 = vsel %vm241_vm1, %v2406_v46, 0.0 }
 0x85b   :  { %2455 = vadd.xlane.f32.xlu1 %v2454_v1 }
 0x85d   :  { %v2408_v4 = vpop.permute.xlu1 %2407 }
 0x85e   :  { %v2457_v15 = vsel %vm241_vm1, %v2408_v4, 0.0 }
 0x85f   :  { %2458 = vadd.xlane.f32.xlu0 %v2457_v15 }
 0x861   :  { %v2410_v14 = vpop.permute.xlu1 %2409 }
 0x862   :  { %v2460_v56 = vsel %vm241_vm1, %v2410_v14, 0.0 }
 0x863   :  { %2461 = vadd.xlane.f32.xlu0 %v2460_v56 }
 0x865   :  { %v2414_v24 = vpop.permute.xlu1 %2413  ;;  %v2412_v38 = vpop.permute.xlu0 %2411 }
 0x866   :  { %v2466_v8 = vsel %vm241_vm1, %v2414_v24, 0.0  ;;  %v2463_v42 = vsel %vm241_vm1, %v2412_v38, 0.0 }
 0x867   :  { %2467 = vadd.xlane.f32.xlu1 %v2466_v8  ;;  %2464 = vadd.xlane.f32.xlu0 %v2463_v42 }
 0x869   :  { %v2418_v0 = vpop.permute.xlu1 %2417  ;;  %v2416_v12 = vpop.permute.xlu0 %2415 }
 0x86a   :  { %v2472_v46 = vsel %vm241_vm1, %v2418_v0, 0.0  ;;  %v2469_v4 = vsel %vm241_vm1, %v2416_v12, 0.0 }
 0x86b   :  { %2473 = vadd.xlane.f32.xlu1 %v2472_v46  ;;  %2470 = vadd.xlane.f32.xlu0 %v2469_v4 }
 0x86d   :  { %v2422_v15 = vpop.permute.xlu1 %2421  ;;  %v2420_v1 = vpop.permute.xlu0 %2419 }
 0x86e   :  { %v2478_v14 = vsel %vm241_vm1, %v2422_v15, 0.0  ;;  %v2475_v56 = vsel %vm241_vm1, %v2420_v1, 0.0 }
 0x86f   :  { %2479 = vadd.xlane.f32.xlu1 %v2478_v14  ;;  %2476 = vadd.xlane.f32.xlu0 %v2475_v56 }
 0x871   :  { %v2426_v24 = vpop.permute.xlu1 %2425  ;;  %v2424_v8 = vpop.permute.xlu0 %2423 }
 0x872   :  { %v2484_v38 = vsel %vm241_vm1, %v2426_v24, 0.0  ;;  %v2481_v42 = vsel %vm241_vm1, %v2424_v8, 0.0  ;;  %v2179_v24 = vmul.f32 0.0625, %v5657_v35  ;;  %v2185_v35 = vmul.f32 0.0625, %v5677_v58 }
 0x873   :  { %2485 = vadd.xlane.f32.xlu1 %v2484_v38  ;;  %2482 = vadd.xlane.f32.xlu0 %v2481_v42 }
 0x874   :  { %v2195_v8 = vadd.f32 1e-05, %v2179_v24 }
 0x875   :  { %v2430_v0 = vpop.permute.xlu1 %2429  ;;  %v2428_v46 = vpop.permute.xlu0 %2427 }
 0x876   :  { %v2490_v12 = vsel %vm241_vm1, %v2430_v0, 0.0  ;;  %v2487_v4 = vsel %vm241_vm1, %v2428_v46, 0.0  ;;  %3930 = vrsqrt.f32 %v2195_v8  ;;  %v2181_v46 = vmul.f32 0.0625, %v5665_v28 }
 0x877   :  { %2491 = vadd.xlane.f32.xlu1 %v2490_v12  ;;  %2488 = vadd.xlane.f32.xlu0 %v2487_v4  ;;  %v2183_v12 = vmul.f32 0.0625, %v5671_v50  ;;  %v2180_v4 = vmul.f32 0.0625, %v5679_v25  ;;  %v2182_v28 = vmul.f32 0.0625, %v5685_v51  ;;  %v2189_v8 = vmul.f32 0.0625, %v5689_v48 }
 0x878   :  { %v2188_v48 = vmul.f32 0.0625, %v5703_v33 }
 0x879   :  { %v2434_v15 = vpop.permute.xlu1 %2433  ;;  %v2432_v14 = vpop.permute.xlu0 %2431  ;;  %v2196_v24 = vadd.f32 1e-05, %v2180_v4 }
 0x87a   :  { %v2496_v1 = vsel %vm241_vm1, %v2434_v15, 0.0  ;;  %v2493_v56 = vsel %vm241_vm1, %v2432_v14, 0.0  ;;  %v2197_v15 = vadd.f32 1e-05, %v2181_v46  ;;  %v2187_v14 = vmul.f32 0.0625, %v5683_v34 }
 0x87b   :  { %2497 = vadd.xlane.f32.xlu1 %v2496_v1  ;;  %2494 = vadd.xlane.f32.xlu0 %v2493_v56  ;;  %v2199_v1 = vadd.f32 1e-05, %v2183_v12  ;;  %v2201_v56 = vadd.f32 1e-05, %v2185_v35  ;;  %v2198_v34 = vadd.f32 1e-05, %v2182_v28 }
 0x87c   :  { %v2203_v50 = vadd.f32 1e-05, %v2187_v14  ;;  %v2205_v12 = vadd.f32 1e-05, %v2189_v8  ;;  %v5963_v14 = vld [vmem:[%s6756_s3] ss:$0 sm:$0xff] }
 0x87d   :  { %v2190_v28 = vmul.f32 0.0625, %v5709_v5  ;;  %v2191_v8 = vmul.f32 0.0625, %v5767_v2 }
 0x87f   :  { %v2206_v2 = vadd.f32 1e-05, %v2190_v28 }
 0x88c   :  { %2677 = vrot.lane.b32.xlu1 %v5270_v57, %s4065_s2 }
 0x890   :  { %2679 = vrot.lane.b32.xlu1 %v6971_v13, %s4065_s2 }
 0x891   :  { %2675 = vrot.lane.b32.xlu0 %v6969_v20, %s4065_s2 }
 0x894   :  { %2681 = vrot.lane.b32.xlu1 %v6972_v23, %s4065_s2 }
 0x895   :  { %2683 = vrot.lane.b32.xlu0 %v6970_v47, %s4065_s2 }
 0x898   :  { %2685 = vrot.lane.b32.xlu1 %v5279_v44, %s4065_s2 }
 0x899   :  { %2687 = vrot.lane.b32.xlu0 %v5285_v43, %s4065_s2 }
 0x89c   :  { %2689 = vrot.lane.b32.xlu1 %v5283_v60, %s4065_s2 }
 0x89d   :  { %2691 = vrot.lane.b32.xlu0 %v5289_v49, %s4065_s2 }
 0x8a0   :  { %2693 = vrot.lane.b32.xlu1 %v5287_v39, %s4065_s2 }
 0x8a1   :  { %2695 = vrot.lane.b32.xlu0 %v5293_v18, %s4065_s2 }
 0x8a4   :  { %2697 = vrot.lane.b32.xlu1 %v5291_v10, %s4065_s2 }
 0x8a5   :  { %2699 = vrot.lane.b32.xlu0 %v6964_v59, %s4065_s2 }
 0x8a8   :  { %2701 = vrot.lane.b32.xlu1 %v6967_v52, %s4065_s2 }
 0x8a9   :  { %2703 = vrot.lane.b32.xlu0 %v6966_v32, %s4065_s2 }
 0x8ac   :  { %2705 = vrot.lane.b32.xlu1 %v6968_v31, %s4065_s2 }
 0x8b0   :  { %2979 = vrot.lane.b32.xlu1 %v6969_v20, %s4066_s9 }
 0x8b4   :  { %2981 = vrot.lane.b32.xlu1 %v5270_v57, %s4066_s9 }
 0x8b8   :  { %2983 = vrot.lane.b32.xlu1 %v6971_v13, %s4066_s9 }
 0x8bc   :  { %2985 = vrot.lane.b32.xlu1 %v6972_v23, %s4066_s9 }
 0x8c0   :  { %2987 = vrot.lane.b32.xlu1 %v6970_v47, %s4066_s9 }
 0x8c4   :  { %2989 = vrot.lane.b32.xlu1 %v5279_v44, %s4066_s9 }
 0x8c8   :  { %2991 = vrot.lane.b32.xlu1 %v5285_v43, %s4066_s9 }
 0x8cc   :  { %2995 = vrot.lane.b32.xlu1 %v5289_v49, %s4066_s9 }
 0x8d0   :  { %2997 = vrot.lane.b32.xlu1 %v5287_v39, %s4066_s9 }
 0x8d4   :  { %2999 = vrot.lane.b32.xlu1 %v5293_v18, %s4066_s9 }
 0x8d8   :  { %3001 = vrot.lane.b32.xlu1 %v5291_v10, %s4066_s9 }
 0x8db   :  { %v2453_v38 = vpop.xlane.xlu0 %2452 }
 0x8dc   :  { %3003 = vrot.lane.b32.xlu1 %v6964_v59, %s4066_s9  ;;  %v2499_v42 = vmul.f32 0.0625, %v2453_v38  ;;  %v2184_v38 = vmul.f32 0.0625, %v5691_v27 }
 0x8de   :  { %v2515_v0 = vadd.f32 1e-05, %v2499_v42  ;;  %v3931_v42 = vpop.eup %3930  ;;  %v2200_v51 = vadd.f32 1e-05, %v2184_v38 }
 0x8e0   :  { %3005 = vrot.lane.b32.xlu1 %v6967_v52, %s4066_s9  ;;  %3932 = vrsqrt.f32 %v2515_v0  ;;  %v2186_v0 = vmul.f32 0.0625, %v5695_v30 }
 0x8e1   :  { %3934 = vrsqrt.f32 %v2197_v15 }
 0x8e2   :  { %3936 = vrsqrt.f32 %v2199_v1 }
 0x8e3   :  { %3938 = vrsqrt.f32 %v2201_v56  ;;  %v2202_v56 = vadd.f32 1e-05, %v2186_v0 }
 0x8e4   :  { %3009 = vrot.lane.b32.xlu1 %v6968_v31, %s4066_s9  ;;  %3940 = vrsqrt.f32 %v2196_v24  ;;  %v6975_v24 = vld [vmem:[#allocation51_spill] sm:$0xff] }
 0x8e5   :  { %3942 = vrsqrt.f32 %v2203_v50  ;;  %v2563_v33 = vsel %vm30_vm2, %v5791_v21, %v6975_v24 }
 0x8e8   :  { %v2456_v58 = vpop.xlane.xlu1 %2455 }
 0x8e9   :  { %v2500_v25 = vmul.f32 0.0625, %v2456_v58  ;;  %v2204_v58 = vadd.f32 1e-05, %v2188_v48 }
 0x8ea   :  { %v3933_v46 = vpop.eup %3932 }
 0x8eb   :  { %v2516_v35 = vadd.f32 1e-05, %v2500_v25  ;;  %v2547_v15 = vsel %vm30_vm2, %v3933_v46, %v3931_v42  ;;  %v2193_v25 = vmul.f32 0.0625, %v5769_v16  ;;  %v3935_v46 = vpop.eup %3934  ;;  %v2192_v16 = vmul.f32 0.0625, %v5772_v17 }
 0x8ec   :  { %v2459_v27 = vpop.xlane.xlu0 %2458  ;;  %v2579_v1 = vmul.f32 %v5963_v14, %v2547_v15 }
 0x8ed   :  { %3944 = vrsqrt.f32 %v2516_v35  ;;  %v2501_v30 = vmul.f32 0.0625, %v2459_v27  ;;  %v2207_v35 = vadd.f32 1e-05, %v2191_v8  ;;  %v2209_v27 = vadd.f32 1e-05, %v2193_v25 }
 0x8ee   :  { %3946 = vrsqrt.f32 %v2198_v34  ;;  %v2595_v50 = vmul.f32 %v2579_v1, %v2563_v33  ;;  %v5976_v34 = vld [vmem:[%s6757_s4] ss:$0 sm:$0xff]  ;;  %v2627_v0 = vmul.f32 %v2579_v1, %v6969_v20 }
 0x8ef   :  { %3948 = vrsqrt.f32 %v2205_v12  ;;  %v2517_v38 = vadd.f32 1e-05, %v2501_v30  ;;  %v5980_v12 = vpop.eup %3936  ;;  %v2194_v30 = vmul.f32 0.0625, %v5774_v7 }
 0x8f0   :  { %3950 = vrsqrt.f32 %v2200_v51  ;;  %v2462_v42 = vpop.xlane.xlu0 %2461  ;;  %v2611_v5 = vsub.f32 %v5976_v34, %v2595_v50  ;;  %v5983_v15 = vpop.eup %3938  ;;  %v2208_v50 = vadd.f32 1e-05, %v2192_v16 }
 0x8f1   :  { %3952 = vrsqrt.f32 %v2517_v38  ;;  %v2502_v21 = vmul.f32 0.0625, %v2462_v42  ;;  %v3941_v1 = vpop.eup %3940  ;;  %v2210_v7 = vadd.f32 1e-05, %v2194_v30 }
 0x8f2   :  { %3954 = vrsqrt.f32 %v2202_v56  ;;  %v2643_v51 = vadd.f32 %v2627_v0, %v2611_v5  ;;  %v5990_v33 = vpop.eup %3942 }
 0x8f3   :  { %v2518_v48 = vadd.f32 1e-05, %v2502_v21  ;;  %3956 = vrsqrt.f32 %v2204_v58 }
 0x8f4   :  { %v2468_v24 = vpop.xlane.xlu1 %2467  ;;  %2659 = vst.msk [vmem:[%s6760_s6] sm:$0xff] %vm47_vm0, %v2643_v51  ;;  %v2465_v28 = vpop.xlane.xlu0 %2464 }
 0x8f5   :  { %3958 = vrsqrt.f32 %v2518_v48  ;;  %v2504_v56 = vmul.f32 0.0625, %v2468_v24  ;;  %v2503_v17 = vmul.f32 0.0625, %v2465_v28  ;;  %v6976_v24 = vld [vmem:[#allocation17_spill] sm:$0xff] }
 0x8f6   :  { %3960 = vrsqrt.f32 %v2206_v2 }
 0x8f7   :  { %v3945_v8 = vpop.eup %3944  ;;  %3962 = vrsqrt.f32 %v2207_v35  ;;  %v2520_v38 = vadd.f32 1e-05, %v2504_v56  ;;  %v2519_v42 = vadd.f32 1e-05, %v2503_v17  ;;  %v2564_v35 = vsel %vm30_vm2, %v5796_v29, %v6976_v24 }
 0x8f8   :  { %v3947_v58 = vpop.eup %3946  ;;  %3964 = vrsqrt.f32 %v2209_v27  ;;  %v2548_v25 = vsel %vm30_vm2, %v3945_v8, %v3941_v1  ;;  %v2474_v5 = vpop.xlane.xlu1 %2473 }
 0x8f9   :  { %v5994_v0 = vpop.eup %3948  ;;  %v2580_v21 = vmul.f32 %v5963_v14, %v2548_v25  ;;  %3966 = vrsqrt.f32 %v2520_v38  ;;  %v2506_v51 = vmul.f32 0.0625, %v2474_v5  ;;  %v2471_v2 = vpop.xlane.xlu0 %2470 }
 0x8fa   :  { %v3951_v48 = vpop.eup %3950  ;;  %3968 = vrsqrt.f32 %v2519_v42  ;;  %v2505_v16 = vmul.f32 0.0625, %v2471_v2 }
 0x8fb   :  { %v3953_v27 = vpop.eup %3952  ;;  %3970 = vrsqrt.f32 %v2208_v50  ;;  %v2596_v30 = vmul.f32 %v2580_v21, %v2564_v35  ;;  %v2522_v1 = vadd.f32 1e-05, %v2506_v51  ;;  %v2628_v28 = vmul.f32 %v5270_v57, %v2580_v21  ;;  %v6977_v51 = vld [vmem:[#allocation8_spill] sm:$0xff] }
 0x8fc   :  { %v6001_v56 = vpop.eup %3954  ;;  %3972 = vrsqrt.f32 %v2210_v7  ;;  %v2549_v17 = vsel %vm30_vm2, %v3953_v27, %v3935_v46  ;;  %v2521_v8 = vadd.f32 1e-05, %v2505_v16  ;;  %v2480_v38 = vpop.xlane.xlu1 %2479  ;;  %v2565_v7 = vsel %vm30_vm2, %v5800_v3, %v6977_v51  ;;  %v6978_v46 = vld [vmem:[#allocation9_spill] sm:$0xff] }
 0x8fd   :  { %v2612_v25 = vsub.f32 %v5976_v34, %v2596_v30  ;;  %v2581_v29 = vmul.f32 %v5963_v14, %v2549_v17  ;;  %3974 = vrsqrt.f32 %v2522_v1  ;;  %v2508_v42 = vmul.f32 0.0625, %v2480_v38  ;;  %v2477_v5 = vpop.xlane.xlu0 %2476  ;;  %v6008_v50 = vpop.eup %3956  ;;  %v6979_v1 = vld [vmem:[#allocation10_spill] sm:$0xff] }
 0x8fe   :  { %3976 = vrsqrt.f32 %v2521_v8  ;;  %v2507_v21 = vmul.f32 0.0625, %v2477_v5  ;;  %v2566_v24 = vsel %vm30_vm2, %v5805_v40, %v6978_v46  ;;  %v2568_v17 = vsel %vm30_vm2, %v5810_v26, %v6979_v1 }
 0x8ff   :  { %v3959_v2 = vpop.eup %3958  ;;  %v2644_v35 = vadd.f32 %v2628_v28, %v2612_v25  ;;  %v2597_v16 = vmul.f32 %v2581_v29, %v2565_v7  ;;  %v2524_v27 = vadd.f32 1e-05, %v2508_v42  ;;  %v2629_v3 = vmul.f32 %v2581_v29, %v6971_v13  ;;  %v6980_v42 = vld [vmem:[#allocation41_spill] sm:$0xff]  ;;  %v6981_v7 = vld [vmem:[#allocation23_spill] sm:$0xff] }
 0x900   :  { %v6018_v30 = vpop.eup %3960  ;;  %v2550_v8 = vsel %vm30_vm2, %v3959_v2, %v3947_v58  ;;  %v2523_v38 = vadd.f32 1e-05, %v2507_v21  ;;  %v2486_v5 = vpop.xlane.xlu1 %2485  ;;  %v2567_v58 = vsel %vm30_vm2, %v5812_v6, %v6980_v42  ;;  %v2570_v21 = vsel %vm30_vm2, %v5819_v62, %v6981_v7 }
 0x901   :  { %v6027_v51 = vpop.eup %3962  ;;  %2660 = vst.msk [vmem:[%s6760_s6 + $0x10] sm:$0xff] %vm47_vm0, %v2644_v35  ;;  %v2613_v40 = vsub.f32 %v5976_v34, %v2597_v16  ;;  %v2582_v28 = vmul.f32 %v5963_v14, %v2550_v8  ;;  %3978 = vrsqrt.f32 %v2524_v27  ;;  %v2510_v26 = vmul.f32 0.0625, %v2486_v5  ;;  %v2483_v25 = vpop.xlane.xlu0 %2482  ;;  %v6982_v35 = vld [vmem:[#allocation31_spill] sm:$0xff] }
 0x902   :  { %v6035_v29 = vpop.eup %3964  ;;  %3980 = vrsqrt.f32 %v2523_v38  ;;  %v2509_v2 = vmul.f32 0.0625, %v2483_v25  ;;  %v2569_v16 = vsel %vm30_vm2, %v5821_v54, %v6982_v35  ;;  %v6053_v6 = vsel %vm30_vm2, %v5829_v61, %v5550_v41 }
 0x903   :  { %v3967_v46 = vpop.eup %3966  ;;  %v2645_v27 = vadd.f32 %v2629_v3, %v2613_v40  ;;  %v2598_v1 = vmul.f32 %v2582_v28, %v2566_v24  ;;  %v2526_v8 = vadd.f32 1e-05, %v2510_v26  ;;  %v2630_v62 = vmul.f32 %v6972_v23, %v2582_v28 }
 0x904   :  { %v3969_v5 = vpop.eup %3968  ;;  %v2552_v38 = vsel %vm30_vm2, %v3967_v46, %v3951_v48  ;;  %v2525_v25 = vadd.f32 1e-05, %v2509_v2  ;;  %v2492_v42 = vpop.xlane.xlu1 %2491  ;;  %v6983_v2 = vld [vmem:[#allocation43_spill] sm:$0xff] }
 0x905   :  { %v6058_v7 = vpop.eup %3970  ;;  %2661 = vst.msk [vmem:[%s6760_s6 + $0x20] sm:$0xff] %vm47_vm0, %v2645_v27  ;;  %v2614_v54 = vsub.f32 %v5976_v34, %v2598_v1  ;;  %v2584_v24 = vmul.f32 %v5963_v14, %v2552_v38  ;;  %v2551_v41 = vsel %vm30_vm2, %v3969_v5, %v5980_v12  ;;  %3982 = vrsqrt.f32 %v2526_v8  ;;  %v2489_v61 = vpop.xlane.xlu0 %2488 }
 0x906   :  { %v6069_v48 = vpop.eup %3972  ;;  %v2583_v3 = vmul.f32 %v5963_v14, %v2551_v41  ;;  %3984 = vrsqrt.f32 %v2525_v25  ;;  %v2512_v40 = vmul.f32 0.0625, %v2492_v42  ;;  %v2511_v28 = vmul.f32 0.0625, %v2489_v61 }
 0x907   :  { %v3975_v26 = vpop.eup %3974  ;;  %v2571_v46 = vsel %vm30_vm2, %v5831_v37, %v6983_v2  ;;  %v2646_v35 = vadd.f32 %v2630_v62, %v2614_v54  ;;  %v2600_v27 = vmul.f32 %v2584_v24, %v2568_v17  ;;  %v2632_v1 = vmul.f32 %v5279_v44, %v2584_v24 }
 0x908   :  { %v3977_v12 = vpop.eup %3976  ;;  %v2599_v8 = vmul.f32 %v2583_v3, %v2567_v58  ;;  %v2631_v5 = vmul.f32 %v2583_v3, %v6970_v47  ;;  %v2554_v38 = vsel %vm30_vm2, %v3975_v26, %v6001_v56  ;;  %v2528_v25 = vadd.f32 1e-05, %v2512_v40  ;;  %v2498_v42 = vpop.xlane.xlu1 %2497 }
 0x909   :  { %2662 = vst.msk [vmem:[%s6760_s6 + $0x30] sm:$0xff] %vm47_vm0, %v2646_v35  ;;  %v2616_v37 = vsub.f32 %v5976_v34, %v2600_v27  ;;  %v2586_v17 = vmul.f32 %v5963_v14, %v2554_v38  ;;  %v2553_v58 = vsel %vm30_vm2, %v3977_v12, %v5983_v15  ;;  %v2527_v62 = vadd.f32 1e-05, %v2511_v28  ;;  %v2495_v54 = vpop.xlane.xlu0 %2494 }
 0x90a   :  { %v2615_v24 = vsub.f32 %v5976_v34, %v2599_v8  ;;  %v2585_v56 = vmul.f32 %v5963_v14, %v2553_v58  ;;  %3986 = vrsqrt.f32 %v2528_v25  ;;  %v2514_v41 = vmul.f32 0.0625, %v2498_v42 }
 0x90b   :  { %v3979_v61 = vpop.eup %3978  ;;  %v2648_v3 = vadd.f32 %v2632_v1, %v2616_v37  ;;  %v2602_v40 = vmul.f32 %v2586_v17, %v2570_v21  ;;  %v2634_v26 = vmul.f32 %v5283_v60, %v2586_v17  ;;  %3988 = vrsqrt.f32 %v2527_v62 }
 0x90c   :  { %v3981_v2 = vpop.eup %3980  ;;  %v2647_v35 = vadd.f32 %v2631_v5, %v2615_v24  ;;  %v2601_v27 = vmul.f32 %v2585_v56, %v2569_v16  ;;  %v2633_v38 = vmul.f32 %v2585_v56, %v5285_v43  ;;  %v2556_v15 = vsel %vm30_vm2, %v3979_v61, %v6008_v50  ;;  %v6097_v28 = vpop.permute.xlu1 %2677 }
 0x90d   :  { %2664 = vst.msk [vmem:[%s6760_s6 + $0x50] sm:$0xff] %vm47_vm0, %v2648_v3  ;;  %v2618_v21 = vsub.f32 %v5976_v34, %v2602_v40  ;;  %v2588_v1 = vmul.f32 %v5963_v14, %v2556_v15  ;;  %v2555_v16 = vsel %vm30_vm2, %v3981_v2, %v5990_v33  ;;  %v2530_v12 = vadd.f32 1e-05, %v2514_v41  ;;  %v2676_v8 = vpop.permute.xlu0 %2675  ;;  %v6984_v2 = vld [vmem:[#allocation34_spill] sm:$0xff] }
 0x90e   :  { %2663 = vst.msk [vmem:[%s6760_s6 + $0x40] sm:$0xff] %vm47_vm0, %v2647_v35  ;;  %v2617_v50 = vsub.f32 %v5976_v34, %v2601_v27  ;;  %v2587_v5 = vmul.f32 %v5963_v14, %v2555_v16  ;;  %v2513_v25 = vmul.f32 0.0625, %v2495_v54  ;;  %v2723_v42 = vsel %vm241_vm1, %v2676_v8, 0.0 }
 0x90f   :  { %v3983_v37 = vpop.eup %3982  ;;  %v2574_v33 = vsel %vm30_vm2, %v5839_v22, %v5556_v11  ;;  %v2650_v17 = vadd.f32 %v2634_v26, %v2618_v21  ;;  %v2604_v58 = vmul.f32 %v2588_v1, %v6053_v6  ;;  %3990 = vrsqrt.f32 %v2530_v12  ;;  %2724 = vadd.xlane.f32.xlu0 %v2723_v42 }
 0x910   :  { %v3985_v62 = vpop.eup %3984  ;;  %v2649_v24 = vadd.f32 %v2633_v38, %v2617_v50  ;;  %v2636_v56 = vmul.f32 %v5287_v39, %v2588_v1  ;;  %v2603_v41 = vmul.f32 %v2587_v5, %v2571_v46  ;;  %v2558_v54 = vsel %vm30_vm2, %v3983_v37, %v6018_v30  ;;  %v2680_v61 = vpop.permute.xlu1 %2679 }
 0x911   :  { %2666 = vst.msk [vmem:[%s6760_s6 + $0x70] sm:$0xff] %vm47_vm0, %v2650_v17  ;;  %v2620_v11 = vsub.f32 %v5976_v34, %v2604_v58  ;;  %v2590_v22 = vmul.f32 %v5963_v14, %v2558_v54  ;;  %v2557_v6 = vsel %vm30_vm2, %v3985_v62, %v5994_v0  ;;  %v2529_v3 = vadd.f32 1e-05, %v2513_v25 }
 0x912   :  { %2665 = vst.msk [vmem:[%s6760_s6 + $0x60] sm:$0xff] %vm47_vm0, %v2649_v24  ;;  %v2619_v30 = vsub.f32 %v5976_v34, %v2603_v41  ;;  %v2635_v46 = vmul.f32 %v2587_v5, %v5289_v49  ;;  %v2589_v40 = vmul.f32 %v5963_v14, %v2557_v6  ;;  %v2729_v26 = vsel %vm241_vm1, %v2680_v61, 0.0 }
 0x913   :  { %v2573_v35 = vsel %vm30_vm2, %v5841_v45, %v6984_v2  ;;  %v2652_v0 = vadd.f32 %v2636_v56, %v2620_v11  ;;  %v2606_v27 = vmul.f32 %v2590_v22, %v2574_v33  ;;  %3992 = vrsqrt.f32 %v2529_v3  ;;  %2730 = vadd.xlane.f32.xlu1 %v2729_v26  ;;  %v6985_v2 = vld [vmem:[#allocation46_spill] sm:$0xff] }
 0x914   :  { %v3987_v38 = vpop.eup %3986  ;;  %v2651_v15 = vadd.f32 %v2635_v46, %v2619_v30  ;;  %v2605_v21 = vmul.f32 %v2589_v40, %v2573_v35  ;;  %v6145_v1 = vpop.permute.xlu1 %2681  ;;  %v2638_v8 = vmul.f32 %v5291_v10, %v2590_v22  ;;  %v2637_v5 = vmul.f32 %v2589_v40, %v5293_v18  ;;  %v6986_v35 = vld [vmem:[#allocation15_spill] sm:$0xff] }
 0x915   :  { %v3989_v16 = vpop.eup %3988  ;;  %2668 = vst.msk [vmem:[%s6760_s6 + $0x90] sm:$0xff] %vm47_vm0, %v2652_v0  ;;  %v2622_v12 = vsub.f32 %v5976_v34, %v2606_v27  ;;  %v2560_v45 = vsel %vm30_vm2, %v3987_v38, %v6058_v7  ;;  %v2576_v7 = vsel %vm30_vm2, %v5849_v9, %v5635_v63  ;;  %v2575_v17 = vsel %vm30_vm2, %v5851_v36, %v5627_v19 }
 0x916   :  { %2667 = vst.msk [vmem:[%s6760_s6 + $0x80] sm:$0xff] %vm47_vm0, %v2651_v15  ;;  %v2621_v50 = vsub.f32 %v5976_v34, %v2605_v21  ;;  %v2592_v25 = vmul.f32 %v5963_v14, %v2560_v45  ;;  %v2559_v42 = vsel %vm30_vm2, %v3989_v16, %v6027_v51  ;;  %v2578_v11 = vsel %vm30_vm2, %v5859_v53, %v5640_v55 }
 0x917   :  { %v2654_v37 = vadd.f32 %v2638_v8, %v2622_v12  ;;  %v2591_v33 = vmul.f32 %v5963_v14, %v2559_v42  ;;  %v2577_v0 = vsel %vm30_vm2, %v6986_v35, %v6985_v2 }
 0x918   :  { %v2653_v58 = vadd.f32 %v2637_v5, %v2621_v50  ;;  %v2608_v62 = vmul.f32 %v2592_v25, %v2576_v7  ;;  %v2686_v24 = vpop.permute.xlu1 %2685  ;;  %v2640_v19 = vmul.f32 %v6967_v52, %v2592_v25 }
 0x919   :  { %v3991_v56 = vpop.eup %3990  ;;  %2670 = vst.msk [vmem:[%s6760_s6 + $0xb0] sm:$0xff] %vm47_vm0, %v2654_v37  ;;  %v2607_v51 = vmul.f32 %v2591_v33, %v2575_v17  ;;  %v2738_v63 = vsel %vm241_vm1, %v2686_v24, 0.0  ;;  %v2639_v54 = vmul.f32 %v2591_v33, %v6964_v59 }
 0x91a   :  { %2669 = vst.msk [vmem:[%s6760_s6 + $0xa0] sm:$0xff] %vm47_vm0, %v2653_v58  ;;  %v2624_v9 = vsub.f32 %v5976_v34, %v2608_v62  ;;  %v2562_v36 = vsel %vm30_vm2, %v3991_v56, %v6069_v48  ;;  %2739 = vadd.xlane.f32.xlu1 %v2738_v63  ;;  %v2684_v62 = vpop.permute.xlu0 %2683 }
 0x91b   :  { %v2623_v41 = vsub.f32 %v5976_v34, %v2607_v51  ;;  %v2594_v61 = vmul.f32 %v5963_v14, %v2562_v36  ;;  %v2726_v51 = vsel %vm241_vm1, %v6097_v28, 0.0  ;;  %v2735_v36 = vsel %vm241_vm1, %v2684_v62, 0.0 }
 0x91c   :  { %v2656_v22 = vadd.f32 %v2640_v19, %v2624_v9  ;;  %v2690_v6 = vpop.permute.xlu1 %2689  ;;  %v2732_v9 = vsel %vm241_vm1, %v6145_v1, 0.0 }
 0x91d   :  { %v3993_v3 = vpop.eup %3992  ;;  %v2655_v30 = vadd.f32 %v2639_v54, %v2623_v41  ;;  %v2610_v46 = vmul.f32 %v2594_v61, %v2578_v11  ;;  %v2744_v40 = vsel %vm241_vm1, %v2690_v6, 0.0  ;;  %v2642_v53 = vmul.f32 %v6968_v31, %v2594_v61 }
 0x91e   :  { %2672 = vst.msk [vmem:[%s6760_s6 + $0xd0] sm:$0xff] %vm47_vm0, %v2656_v22  ;;  %v2561_v48 = vsel %vm30_vm2, %v3993_v3, %v6035_v29  ;;  %2745 = vadd.xlane.f32.xlu1 %v2744_v40  ;;  %v2688_v63 = vpop.permute.xlu0 %2687 }
 0x91f   :  { %2671 = vst.msk [vmem:[%s6760_s6 + $0xc0] sm:$0xff] %vm47_vm0, %v2655_v30  ;;  %v2626_v55 = vsub.f32 %v5976_v34, %v2610_v46  ;;  %v2593_v26 = vmul.f32 %v5963_v14, %v2561_v48  ;;  %v2741_v41 = vsel %vm241_vm1, %v2688_v63, 0.0 }
 0x920   :  { %v2694_v27 = vpop.permute.xlu1 %2693 }
 0x921   :  { %v2658_v38 = vadd.f32 %v2642_v53, %v2626_v55  ;;  %v2609_v29 = vmul.f32 %v2593_v26, %v2577_v0  ;;  %v2750_v15 = vsel %vm241_vm1, %v2694_v27, 0.0  ;;  %v2641_v14 = vmul.f32 %v2593_v26, %v6966_v32 }
 0x922   :  { %2751 = vadd.xlane.f32.xlu1 %v2750_v15  ;;  %v2692_v19 = vpop.permute.xlu0 %2691 }
 0x923   :  { %2674 = vst.msk [vmem:[%s6760_s6 + $0xf0] sm:$0xff] %vm47_vm0, %v2658_v38  ;;  %v2625_v21 = vsub.f32 %v5976_v34, %v2609_v29  ;;  %v2747_v61 = vsel %vm241_vm1, %v2692_v19, 0.0 }
 0x924   :  { %v2698_v16 = vpop.permute.xlu1 %2697 }
 0x925   :  { %v2657_v12 = vadd.f32 %v2641_v14, %v2625_v21  ;;  %2993 = vrot.lane.b32.xlu0 %v5283_v60, %s4066_s9  ;;  %v2756_v8 = vsel %vm241_vm1, %v2698_v16, 0.0 }
 0x926   :  { %2757 = vadd.xlane.f32.xlu1 %v2756_v8  ;;  %v2696_v54 = vpop.permute.xlu0 %2695 }
 0x927   :  { %2673 = vst.msk [vmem:[%s6760_s6 + $0xe0] sm:$0xff] %vm47_vm0, %v2657_v12  ;;  %v2753_v28 = vsel %vm241_vm1, %v2696_v54, 0.0 }
 0x928   :  { %v2702_v45 = vpop.permute.xlu1 %2701 }
 0x929   :  { %3007 = vrot.lane.b32.xlu0 %v6966_v32, %s4066_s9  ;;  %v2762_v34 = vsel %vm241_vm1, %v2702_v45, 0.0 }
 0x92a   :  { %2763 = vadd.xlane.f32.xlu1 %v2762_v34  ;;  %v2700_v11 = vpop.permute.xlu0 %2699 }
 0x92b   :  { %v2759_v6 = vsel %vm241_vm1, %v2700_v11, 0.0 }
 0x92c   :  { %v2706_v50 = vpop.permute.xlu1 %2705 }
 0x92d   :  { %v2768_v5 = vsel %vm241_vm1, %v2706_v50, 0.0 }
 0x92e   :  { %2769 = vadd.xlane.f32.xlu1 %v2768_v5  ;;  %v2704_v1 = vpop.permute.xlu0 %2703 }
 0x92f   :  { %v2765_v3 = vsel %vm241_vm1, %v2704_v1, 0.0 }
 0x930   :  { %v2980_v25 = vpop.permute.xlu1 %2979 }
 0x931   :  { %v3027_v46 = vsel %vm241_vm1, %v2980_v25, 0.0 }
 0x934   :  { %v2982_v42 = vpop.permute.xlu1 %2981 }
 0x935   :  { %v3030_v7 = vsel %vm241_vm1, %v2982_v42, 0.0 }
 0x936   :  { %3031 = vadd.xlane.f32.xlu1 %v3030_v7 }
 0x938   :  { %v2984_v37 = vpop.permute.xlu1 %2983 }
 0x939   :  { %v3033_v48 = vsel %vm241_vm1, %v2984_v37, 0.0 }
 0x93c   :  { %v2986_v33 = vpop.permute.xlu1 %2985 }
 0x93d   :  { %v3036_v17 = vsel %vm241_vm1, %v2986_v33, 0.0 }
 0x93e   :  { %3037 = vadd.xlane.f32.xlu1 %v3036_v17 }
 0x940   :  { %v2988_v58 = vpop.permute.xlu1 %2987 }
 0x941   :  { %v3039_v55 = vsel %vm241_vm1, %v2988_v58, 0.0 }
 0x944   :  { %v2990_v24 = vpop.permute.xlu1 %2989 }
 0x945   :  { %v3042_v56 = vsel %vm241_vm1, %v2990_v24, 0.0 }
 0x946   :  { %3043 = vadd.xlane.f32.xlu1 %v3042_v56 }
 0x948   :  { %2727 = vadd.xlane.f32.xlu0 %v2726_v51  ;;  %v2992_v22 = vpop.permute.xlu1 %2991 }
 0x949   :  { %v3045_v26 = vsel %vm241_vm1, %v2992_v22, 0.0 }
 0x94c   :  { %2733 = vadd.xlane.f32.xlu0 %v2732_v9  ;;  %v2996_v30 = vpop.permute.xlu1 %2995 }
 0x94d   :  { %v3051_v35 = vsel %vm241_vm1, %v2996_v30, 0.0 }
 0x950   :  { %2736 = vadd.xlane.f32.xlu0 %v2735_v36  ;;  %v2998_v40 = vpop.permute.xlu1 %2997 }
 0x951   :  { %v3054_v45 = vsel %vm241_vm1, %v2998_v40, 0.0 }
 0x954   :  { %2742 = vadd.xlane.f32.xlu0 %v2741_v41  ;;  %v3000_v53 = vpop.permute.xlu1 %2999 }
 0x955   :  { %v3057_v0 = vsel %vm241_vm1, %v3000_v53, 0.0 }
 0x958   :  { %2748 = vadd.xlane.f32.xlu0 %v2747_v61  ;;  %v3002_v2 = vpop.permute.xlu1 %3001 }
 0x959   :  { %v3060_v5 = vsel %vm241_vm1, %v3002_v2, 0.0 }
 0x95c   :  { %2754 = vadd.xlane.f32.xlu0 %v2753_v28  ;;  %v3004_v27 = vpop.permute.xlu1 %3003 }
 0x95d   :  { %v3063_v38 = vsel %vm241_vm1, %v3004_v27, 0.0 }
 0x960   :  { %2760 = vadd.xlane.f32.xlu0 %v2759_v6  ;;  %v3006_v29 = vpop.permute.xlu1 %3005 }
 0x961   :  { %v3066_v25 = vsel %vm241_vm1, %v3006_v29, 0.0 }
 0x964   :  { %2766 = vadd.xlane.f32.xlu0 %v2765_v3  ;;  %v3010_v14 = vpop.permute.xlu1 %3009 }
 0x965   :  { %v3072_v7 = vsel %vm241_vm1, %v3010_v14, 0.0 }
 0x968   :  { %3028 = vadd.xlane.f32.xlu0 %v3027_v46 }
 0x96c   :  { %3034 = vadd.xlane.f32.xlu0 %v3033_v48 }
 0x970   :  { %3040 = vadd.xlane.f32.xlu0 %v3039_v55 }
 0x974   :  { %3046 = vadd.xlane.f32.xlu0 %v3045_v26 }
 0x978   :  { %3052 = vadd.xlane.f32.xlu0 %v3051_v35 }
 0x97c   :  { %3058 = vadd.xlane.f32.xlu0 %v3057_v0 }
 0x980   :  { %3064 = vadd.xlane.f32.xlu0 %v3063_v38 }
 0x99c   :  { %v2725_v15 = vpop.xlane.xlu0 %2724 }
 0x99d   :  { %v6259_v37 = vmul.f32 0.0625, %v2725_v15 }
 0x99f   :  { %v2787_v17 = vsub.f32 %v6969_v20, %v6259_v37 }
 0x9a0   :  { %v2994_v21 = vpop.permute.xlu0 %2993  ;;  %v2731_v8 = vpop.xlane.xlu1 %2730 }
 0x9a1   :  { %v3048_v16 = vsel %vm241_vm1, %v2994_v21, 0.0  ;;  %v2803_v58 = vmul.f32 %v2787_v17, %v2787_v17  ;;  %v6266_v54 = vmul.f32 0.0625, %v2731_v8 }
 0x9a2   :  { %3049 = vadd.xlane.f32.xlu1 %v3048_v16 }
 0x9a3   :  { %v2789_v3 = vsub.f32 %v6971_v13, %v6266_v54 }
 0x9a4   :  { %v3008_v12 = vpop.permute.xlu0 %3007 }
 0x9a5   :  { %v3069_v34 = vsel %vm241_vm1, %v3008_v12, 0.0  ;;  %v2805_v2 = vmul.f32 %v2789_v3, %v2789_v3 }
 0x9a6   :  { %3055 = vadd.xlane.f32.xlu1 %v3054_v45  ;;  %3070 = vadd.xlane.f32.xlu0 %v3069_v34 }
 0x9a7   :  { %v2740_v50 = vpop.xlane.xlu1 %2739 }
 0x9a8   :  { %v2776_v19 = vmul.f32 0.0625, %v2740_v50 }
 0x9aa   :  { %3061 = vadd.xlane.f32.xlu1 %v3060_v5  ;;  %v2792_v53 = vsub.f32 %v5279_v44, %v2776_v19 }
 0x9ab   :  { %v2746_v42 = vpop.xlane.xlu1 %2745 }
 0x9ac   :  { %v6293_v35 = vmul.f32 0.0625, %v2746_v42  ;;  %v2808_v29 = vmul.f32 %v2792_v53, %v2792_v53 }
 0x9ae   :  { %3067 = vadd.xlane.f32.xlu1 %v3066_v25  ;;  %v2794_v21 = vsub.f32 %v5283_v60, %v6293_v35 }
 0x9af   :  { %v2752_v33 = vpop.xlane.xlu1 %2751 }
 0x9b0   :  { %v6303_v14 = vmul.f32 0.0625, %v2752_v33  ;;  %v2810_v50 = vmul.f32 %v2794_v21, %v2794_v21 }
 0x9b2   :  { %3073 = vadd.xlane.f32.xlu1 %v3072_v7  ;;  %v2796_v5 = vsub.f32 %v5287_v39, %v6303_v14 }
 0x9b3   :  { %v2758_v62 = vpop.xlane.xlu1 %2757 }
 0x9b4   :  { %v6311_v45 = vmul.f32 0.0625, %v2758_v62 }
 0x9b6   :  { %v2798_v33 = vsub.f32 %v5291_v10, %v6311_v45 }
 0x9b7   :  { %v2764_v24 = vpop.xlane.xlu1 %2763 }
 0x9b8   :  { %v6323_v62 = vmul.f32 0.0625, %v2764_v24 }
 0x9bb   :  { %v2770_v56 = vpop.xlane.xlu1 %2769 }
 0x9bc   :  { %2835 = vrot.lane.b32.xlu0 %v2803_v58, %s4065_s2  ;;  %v2812_v58 = vmul.f32 %v2796_v5, %v2796_v5 }
 0x9c3   :  { %v3032_v51 = vpop.xlane.xlu1 %3031 }
 0x9c4   :  { %v6268_v61 = vmul.f32 0.0625, %v3032_v51 }
 0x9cb   :  { %v3038_v63 = vpop.xlane.xlu1 %3037 }
 0x9cc   :  { %v6283_v30 = vmul.f32 0.0625, %v3038_v63 }
 0x9d3   :  { %v3044_v9 = vpop.xlane.xlu1 %3043 }
 0x9d4   :  { %v6264_v36 = vmul.f32 0.0625, %v3044_v9 }
 0x9d5   :  { %v2728_v41 = vpop.xlane.xlu0 %2727 }
 0x9d6   :  { %v6273_v11 = vsel %vm30_vm2, %v6264_v36, %v2776_v19  ;;  %v2772_v28 = vmul.f32 0.0625, %v2728_v41  ;;  %v2814_v19 = vmul.f32 %v2798_v33, %v2798_v33  ;;  %v3096_v33 = vsub.f32 %v5279_v44, %v6264_v36 }
 0x9d8   :  { %v2788_v22 = vsub.f32 %v5270_v57, %v2772_v28  ;;  %v6279_v6 = vsel %vm30_vm2, %v6268_v61, %v2772_v28  ;;  %v2800_v28 = vsub.f32 %v6967_v52, %v6323_v62 }
 0x9d9   :  { %v2734_v1 = vpop.xlane.xlu0 %2733 }
 0x9da   :  { %v2804_v46 = vmul.f32 %v2788_v22, %v2788_v22  ;;  %v2774_v40 = vmul.f32 0.0625, %v2734_v1  ;;  %v6333_v22 = vmul.f32 0.0625, %v2770_v56 }
 0x9dc   :  { %v2790_v48 = vsub.f32 %v6972_v23, %v2774_v40  ;;  %v6289_v55 = vsel %vm30_vm2, %v6283_v30, %v2774_v40  ;;  %2837 = vrot.lane.b32.xlu1 %v2804_v46, %s4065_s2  ;;  %v2816_v40 = vmul.f32 %v2800_v28, %v2800_v28 }
 0x9dd   :  { %v2737_v26 = vpop.xlane.xlu0 %2736 }
 0x9de   :  { %v2806_v0 = vmul.f32 %v2790_v48, %v2790_v48  ;;  %v6295_v27 = vmul.f32 0.0625, %v2737_v26  ;;  %v2802_v48 = vsub.f32 %v6968_v31, %v6333_v22 }
 0x9e0   :  { %v2791_v38 = vsub.f32 %v6970_v47, %v6295_v27  ;;  %2839 = vrot.lane.b32.xlu1 %v2805_v2, %s4065_s2  ;;  %2841 = vrot.lane.b32.xlu0 %v2806_v0, %s4065_s2  ;;  %v2818_v0 = vmul.f32 %v2802_v48, %v2802_v48 }
 0x9e1   :  { %v2743_v15 = vpop.xlane.xlu0 %2742 }
 0x9e2   :  { %v2807_v16 = vmul.f32 %v2791_v38, %v2791_v38  ;;  %v6305_v12 = vmul.f32 0.0625, %v2743_v15  ;;  %v3092_v38 = vsub.f32 %v5270_v57, %v6268_v61 }
 0x9e4   :  { %v2793_v8 = vsub.f32 %v5285_v43, %v6305_v12  ;;  %2845 = vrot.lane.b32.xlu0 %v2808_v29, %s4065_s2  ;;  %2843 = vrot.lane.b32.xlu1 %v2807_v16, %s4065_s2 }
 0x9e5   :  { %v2749_v34 = vpop.xlane.xlu0 %2748 }
 0x9e6   :  { %v2809_v25 = vmul.f32 %v2793_v8, %v2793_v8  ;;  %v6315_v42 = vmul.f32 0.0625, %v2749_v34  ;;  %v3108_v8 = vmul.f32 %v3092_v38, %v3092_v38  ;;  %v3094_v34 = vsub.f32 %v6972_v23, %v6283_v30 }
 0x9e8   :  { %v2795_v7 = vsub.f32 %v5289_v49, %v6315_v42  ;;  %2849 = vrot.lane.b32.xlu0 %v2810_v50, %s4065_s2  ;;  %2847 = vrot.lane.b32.xlu1 %v2809_v25, %s4065_s2 }
 0x9e9   :  { %v2755_v17 = vpop.xlane.xlu0 %2754 }
 0x9ea   :  { %v2811_v51 = vmul.f32 %v2795_v7, %v2795_v7  ;;  %v6325_v63 = vmul.f32 0.0625, %v2755_v17  ;;  %v3110_v7 = vmul.f32 %v3094_v34, %v3094_v34 }
 0x9ec   :  { %v2797_v9 = vsub.f32 %v5293_v18, %v6325_v63  ;;  %2853 = vrot.lane.b32.xlu0 %v2812_v58, %s4065_s2  ;;  %2851 = vrot.lane.b32.xlu1 %v2811_v51, %s4065_s2 }
 0x9ed   :  { %v2761_v41 = vpop.xlane.xlu0 %2760 }
 0x9ee   :  { %v2813_v1 = vmul.f32 %v2797_v9, %v2797_v9  ;;  %v2783_v24 = vmul.f32 0.0625, %v2761_v41 }
 0x9f0   :  { %v2799_v3 = vsub.f32 %v6964_v59, %v2783_v24  ;;  %2857 = vrot.lane.b32.xlu0 %v2814_v19, %s4065_s2  ;;  %2855 = vrot.lane.b32.xlu1 %v2813_v1, %s4065_s2  ;;  %v3112_v19 = vmul.f32 %v3096_v33, %v3096_v33 }
 0x9f1   :  { %v2767_v46 = vpop.xlane.xlu0 %2766 }
 0x9f2   :  { %v2815_v53 = vmul.f32 %v2799_v3, %v2799_v3  ;;  %v6340_v26 = vmul.f32 0.0625, %v2767_v46 }
 0x9f4   :  { %v2801_v56 = vsub.f32 %v6966_v32, %v6340_v26  ;;  %2861 = vrot.lane.b32.xlu0 %v2816_v40, %s4065_s2  ;;  %2859 = vrot.lane.b32.xlu1 %v2815_v53, %s4065_s2 }
 0x9f5   :  { %v3029_v2 = vpop.xlane.xlu0 %3028 }
 0x9f6   :  { %v2817_v29 = vmul.f32 %v2801_v56, %v2801_v56  ;;  %v6348_v15 = vmul.f32 0.0625, %v3029_v2 }
 0x9f8   :  { %v3091_v21 = vsub.f32 %v6969_v20, %v6348_v15  ;;  %2865 = vrot.lane.b32.xlu0 %v2818_v0, %s4065_s2  ;;  %2863 = vrot.lane.b32.xlu1 %v2817_v29, %s4065_s2 }
 0x9f9   :  { %v3035_v16 = vpop.xlane.xlu0 %3034 }
 0x9fa   :  { %v3107_v50 = vmul.f32 %v3091_v21, %v3091_v21  ;;  %v6356_v5 = vmul.f32 0.0625, %v3035_v16 }
 0x9fc   :  { %v3093_v61 = vsub.f32 %v6971_v13, %v6356_v5  ;;  %3141 = vrot.lane.b32.xlu0 %v3108_v8, %s4066_s9  ;;  %3139 = vrot.lane.b32.xlu1 %v3107_v50, %s4066_s9 }
 0x9fd   :  { %v3041_v25 = vpop.xlane.xlu0 %3040 }
 0x9fe   :  { %v3109_v17 = vmul.f32 %v3093_v61, %v3093_v61  ;;  %v3079_v58 = vmul.f32 0.0625, %v3041_v25 }
 0xa00   :  { %v3095_v51 = vsub.f32 %v6970_v47, %v3079_v58  ;;  %v6368_v30 = vsel %vm30_vm2, %v3079_v58, %v6295_v27  ;;  %3145 = vrot.lane.b32.xlu0 %v3110_v7, %s4066_s9  ;;  %3143 = vrot.lane.b32.xlu1 %v3109_v17, %s4066_s9 }
 0xa01   :  { %v3047_v9 = vpop.xlane.xlu0 %3046 }
 0xa02   :  { %v3111_v41 = vmul.f32 %v3095_v51, %v3095_v51  ;;  %v3081_v28 = vmul.f32 0.0625, %v3047_v9 }
 0xa04   :  { %v3097_v1 = vsub.f32 %v5285_v43, %v3081_v28  ;;  %v6376_v36 = vsel %vm30_vm2, %v3081_v28, %v6305_v12  ;;  %3149 = vrot.lane.b32.xlu0 %v3112_v19, %s4066_s9  ;;  %3147 = vrot.lane.b32.xlu1 %v3111_v41, %s4066_s9 }
 0xa05   :  { %v3053_v27 = vpop.xlane.xlu0 %3052 }
 0xa06   :  { %v3113_v3 = vmul.f32 %v3097_v1, %v3097_v1  ;;  %v3083_v46 = vmul.f32 0.0625, %v3053_v27 }
 0xa08   :  { %v3099_v40 = vsub.f32 %v5289_v49, %v3083_v46  ;;  %v6384_v48 = vsel %vm30_vm2, %v3083_v46, %v6315_v42  ;;  %3151 = vrot.lane.b32.xlu1 %v3113_v3, %s4066_s9 }
 0xa09   :  { %v3059_v53 = vpop.xlane.xlu0 %3058 }
 0xa0a   :  { %v3115_v56 = vmul.f32 %v3099_v40, %v3099_v40  ;;  %v3085_v12 = vmul.f32 0.0625, %v3059_v53 }
 0xa0c   :  { %v3101_v2 = vsub.f32 %v5293_v18, %v3085_v12  ;;  %v6391_v0 = vsel %vm30_vm2, %v3085_v12, %v6325_v63  ;;  %3155 = vrot.lane.b32.xlu1 %v3115_v56, %s4066_s9 }
 0xa0d   :  { %v3065_v38 = vpop.xlane.xlu0 %3064 }
 0xa0e   :  { %v3117_v29 = vmul.f32 %v3101_v2, %v3101_v2  ;;  %v3087_v21 = vmul.f32 0.0625, %v3065_v38 }
 0xa10   :  { %v3103_v42 = vsub.f32 %v6964_v59, %v3087_v21  ;;  %v6397_v16 = vsel %vm30_vm2, %v3087_v21, %v2783_v24  ;;  %3159 = vrot.lane.b32.xlu1 %v3117_v29, %s4066_s9 }
 0xa12   :  { %v3119_v8 = vmul.f32 %v3103_v42, %v3103_v42 }
 0xa14   :  { %3163 = vrot.lane.b32.xlu1 %v3119_v8, %s4066_s9 }
 0xa2f   :  { %v3050_v34 = vpop.xlane.xlu1 %3049 }
 0xa30   :  { %v6401_v50 = vmul.f32 0.0625, %v3050_v34 }
 0xa32   :  { %v3098_v63 = vsub.f32 %v5283_v60, %v6401_v50 }
 0xa33   :  { %v3056_v61 = vpop.xlane.xlu1 %3055  ;;  %v3071_v25 = vpop.xlane.xlu0 %3070 }
 0xa34   :  { %v3114_v7 = vmul.f32 %v3098_v63, %v3098_v63  ;;  %v6405_v33 = vmul.f32 0.0625, %v3056_v61  ;;  %v6407_v17 = vmul.f32 0.0625, %v3071_v25 }
 0xa36   :  { %v3100_v24 = vsub.f32 %v5287_v39, %v6405_v33  ;;  %v3105_v58 = vsub.f32 %v6966_v32, %v6407_v17  ;;  %3153 = vrot.lane.b32.xlu0 %v3114_v7, %s4066_s9 }
 0xa37   :  { %v3062_v51 = vpop.xlane.xlu1 %3061  ;;  %v2836_v38 = vpop.permute.xlu0 %2835 }
 0xa38   :  { %v3116_v9 = vmul.f32 %v3100_v24, %v3100_v24  ;;  %v3121_v19 = vmul.f32 %v3105_v58, %v3105_v58  ;;  %v6414_v41 = vmul.f32 0.0625, %v3062_v51  ;;  %v2883_v25 = vsel %vm241_vm1, %v2836_v38, 0.0 }
 0xa3a   :  { %v3102_v28 = vsub.f32 %v5291_v10, %v6414_v41  ;;  %3157 = vrot.lane.b32.xlu0 %v3116_v9, %s4066_s9  ;;  %3167 = vrot.lane.b32.xlu1 %v3121_v19, %s4066_s9 }
 0xa3b   :  { %v3068_v1 = vpop.xlane.xlu1 %3067 }
 0xa3c   :  { %v3118_v27 = vmul.f32 %v3102_v28, %v3102_v28  ;;  %v6420_v3 = vmul.f32 0.0625, %v3068_v1 }
 0xa3e   :  { %v3104_v46 = vsub.f32 %v6967_v52, %v6420_v3  ;;  %3161 = vrot.lane.b32.xlu0 %v3118_v27, %s4066_s9 }
 0xa3f   :  { %v3074_v40 = vpop.xlane.xlu1 %3073 }
 0xa40   :  { %v3120_v53 = vmul.f32 %v3104_v46, %v3104_v46  ;;  %v6425_v56 = vmul.f32 0.0625, %v3074_v40 }
 0xa42   :  { %v3106_v12 = vsub.f32 %v6968_v31, %v6425_v56  ;;  %3165 = vrot.lane.b32.xlu0 %v3120_v53, %s4066_s9 }
 0xa44   :  { %v3122_v2 = vmul.f32 %v3106_v12, %v3106_v12 }
 0xa46   :  { %3169 = vrot.lane.b32.xlu0 %v3122_v2, %s4066_s9 }
 0xa4e   :  { %v2838_v29 = vpop.permute.xlu1 %2837 }
 0xa4f   :  { %v2886_v19 = vsel %vm241_vm1, %v2838_v29, 0.0 }
 0xa52   :  { %v2840_v21 = vpop.permute.xlu1 %2839  ;;  %v2842_v42 = vpop.permute.xlu0 %2841 }
 0xa53   :  { %v2892_v58 = vsel %vm241_vm1, %v2842_v42, 0.0  ;;  %v2889_v1 = vsel %vm241_vm1, %v2840_v21, 0.0 }
 0xa56   :  { %v2844_v8 = vpop.permute.xlu1 %2843  ;;  %v2846_v34 = vpop.permute.xlu0 %2845 }
 0xa57   :  { %v2898_v28 = vsel %vm241_vm1, %v2846_v34, 0.0  ;;  %v2895_v53 = vsel %vm241_vm1, %v2844_v8, 0.0 }
 0xa5a   :  { %v2848_v63 = vpop.permute.xlu1 %2847  ;;  %v2850_v61 = vpop.permute.xlu0 %2849 }
 0xa5b   :  { %v2904_v46 = vsel %vm241_vm1, %v2850_v61, 0.0  ;;  %v2901_v29 = vsel %vm241_vm1, %v2848_v63, 0.0 }
 0xa5e   :  { %v2852_v7 = vpop.permute.xlu1 %2851  ;;  %2884 = vadd.xlane.f32.xlu1 %v2883_v25  ;;  %v2854_v24 = vpop.permute.xlu0 %2853 }
 0xa5f   :  { %v2910_v12 = vsel %vm241_vm1, %v2854_v24, 0.0  ;;  %v2907_v21 = vsel %vm241_vm1, %v2852_v7, 0.0 }
 0xa62   :  { %2893 = vadd.xlane.f32.xlu1 %v2892_v58  ;;  %v2856_v51 = vpop.permute.xlu1 %2855  ;;  %v2858_v9 = vpop.permute.xlu0 %2857 }
 0xa63   :  { %v2916_v42 = vsel %vm241_vm1, %v2858_v9, 0.0  ;;  %v2913_v8 = vsel %vm241_vm1, %v2856_v51, 0.0 }
 0xa65   :  { %2887 = vadd.xlane.f32.xlu0 %v2886_v19 }
 0xa66   :  { %2899 = vadd.xlane.f32.xlu1 %v2898_v28  ;;  %v2860_v27 = vpop.permute.xlu1 %2859  ;;  %v2862_v40 = vpop.permute.xlu0 %2861 }
 0xa67   :  { %v2922_v61 = vsel %vm241_vm1, %v2862_v40, 0.0  ;;  %v2919_v19 = vsel %vm241_vm1, %v2860_v27, 0.0 }
 0xa69   :  { %2890 = vadd.xlane.f32.xlu0 %v2889_v1 }
 0xa6a   :  { %2905 = vadd.xlane.f32.xlu1 %v2904_v46  ;;  %v2864_v2 = vpop.permute.xlu1 %2863  ;;  %v2866_v38 = vpop.permute.xlu0 %2865 }
 0xa6b   :  { %v2928_v24 = vsel %vm241_vm1, %v2866_v38, 0.0  ;;  %v2925_v7 = vsel %vm241_vm1, %v2864_v2, 0.0 }
 0xa6d   :  { %2896 = vadd.xlane.f32.xlu0 %v2895_v53 }
 0xa6e   :  { %2911 = vadd.xlane.f32.xlu1 %v2910_v12  ;;  %v3140_v34 = vpop.permute.xlu1 %3139  ;;  %v3142_v25 = vpop.permute.xlu0 %3141 }
 0xa6f   :  { %v3190_v9 = vsel %vm241_vm1, %v3142_v25, 0.0  ;;  %v3187_v51 = vsel %vm241_vm1, %v3140_v34, 0.0 }
 0xa71   :  { %2902 = vadd.xlane.f32.xlu0 %v2901_v29 }
 0xa72   :  { %2917 = vadd.xlane.f32.xlu1 %v2916_v42  ;;  %v3144_v58 = vpop.permute.xlu1 %3143  ;;  %v3146_v63 = vpop.permute.xlu0 %3145 }
 0xa73   :  { %v3196_v28 = vsel %vm241_vm1, %v3146_v63, 0.0  ;;  %v3193_v27 = vsel %vm241_vm1, %v3144_v58, 0.0 }
 0xa75   :  { %2908 = vadd.xlane.f32.xlu0 %v2907_v21 }
 0xa76   :  { %2923 = vadd.xlane.f32.xlu1 %v2922_v61  ;;  %v3148_v1 = vpop.permute.xlu1 %3147  ;;  %v3150_v46 = vpop.permute.xlu0 %3149 }
 0xa77   :  { %v3202_v40 = vsel %vm241_vm1, %v3150_v46, 0.0  ;;  %v3199_v12 = vsel %vm241_vm1, %v3148_v1, 0.0 }
 0xa79   :  { %2914 = vadd.xlane.f32.xlu0 %v2913_v8 }
 0xa7a   :  { %2929 = vadd.xlane.f32.xlu1 %v2928_v24  ;;  %v3152_v53 = vpop.permute.xlu1 %3151 }
 0xa7b   :  { %v3205_v2 = vsel %vm241_vm1, %v3152_v53, 0.0 }
 0xa7d   :  { %2920 = vadd.xlane.f32.xlu0 %v2919_v19 }
 0xa7e   :  { %3191 = vadd.xlane.f32.xlu1 %v3190_v9  ;;  %v3156_v38 = vpop.permute.xlu1 %3155 }
 0xa7f   :  { %v3211_v42 = vsel %vm241_vm1, %v3156_v38, 0.0 }
 0xa81   :  { %2926 = vadd.xlane.f32.xlu0 %v2925_v7 }
 0xa82   :  { %3197 = vadd.xlane.f32.xlu1 %v3196_v28  ;;  %v3160_v29 = vpop.permute.xlu1 %3159 }
 0xa83   :  { %v3217_v21 = vsel %vm241_vm1, %v3160_v29, 0.0 }
 0xa85   :  { %3188 = vadd.xlane.f32.xlu0 %v3187_v51 }
 0xa86   :  { %3203 = vadd.xlane.f32.xlu1 %v3202_v40  ;;  %v3164_v34 = vpop.permute.xlu1 %3163 }
 0xa87   :  { %v3223_v61 = vsel %vm241_vm1, %v3164_v34, 0.0 }
 0xa89   :  { %3194 = vadd.xlane.f32.xlu0 %v3193_v27 }
 0xa8d   :  { %3200 = vadd.xlane.f32.xlu0 %v3199_v12 }
 0xa91   :  { %3206 = vadd.xlane.f32.xlu0 %v3205_v2 }
 0xa95   :  { %3212 = vadd.xlane.f32.xlu0 %v3211_v42 }
 0xa99   :  { %3218 = vadd.xlane.f32.xlu0 %v3217_v21 }
 0xa9d   :  { %3224 = vadd.xlane.f32.xlu0 %v3223_v61 }
 0xaa8   :  { %v3154_v25 = vpop.permute.xlu0 %3153 }
 0xaa9   :  { %v3208_v8 = vsel %vm241_vm1, %v3154_v25, 0.0 }
 0xaaa   :  { %3209 = vadd.xlane.f32.xlu1 %v3208_v8 }
 0xaac   :  { %v3168_v24 = vpop.permute.xlu1 %3167  ;;  %v3158_v58 = vpop.permute.xlu0 %3157 }
 0xaad   :  { %v3229_v63 = vsel %vm241_vm1, %v3168_v24, 0.0  ;;  %v3214_v19 = vsel %vm241_vm1, %v3158_v58, 0.0 }
 0xaae   :  { %3230 = vadd.xlane.f32.xlu0 %v3229_v63  ;;  %3215 = vadd.xlane.f32.xlu1 %v3214_v19 }
 0xab0   :  { %v3162_v9 = vpop.permute.xlu0 %3161 }
 0xab1   :  { %v3220_v7 = vsel %vm241_vm1, %v3162_v9, 0.0 }
 0xab2   :  { %3221 = vadd.xlane.f32.xlu1 %v3220_v7 }
 0xab4   :  { %v3166_v28 = vpop.permute.xlu0 %3165 }
 0xab5   :  { %v3226_v1 = vsel %vm241_vm1, %v3166_v28, 0.0 }
 0xab6   :  { %3227 = vadd.xlane.f32.xlu1 %v3226_v1 }
 0xab8   :  { %v3170_v46 = vpop.permute.xlu0 %3169 }
 0xab9   :  { %v3232_v51 = vsel %vm241_vm1, %v3170_v46, 0.0 }
 0xaba   :  { %3233 = vadd.xlane.f32.xlu1 %v3232_v51 }
 0xaeb   :  { %v2885_v40 = vpop.xlane.xlu1 %2884 }
 0xaec   :  { %v2931_v28 = vmul.f32 0.0625, %v2885_v40 }
 0xaee   :  { %v2947_v10 = vadd.f32 1e-05, %v2931_v28 }
 0xaef   :  { %v2894_v53 = vpop.xlane.xlu1 %2893 }
 0xaf0   :  { %v2934_v31 = vmul.f32 0.0625, %v2894_v53 }
 0xaf2   :  { %v2888_v27 = vpop.xlane.xlu0 %2887  ;;  %v2950_v18 = vadd.f32 1e-05, %v2934_v31 }
 0xaf3   :  { %v2900_v12 = vpop.xlane.xlu1 %2899  ;;  %v2932_v24 = vmul.f32 0.0625, %v2888_v27 }
 0xaf5   :  { %v2948_v19 = vadd.f32 1e-05, %v2932_v24  ;;  %v2936_v24 = vmul.f32 0.0625, %v2900_v12 }
 0xaf6   :  { %v2891_v38 = vpop.xlane.xlu0 %2890 }
 0xaf7   :  { %v6463_v2 = vpop.xlane.xlu1 %2905  ;;  %3994 = vrsqrt.f32 %v2948_v19  ;;  %v2933_v32 = vmul.f32 0.0625, %v2891_v38  ;;  %v2952_v28 = vadd.f32 1e-05, %v2936_v24 }
 0xafa   :  { %v2897_v29 = vpop.xlane.xlu0 %2896 }
 0xafb   :  { %v6465_v42 = vpop.xlane.xlu1 %2911 }
 0xafe   :  { %v2903_v21 = vpop.xlane.xlu0 %2902 }
 0xaff   :  { %v6467_v34 = vpop.xlane.xlu1 %2917 }
 0xb02   :  { %v2909_v61 = vpop.xlane.xlu0 %2908 }
 0xb03   :  { %v6469_v25 = vpop.xlane.xlu1 %2923  ;;  %v2939_v31 = vmul.f32 0.0625, %v2909_v61 }
 0xb06   :  { %v6471_v8 = vpop.xlane.xlu0 %2914 }
 0xb07   :  { %v6473_v58 = vpop.xlane.xlu1 %2929 }
 0xb0a   :  { %v6475_v63 = vpop.xlane.xlu0 %2920 }
 0xb0b   :  { %v3192_v9 = vpop.xlane.xlu1 %3191 }
 0xb0c   :  { %v3236_v7 = vmul.f32 0.0625, %v3192_v9  ;;  %v2949_v9 = vadd.f32 1e-05, %v2933_v32 }
 0xb0e   :  { %v3252_v1 = vadd.f32 1e-05, %v3236_v7  ;;  %v6477_v46 = vpop.xlane.xlu0 %2926  ;;  %v2935_v7 = vmul.f32 0.0625, %v2897_v29 }
 0xb0f   :  { %v3198_v51 = vpop.xlane.xlu1 %3197 }
 0xb10   :  { %3996 = vrsqrt.f32 %v3252_v1  ;;  %v3238_v52 = vmul.f32 0.0625, %v3198_v51  ;;  %v3995_v1 = vpop.eup %3994  ;;  %v2951_v51 = vadd.f32 1e-05, %v2935_v7  ;;  %v2955_v7 = vadd.f32 1e-05, %v2939_v31 }
 0xb11   :  { %3998 = vrsqrt.f32 %v2947_v10 }
 0xb12   :  { %v3254_v39 = vadd.f32 1e-05, %v3238_v52  ;;  %v3189_v27 = vpop.xlane.xlu0 %3188 }
 0xb13   :  { %v3235_v59 = vmul.f32 0.0625, %v3189_v27  ;;  %v3204_v60 = vpop.xlane.xlu1 %3203  ;;  %v2937_v27 = vmul.f32 0.0625, %v2903_v21 }
 0xb14   :  { %v3240_v44 = vmul.f32 0.0625, %v3204_v60  ;;  %4000 = vrsqrt.f32 %v3254_v39 }
 0xb15   :  { %v3251_v40 = vadd.f32 1e-05, %v3235_v59  ;;  %v2953_v32 = vadd.f32 1e-05, %v2937_v27 }
 0xb16   :  { %v3256_v49 = vadd.f32 1e-05, %v3240_v44  ;;  %v3195_v19 = vpop.xlane.xlu0 %3194  ;;  %v6484_v44 = vld [vmem:[%s6756_s3] ss:$0 sm:$0xff] }
 0xb17   :  { %4002 = vrsqrt.f32 %v3251_v40  ;;  %v3237_v53 = vmul.f32 0.0625, %v3195_v19  ;;  %v2941_v19 = vmul.f32 0.0625, %v6471_v8 }
 0xb18   :  { %4004 = vrsqrt.f32 %v2950_v18 }
 0xb19   :  { %4006 = vrsqrt.f32 %v2949_v9  ;;  %v3253_v52 = vadd.f32 1e-05, %v3237_v53  ;;  %v2957_v8 = vadd.f32 1e-05, %v2941_v19 }
 0xb1a   :  { %v3997_v38 = vpop.eup %3996  ;;  %4008 = vrsqrt.f32 %v3256_v49  ;;  %v3201_v60 = vpop.xlane.xlu0 %3200 }
 0xb1b   :  { %4010 = vrsqrt.f32 %v3253_v52  ;;  %v3239_v10 = vmul.f32 0.0625, %v3201_v60  ;;  %v3284_v59 = vsel %vm30_vm2, %v3997_v38, %v3995_v1  ;;  %v3999_v12 = vpop.eup %3998 }
 0xb1c   :  { %v6487_v39 = vmul.f32 %v6484_v44, %v3284_v59  ;;  %4012 = vrsqrt.f32 %v2952_v28 }
 0xb1d   :  { %v3255_v18 = vadd.f32 1e-05, %v3239_v10  ;;  %4014 = vrsqrt.f32 %v2951_v51  ;;  %v2943_v10 = vmul.f32 0.0625, %v6475_v63 }
 0xb1e   :  { %3381 = vrot.lane.b32.xlu1 %v6487_v39, %s4067_s11  ;;  %v3207_v49 = vpop.xlane.xlu0 %3206  ;;  %v4001_v21 = vpop.eup %4000 }
 0xb1f   :  { %4016 = vrsqrt.f32 %v3255_v18  ;;  %v3241_v29 = vmul.f32 0.0625, %v3207_v49  ;;  %v2959_v63 = vadd.f32 1e-05, %v2943_v10 }
 0xb20   :  { %4018 = vrsqrt.f32 %v2953_v32 }
 0xb21   :  { %v4003_v24 = vpop.eup %4002  ;;  %v3257_v9 = vadd.f32 1e-05, %v3241_v29 }
 0xb22   :  { %v4005_v40 = vpop.eup %4004  ;;  %v3213_v53 = vpop.xlane.xlu0 %3212  ;;  %v3283_v1 = vsel %vm30_vm2, %v4003_v24, %v3999_v12 }
 0xb23   :  { %v4007_v61 = vpop.eup %4006  ;;  %4020 = vrsqrt.f32 %v3257_v9  ;;  %v3243_v28 = vmul.f32 0.0625, %v3213_v53  ;;  %v6495_v52 = vmul.f32 %v6484_v44, %v3283_v1  ;;  %v3286_v51 = vsel %vm30_vm2, %v4001_v21, %v4005_v40 }
 0xb24   :  { %v4009_v38 = vpop.eup %4008  ;;  %4022 = vrsqrt.f32 %v2955_v7  ;;  %v6505_v49 = vmul.f32 %v6484_v44, %v3286_v51 }
 0xb25   :  { %v4011_v27 = vpop.eup %4010  ;;  %v3259_v60 = vadd.f32 1e-05, %v3243_v28  ;;  %3379 = vrot.lane.b32.xlu0 %v6495_v52, %s4067_s11 }
 0xb26   :  { %v3219_v59 = vpop.xlane.xlu0 %3218  ;;  %v3285_v18 = vsel %vm30_vm2, %v4011_v27, %v4007_v61  ;;  %v4013_v32 = vpop.eup %4012 }
 0xb27   :  { %4024 = vrsqrt.f32 %v3259_v60  ;;  %v3245_v31 = vmul.f32 0.0625, %v3219_v59  ;;  %v6508_v12 = vmul.f32 %v6484_v44, %v3285_v18  ;;  %v4015_v29 = vpop.eup %4014  ;;  %v3288_v21 = vsel %vm30_vm2, %v4009_v38, %v4013_v32 }
 0xb28   :  { %4026 = vrsqrt.f32 %v2957_v8  ;;  %v6519_v53 = vmul.f32 %v6484_v44, %v3288_v21  ;;  %v2938_v59 = vmul.f32 0.0625, %v6463_v2 }
 0xb29   :  { %v4017_v24 = vpop.eup %4016  ;;  %v3261_v9 = vadd.f32 1e-05, %v3245_v31  ;;  %3385 = vrot.lane.b32.xlu0 %v6505_v49, %s4067_s11  ;;  %3383 = vrot.lane.b32.xlu1 %v6508_v12, %s4067_s11 }
 0xb2a   :  { %v3225_v40 = vpop.xlane.xlu0 %3224  ;;  %v3287_v7 = vsel %vm30_vm2, %v4017_v24, %v4015_v29  ;;  %v4019_v61 = vpop.eup %4018  ;;  %v2940_v29 = vmul.f32 0.0625, %v6465_v42  ;;  %v2954_v24 = vadd.f32 1e-05, %v2938_v59 }
 0xb2b   :  { %4028 = vrsqrt.f32 %v3261_v9  ;;  %v3247_v19 = vmul.f32 0.0625, %v3225_v40  ;;  %v6522_v1 = vmul.f32 %v6484_v44, %v3287_v7  ;;  %v2945_v9 = vmul.f32 0.0625, %v6477_v46 }
 0xb2c   :  { %4030 = vrsqrt.f32 %v2959_v63 }
 0xb2d   :  { %v4021_v28 = vpop.eup %4020  ;;  %v3263_v38 = vadd.f32 1e-05, %v3247_v19  ;;  %3389 = vrot.lane.b32.xlu0 %v6519_v53, %s4067_s11  ;;  %3387 = vrot.lane.b32.xlu1 %v6522_v1, %s4067_s11 }
 0xb2e   :  { %v3289_v51 = vsel %vm30_vm2, %v4021_v28, %v4019_v61  ;;  %v4023_v60 = vpop.eup %4022  ;;  %v2956_v61 = vadd.f32 1e-05, %v2940_v29 }
 0xb2f   :  { %4032 = vrsqrt.f32 %v3263_v38  ;;  %v6531_v27 = vmul.f32 %v6484_v44, %v3289_v51  ;;  %v2942_v38 = vmul.f32 0.0625, %v6467_v34  ;;  %v2961_v51 = vadd.f32 1e-05, %v2945_v9 }
 0xb30   :  { %4034 = vrsqrt.f32 %v2954_v24 }
 0xb31   :  { %v4025_v8 = vpop.eup %4024  ;;  %3391 = vrot.lane.b32.xlu1 %v6531_v27, %s4067_s11  ;;  %v2958_v29 = vadd.f32 1e-05, %v2942_v38 }
 0xb32   :  { %v3291_v10 = vsel %vm30_vm2, %v4025_v8, %v4023_v60  ;;  %v4027_v32 = vpop.eup %4026 }
 0xb33   :  { %v6539_v18 = vmul.f32 %v6484_v44, %v3291_v10 }
 0xb35   :  { %v4029_v31 = vpop.eup %4028  ;;  %3395 = vrot.lane.b32.xlu1 %v6539_v18, %s4067_s11 }
 0xb36   :  { %v3293_v21 = vsel %vm30_vm2, %v4029_v31, %v4027_v32  ;;  %v4031_v2 = vpop.eup %4030 }
 0xb37   :  { %v3210_v63 = vpop.xlane.xlu1 %3209  ;;  %v6548_v40 = vmul.f32 %v6484_v44, %v3293_v21  ;;  %v2944_v21 = vmul.f32 0.0625, %v6469_v25 }
 0xb38   :  { %v3242_v7 = vmul.f32 0.0625, %v3210_v63 }
 0xb39   :  { %v4033_v19 = vpop.eup %4032  ;;  %3399 = vrot.lane.b32.xlu1 %v6548_v40, %s4067_s11  ;;  %v2960_v63 = vadd.f32 1e-05, %v2944_v21 }
 0xb3a   :  { %v3258_v28 = vadd.f32 1e-05, %v3242_v7  ;;  %v3295_v42 = vsel %vm30_vm2, %v4033_v19, %v4031_v2  ;;  %v2946_v2 = vmul.f32 0.0625, %v6473_v58  ;;  %v3306_v58 = vsel %vm30_vm2, %v6401_v50, %v6293_v35 }
 0xb3b   :  { %v3216_v46 = vpop.xlane.xlu1 %3215  ;;  %v3231_v60 = vpop.xlane.xlu0 %3230  ;;  %v6556_v8 = vmul.f32 %v6484_v44, %v3295_v42 }
 0xb3c   :  { %4036 = vrsqrt.f32 %v3258_v28  ;;  %v3244_v10 = vmul.f32 0.0625, %v3216_v46  ;;  %v3249_v59 = vmul.f32 0.0625, %v3231_v60  ;;  %v4035_v28 = vpop.eup %4034  ;;  %v2962_v38 = vadd.f32 1e-05, %v2946_v2 }
 0xb3d   :  { %3403 = vrot.lane.b32.xlu1 %v6556_v8, %s4067_s11  ;;  %4038 = vrsqrt.f32 %v2956_v61 }
 0xb3e   :  { %v3260_v32 = vadd.f32 1e-05, %v3244_v10  ;;  %v3265_v31 = vadd.f32 1e-05, %v3249_v59  ;;  %4040 = vrsqrt.f32 %v2961_v51 }
 0xb3f   :  { %v3222_v34 = vpop.xlane.xlu1 %3221 }
 0xb40   :  { %4042 = vrsqrt.f32 %v3260_v32  ;;  %v3246_v24 = vmul.f32 0.0625, %v3222_v34 }
 0xb41   :  { %4044 = vrsqrt.f32 %v3265_v31 }
 0xb42   :  { %v3262_v9 = vadd.f32 1e-05, %v3246_v24  ;;  %4046 = vrsqrt.f32 %v2958_v29  ;;  %v3299_v24 = vsel %vm30_vm2, %v6348_v15, %v6259_v37 }
 0xb43   :  { %v3228_v7 = vpop.xlane.xlu1 %3227 }
 0xb44   :  { %4048 = vrsqrt.f32 %v3262_v9  ;;  %v3248_v19 = vmul.f32 0.0625, %v3228_v7  ;;  %v3331_v7 = vmul.f32 %v6495_v52, %v3299_v24  ;;  %v3310_v52 = vsel %vm30_vm2, %v6414_v41, %v6311_v45 }
 0xb45   :  { %4050 = vrsqrt.f32 %v2960_v63  ;;  %v3308_v63 = vsel %vm30_vm2, %v6405_v33, %v6303_v14  ;;  %v3312_v45 = vsel %vm30_vm2, %v6420_v3, %v6323_v62  ;;  %v3314_v62 = vsel %vm30_vm2, %v6425_v56, %v6333_v22 }
 0xb46   :  { %v4037_v61 = vpop.eup %4036  ;;  %v3264_v42 = vadd.f32 1e-05, %v3248_v19  ;;  %v3337_v3 = vmul.f32 %v6531_v27, %v6376_v36  ;;  %v3336_v36 = vmul.f32 %v6519_v53, %v6273_v11  ;;  %v3313_v11 = vsel %vm30_vm2, %v6407_v17, %v6340_v26 }
 0xb47   :  { %v3234_v46 = vpop.xlane.xlu1 %3233  ;;  %v3290_v25 = vsel %vm30_vm2, %v4037_v61, %v4035_v28  ;;  %v4039_v51 = vpop.eup %4038  ;;  %v3301_v28 = vsel %vm30_vm2, %v6356_v5, %v6266_v54  ;;  %v4063_v61 = vld [vmem:[%s6757_s4] ss:$0 sm:$0xff] }
 0xb48   :  { %4052 = vrsqrt.f32 %v3264_v42  ;;  %v3250_v60 = vmul.f32 0.0625, %v3234_v46  ;;  %v3322_v10 = vmul.f32 %v6484_v44, %v3290_v25  ;;  %v4041_v59 = vpop.eup %4040  ;;  %v3347_v42 = vsub.f32 %v4063_v61, %v3331_v7 }
 0xb49   :  { %4054 = vrsqrt.f32 %v2962_v38  ;;  %v3333_v38 = vmul.f32 %v6508_v12, %v3301_v28  ;;  %v3335_v12 = vmul.f32 %v6522_v1, %v6368_v30 }
 0xb4a   :  { %v4043_v32 = vpop.eup %4042  ;;  %v3266_v31 = vadd.f32 1e-05, %v3250_v60  ;;  %3393 = vrot.lane.b32.xlu0 %v3322_v10, %s4067_s11  ;;  %v6570_v29 = vmul.f32 %v3322_v10, %v3306_v58 }
 0xb4b   :  { %v4045_v21 = vpop.eup %4044  ;;  %v3292_v34 = vsel %vm30_vm2, %v4043_v32, %v4039_v51  ;;  %v3349_v41 = vsub.f32 %v4063_v61, %v3333_v38  ;;  %v3332_v32 = vmul.f32 %v6487_v39, %v6279_v6  ;;  %v3351_v30 = vsub.f32 %v4063_v61, %v3335_v12 }
 0xb4c   :  { %4056 = vrsqrt.f32 %v3266_v31  ;;  %v3324_v9 = vmul.f32 %v6484_v44, %v3292_v34  ;;  %v3297_v35 = vsel %vm30_vm2, %v4045_v21, %v4041_v59  ;;  %v4047_v50 = vpop.eup %4046  ;;  %v3353_v21 = vsub.f32 %v4063_v61, %v3337_v3 }
 0xb4d   :  { %v3329_v2 = vmul.f32 %v6484_v44, %v3297_v35  ;;  %v3348_v31 = vsub.f32 %v4063_v61, %v3332_v32  ;;  %v3339_v6 = vmul.f32 %v6539_v18, %v6384_v48  ;;  %v3341_v39 = vmul.f32 %v6548_v40, %v6391_v0 }
 0xb4e   :  { %v4049_v19 = vpop.eup %4048  ;;  %3397 = vrot.lane.b32.xlu0 %v3324_v9, %s4067_s11  ;;  %v3340_v37 = vmul.f32 %v3324_v9, %v3308_v63  ;;  %v3343_v48 = vmul.f32 %v6556_v8, %v6397_v16  ;;  %v3354_v0 = vsub.f32 %v4063_v61, %v6570_v29 }
 0xb4f   :  { %3407 = vrot.lane.b32.xlu1 %v3329_v2, %s4067_s11  ;;  %v3294_v15 = vsel %vm30_vm2, %v4049_v19, %v4047_v50  ;;  %v4051_v33 = vpop.eup %4050  ;;  %v3355_v56 = vsub.f32 %v4063_v61, %v3339_v6  ;;  %v3345_v27 = vmul.f32 %v3329_v2, %v3313_v11 }
 0xb50   :  { %v3326_v14 = vmul.f32 %v6484_v44, %v3294_v15  ;;  %v3359_v53 = vsub.f32 %v4063_v61, %v3343_v48  ;;  %v3356_v18 = vsub.f32 %v4063_v61, %v3340_v37  ;;  %v6992_v48 = vld [vmem:[#allocation49_spill] sm:$0xff] }
 0xb51   :  { %v3361_v40 = vsub.f32 %v4063_v61, %v3345_v27 }
 0xb52   :  { %v4053_v46 = vpop.eup %4052  ;;  %3401 = vrot.lane.b32.xlu0 %v3326_v14, %s4067_s11  ;;  %v3342_v25 = vmul.f32 %v3326_v14, %v3310_v52 }
 0xb53   :  { %3459 = vrot.lane.b32.xlu1 %v3347_v42, %s4067_s11  ;;  %v3296_v54 = vsel %vm30_vm2, %v4053_v46, %v4051_v33  ;;  %v4055_v51 = vpop.eup %4054 }
 0xb54   :  { %v3328_v5 = vmul.f32 %v6484_v44, %v3296_v54  ;;  %v3358_v16 = vsub.f32 %v4063_v61, %v3342_v25 }
 0xb56   :  { %v4057_v60 = vpop.eup %4056  ;;  %3405 = vrot.lane.b32.xlu0 %v3328_v5, %s4067_s11  ;;  %v3344_v10 = vmul.f32 %v3328_v5, %v3312_v45 }
 0xb57   :  { %3463 = vrot.lane.b32.xlu1 %v3349_v41, %s4067_s11  ;;  %v3298_v59 = vsel %vm30_vm2, %v4057_v60, %v4055_v51 }
 0xb58   :  { %v3330_v58 = vmul.f32 %v6484_v44, %v3298_v59  ;;  %v3334_v44 = vmul.f32 %v6505_v49, %v6289_v55  ;;  %v3352_v55 = vsub.f32 %v4063_v61, %v3336_v36  ;;  %v3357_v49 = vsub.f32 %v4063_v61, %v3341_v39 }
 0xb59   :  { %v3360_v8 = vsub.f32 %v4063_v61, %v3344_v10 }
 0xb5a   :  { %3409 = vrot.lane.b32.xlu0 %v3330_v58, %s4067_s11  ;;  %v3346_v1 = vmul.f32 %v3330_v58, %v3314_v62  ;;  %v3350_v22 = vsub.f32 %v4063_v61, %v3334_v44  ;;  %v6988_v62 = vld [vmem:[#allocation2_spill] sm:$0xff] }
 0xb5b   :  { %3467 = vrot.lane.b32.xlu1 %v3351_v30, %s4067_s11  ;;  %v6989_v30 = vld [vmem:[#allocation45_spill] sm:$0xff] }
 0xb5c   :  { %v3362_v4 = vsub.f32 %v4063_v61, %v3346_v1 }
 0xb5e   :  { %3461 = vrot.lane.b32.xlu0 %v3348_v31, %s4067_s11 }
 0xb5f   :  { %3471 = vrot.lane.b32.xlu1 %v3353_v21, %s4067_s11  ;;  %v6990_v21 = vld [vmem:[#allocation35_spill] sm:$0xff] }
 0xb62   :  { %3465 = vrot.lane.b32.xlu0 %v3350_v22, %s4067_s11  ;;  %v6991_v22 = vld [vmem:[#allocation38_spill] sm:$0xff] }
 0xb63   :  { %3475 = vrot.lane.b32.xlu1 %v3355_v56, %s4067_s11 }
 0xb66   :  { %3469 = vrot.lane.b32.xlu0 %v3352_v55, %s4067_s11 }
 0xb67   :  { %3479 = vrot.lane.b32.xlu1 %v3357_v49, %s4067_s11 }
 0xb6a   :  { %3473 = vrot.lane.b32.xlu0 %v3354_v0, %s4067_s11  ;;  %v6993_v0 = vld [vmem:[#allocation7_spill] sm:$0xff] }
 0xb6b   :  { %3483 = vrot.lane.b32.xlu1 %v3359_v53, %s4067_s11 }
 0xb6e   :  { %3477 = vrot.lane.b32.xlu0 %v3356_v18, %s4067_s11 }
 0xb6f   :  { %3487 = vrot.lane.b32.xlu1 %v3361_v40, %s4067_s11 }
 0xb72   :  { %3481 = vrot.lane.b32.xlu0 %v3358_v16, %s4067_s11 }
 0xb76   :  { %3485 = vrot.lane.b32.xlu0 %v3360_v8, %s4067_s11  ;;  %v6994_v8 = vld [vmem:[#allocation22_spill] sm:$0xff] }
 0xb7a   :  { %3489 = vrot.lane.b32.xlu0 %v3362_v4, %s4067_s11 }
 0xb90   :  { %v3382_v26 = vpop.permute.xlu1 %3381 }
 0xb91   :  { %v3428_v51 = vmul.f32 %v5270_v57, %v3382_v26 }
 0xb97   :  { %v3380_v24 = vpop.permute.xlu0 %3379 }
 0xb98   :  { %v3427_v15 = vmul.f32 %v3380_v24, %v6969_v20 }
 0xb9b   :  { %v3384_v17 = vpop.permute.xlu1 %3383  ;;  %v3386_v35 = vpop.permute.xlu0 %3385 }
 0xb9c   :  { %v3429_v52 = vmul.f32 %v3384_v17, %v6971_v13  ;;  %v3430_v60 = vmul.f32 %v6972_v23, %v3386_v35  ;;  %v6996_v35 = vld [vmem:[#allocation50_spill] sm:$0xff] }
 0xb9f   :  { %v3388_v29 = vpop.permute.xlu1 %3387  ;;  %v3390_v63 = vpop.permute.xlu0 %3389 }
 0xba0   :  { %v3431_v46 = vmul.f32 %v3388_v29, %v6970_v47  ;;  %v6987_v47 = vld [vmem:[#allocation6_spill] sm:$0xff]  ;;  %v6995_v29 = vld [vmem:[#allocation13_spill] sm:$0xff] }
 0xba3   :  { %v3392_v34 = vpop.permute.xlu1 %3391 }
 0xba4   :  { %v3433_v20 = vmul.f32 %v3392_v34, %v5285_v43  ;;  %v3432_v43 = vmul.f32 %v6988_v62, %v3390_v63 }
 0xba7   :  { %v3396_v9 = vpop.permute.xlu1 %3395 }
 0xba8   :  { %v3435_v10 = vmul.f32 %v3396_v9, %v6987_v47 }
 0xbab   :  { %v3400_v50 = vpop.permute.xlu1 %3399 }
 0xbac   :  { %v3437_v3 = vmul.f32 %v3400_v50, %v6989_v30 }
 0xbaf   :  { %v3404_v7 = vpop.permute.xlu1 %3403 }
 0xbb0   :  { %v3439_v36 = vmul.f32 %v3404_v7, %v6991_v22 }
 0xbbc   :  { %v3394_v2 = vpop.permute.xlu0 %3393 }
 0xbbd   :  { %v3434_v6 = vmul.f32 %v6990_v21, %v3394_v2 }
 0xbc0   :  { %v3398_v19 = vpop.permute.xlu0 %3397 }
 0xbc1   :  { %v3408_v37 = vpop.permute.xlu1 %3407  ;;  %v3436_v11 = vmul.f32 %v6992_v48, %v3398_v19 }
 0xbc2   :  { %v3441_v53 = vmul.f32 %v3408_v37, %v6993_v0 }
 0xbc4   :  { %v3402_v28 = vpop.permute.xlu0 %3401 }
 0xbc5   :  { %v3460_v14 = vpop.permute.xlu1 %3459  ;;  %v3438_v4 = vmul.f32 %v6994_v8, %v3402_v28 }
 0xbc6   :  { %v3507_v33 = vadd.f32 %v3460_v14, %v3427_v15 }
 0xbc8   :  { %3539 = vrot.lane.b32.xlu1 %v3507_v33, %s4065_s2  ;;  %v3406_v61 = vpop.permute.xlu0 %3405 }
 0xbc9   :  { %v3464_v42 = vpop.permute.xlu1 %3463  ;;  %v3440_v34 = vmul.f32 %v6995_v29, %v3406_v61 }
 0xbca   :  { %v3509_v38 = vadd.f32 %v3464_v42, %v3429_v52 }
 0xbcc   :  { %3543 = vrot.lane.b32.xlu1 %v3509_v38, %s4065_s2  ;;  %v3410_v25 = vpop.permute.xlu0 %3409 }
 0xbcd   :  { %v3468_v54 = vpop.permute.xlu1 %3467  ;;  %v3442_v50 = vmul.f32 %v6996_v35, %v3410_v25 }
 0xbce   :  { %v3511_v5 = vadd.f32 %v3468_v54, %v3431_v46 }
 0xbd0   :  { %3547 = vrot.lane.b32.xlu1 %v3511_v5, %s4065_s2  ;;  %v3462_v45 = vpop.permute.xlu0 %3461 }
 0xbd1   :  { %v3472_v13 = vpop.permute.xlu1 %3471  ;;  %v3508_v41 = vadd.f32 %v3462_v45, %v3428_v51 }
 0xbd2   :  { %v3513_v12 = vadd.f32 %v3472_v13, %v3433_v20 }
 0xbd3   :  { %3541 = vrot.lane.b32.xlu0 %v3508_v41, %s4065_s2 }
 0xbd4   :  { %3551 = vrot.lane.b32.xlu1 %v3513_v12, %s4065_s2  ;;  %v3466_v59 = vpop.permute.xlu0 %3465 }
 0xbd5   :  { %v3476_v58 = vpop.permute.xlu1 %3475  ;;  %v3510_v32 = vadd.f32 %v3466_v59, %v3430_v60 }
 0xbd6   :  { %v3515_v57 = vadd.f32 %v3476_v58, %v3435_v10 }
 0xbd7   :  { %3545 = vrot.lane.b32.xlu0 %v3510_v32, %s4065_s2 }
 0xbd8   :  { %3555 = vrot.lane.b32.xlu1 %v3515_v57, %s4065_s2  ;;  %v3470_v1 = vpop.permute.xlu0 %3469 }
 0xbd9   :  { %v3480_v23 = vpop.permute.xlu1 %3479  ;;  %v3512_v31 = vadd.f32 %v3470_v1, %v3432_v43 }
 0xbda   :  { %v3517_v44 = vadd.f32 %v3480_v23, %v3437_v3 }
 0xbdb   :  { %3549 = vrot.lane.b32.xlu0 %v3512_v31, %s4065_s2 }
 0xbdc   :  { %3559 = vrot.lane.b32.xlu1 %v3517_v44, %s4065_s2  ;;  %v3474_v56 = vpop.permute.xlu0 %3473 }
 0xbdd   :  { %v3484_v39 = vpop.permute.xlu1 %3483  ;;  %v3514_v55 = vadd.f32 %v3474_v56, %v3434_v6 }
 0xbde   :  { %v3519_v49 = vadd.f32 %v3484_v39, %v3439_v36 }
 0xbdf   :  { %3553 = vrot.lane.b32.xlu0 %v3514_v55, %s4065_s2 }
 0xbe0   :  { %3563 = vrot.lane.b32.xlu1 %v3519_v49, %s4065_s2  ;;  %v3478_v27 = vpop.permute.xlu0 %3477 }
 0xbe1   :  { %v3488_v18 = vpop.permute.xlu1 %3487  ;;  %v3516_v40 = vadd.f32 %v3478_v27, %v3436_v11 }
 0xbe2   :  { %v3521_v16 = vadd.f32 %v3488_v18, %v3441_v53 }
 0xbe3   :  { %3557 = vrot.lane.b32.xlu0 %v3516_v40, %s4065_s2 }
 0xbe4   :  { %3567 = vrot.lane.b32.xlu1 %v3521_v16, %s4065_s2  ;;  %v3482_v26 = vpop.permute.xlu0 %3481 }
 0xbe5   :  { %v3518_v17 = vadd.f32 %v3482_v26, %v3438_v4 }
 0xbe7   :  { %3561 = vrot.lane.b32.xlu0 %v3518_v17, %s4065_s2 }
 0xbe8   :  { %v3486_v24 = vpop.permute.xlu0 %3485 }
 0xbe9   :  { %v3520_v9 = vadd.f32 %v3486_v24, %v3440_v34 }
 0xbeb   :  { %3565 = vrot.lane.b32.xlu0 %v3520_v9, %s4065_s2 }
 0xbec   :  { %v3490_v63 = vpop.permute.xlu0 %3489 }
 0xbed   :  { %v3522_v2 = vadd.f32 %v3490_v63, %v3442_v50 }
 0xbef   :  { %3569 = vrot.lane.b32.xlu0 %v3522_v2, %s4065_s2 }
 0xc3a   :  { %v3540_v7 = vpop.permute.xlu1 %3539 }
 0xc3b   :  { %3662 = vst.msk [vmem:[%s6760_s6 + $0x8] sm:$0xff] %vm47_vm0, %v3540_v7 }
 0xc3e   :  { %v3544_v19 = vpop.permute.xlu1 %3543 }
 0xc3f   :  { %3664 = vst.msk [vmem:[%s6760_s6 + $0x28] sm:$0xff] %vm47_vm0, %v3544_v19 }
 0xc42   :  { %v3548_v37 = vpop.permute.xlu1 %3547 }
 0xc43   :  { %3666 = vst.msk [vmem:[%s6760_s6 + $0x48] sm:$0xff] %vm47_vm0, %v3548_v37 }
 0xc45   :  { %v3542_v15 = vpop.permute.xlu0 %3541 }
 0xc46   :  { %v3552_v28 = vpop.permute.xlu1 %3551  ;;  %3663 = vst.msk [vmem:[%s6760_s6 + $0x18] sm:$0xff] %vm47_vm0, %v3542_v15 }
 0xc47   :  { %3668 = vst.msk [vmem:[%s6760_s6 + $0x68] sm:$0xff] %vm47_vm0, %v3552_v28 }
 0xc49   :  { %v3546_v14 = vpop.permute.xlu0 %3545 }
 0xc4a   :  { %v3556_v33 = vpop.permute.xlu1 %3555  ;;  %3665 = vst.msk [vmem:[%s6760_s6 + $0x38] sm:$0xff] %vm47_vm0, %v3546_v14 }
 0xc4b   :  { %3670 = vst.msk [vmem:[%s6760_s6 + $0x88] sm:$0xff] %vm47_vm0, %v3556_v33 }
 0xc4d   :  { %v3550_v52 = vpop.permute.xlu0 %3549 }
 0xc4e   :  { %v3560_v61 = vpop.permute.xlu1 %3559  ;;  %3667 = vst.msk [vmem:[%s6760_s6 + $0x58] sm:$0xff] %vm47_vm0, %v3550_v52 }
 0xc4f   :  { %3672 = vst.msk [vmem:[%s6760_s6 + $0xa8] sm:$0xff] %vm47_vm0, %v3560_v61 }
 0xc51   :  { %v3554_v42 = vpop.permute.xlu0 %3553 }
 0xc52   :  { %v3564_v38 = vpop.permute.xlu1 %3563  ;;  %3669 = vst.msk [vmem:[%s6760_s6 + $0x78] sm:$0xff] %vm47_vm0, %v3554_v42 }
 0xc53   :  { %3674 = vst.msk [vmem:[%s6760_s6 + $0xc8] sm:$0xff] %vm47_vm0, %v3564_v38 }
 0xc55   :  { %v3558_v46 = vpop.permute.xlu0 %3557 }
 0xc56   :  { %v3568_v25 = vpop.permute.xlu1 %3567  ;;  %3671 = vst.msk [vmem:[%s6760_s6 + $0x98] sm:$0xff] %vm47_vm0, %v3558_v46 }
 0xc57   :  { %3676 = vst.msk [vmem:[%s6760_s6 + $0xe8] sm:$0xff] %vm47_vm0, %v3568_v25 }
 0xc59   :  { %v3562_v54 = vpop.permute.xlu0 %3561 }
 0xc5a   :  { %3673 = vst.msk [vmem:[%s6760_s6 + $0xb8] sm:$0xff] %vm47_vm0, %v3562_v54 }
 0xc5d   :  { %v3566_v5 = vpop.permute.xlu0 %3565 }
 0xc5e   :  { %3675 = vst.msk [vmem:[%s6760_s6 + $0xd8] sm:$0xff] %vm47_vm0, %v3566_v5 }
 0xc61   :  { %v3570_v51 = vpop.permute.xlu0 %3569 }
 0xc62   :  { %3677 = vst.msk [vmem:[%s6760_s6 + $0xf8] sm:$0xff] %vm47_vm0, %v3570_v51 }

</bundles_post_ra>
